<compile_context>
chip_gen: v6e
topology: v6e:2x2x1
jax: 0.10.0
libtpu: 0.0.40
codegen_flags: <defaults>
</compile_context>

<pallas_src>
import jax
import jax.numpy as jnp
from jax import lax
from jax.experimental import pallas as pl
from jax.experimental.pallas import tpu as pltpu


# ---------------------------------------------------------------------------
# Pallas kernels
# ---------------------------------------------------------------------------
def conv0_kernel(a_ref, w_ref, scale_ref, shift_ref, o_ref):
    """Layer 0 (Cin=1): (tm, 25) x (25, 16) matmul + bias + LeakyReLU."""
    acc = jnp.dot(a_ref[...], w_ref[...], preferred_element_type=jnp.float32)
    y = acc * scale_ref[...] + shift_ref[...]
    o_ref[...] = jnp.where(y >= 0.0, y, 0.2 * y).astype(o_ref.dtype)


def make_phase_conv_kernel(Ho, Wo, cin, cout, fuse_regressor):
    """5x5/stride-2 conv over phase-decomposed input, fused BN-affine + LeakyReLU.

    Phase refs are (Npad, cin) bf16 with Npad >= (Ho+3)*(Wo+2); flat row index is
    rr*Wc + cc of the (pi, pj) phase of the zero-padded input.  The kernel produces a
    (Ho*Wc, cout) "wide" output whose columns wo >= Wo are garbage (sliced off by the
    wrapper, or zero-weighted in the fused regressor).
    """
    Wc = Wo + 2
    L = Ho * Wc

    def kernel(ee_ref, eo_ref, oe_ref, oo_ref, w_ref, scale_ref, shift_ref, *rest):
        phases = ((ee_ref, eo_ref), (oe_ref, oo_ref))
        W = w_ref[...]                                        # (25*cin, cout) bf16
        acc = jnp.zeros((L, cout), jnp.float32)
        for i in range(5):
            i2, pi = divmod(i, 2)
            for j in range(5):
                j2, pj = divmod(j, 2)
                a = phases[pi][pj][pl.ds(i2 * Wc + j2, L), :]  # (L, cin) contiguous
                t = i * 5 + j
                acc = acc + jnp.dot(a, W[t * cin:(t + 1) * cin, :],
                                    preferred_element_type=jnp.float32)
        y = acc * scale_ref[...] + shift_ref[...]             # folded bias + BN(eval)
        y = jnp.where(y >= 0.0, y, 0.2 * y)                   # LeakyReLU(0.2)
        if fuse_regressor:
            wlin_ref, o_ref = rest
            r = jnp.sum(y * wlin_ref[...])                    # Linear (bias added outside)
            o_ref[...] = jnp.zeros((8, 128), jnp.float32) + r
        else:
            (o_ref,) = rest
            o_ref[...] = y.astype(o_ref.dtype)

    return kernel


# ---------------------------------------------------------------------------
# pallas_call wrappers
# ---------------------------------------------------------------------------
def conv0_pallas(patches, w, scale, shift):
    M, K = patches.shape
    N = w.shape[1]
    # Two large parallel tiles (keeps both v7x TensorCores busy).
    tm = M // 2 if (M % 2 == 0 and (M // 2) % 8 == 0) else M
    return pl.pallas_call(
        conv0_kernel,
        out_shape=jax.ShapeDtypeStruct((M, N), jnp.bfloat16),
        grid=(M // tm,),
        in_specs=[
            pl.BlockSpec((tm, K), lambda i: (i, 0)),
            pl.BlockSpec((K, N), lambda i: (0, 0)),
            pl.BlockSpec((1, N), lambda i: (0, 0)),
            pl.BlockSpec((1, N), lambda i: (0, 0)),
        ],
        out_specs=pl.BlockSpec((tm, N), lambda i: (i, 0)),
        compiler_params=pltpu.CompilerParams(dimension_semantics=("parallel",)),
    )(patches, w, scale, shift)


def phase_conv_pallas(phases, w2, scale, shift, Ho, Wo, wlin=None):
    B, Npad, cin = phases[0].shape
    cout = w2.shape[1]
    Wc = Wo + 2
    L = Ho * Wc
    fuse_regressor = wlin is not None
    kernel = make_phase_conv_kernel(Ho, Wo, cin, cout, fuse_regressor)

    phase_spec = pl.BlockSpec((None, Npad, cin), lambda b: (b, 0, 0))
    in_specs = [phase_spec] * 4 + [
        pl.BlockSpec((25 * cin, cout), lambda b: (0, 0)),
        pl.BlockSpec((1, cout), lambda b: (0, 0)),
        pl.BlockSpec((1, cout), lambda b: (0, 0)),
    ]
    args = list(phases) + [w2, scale, shift]
    if fuse_regressor:
        in_specs.append(pl.BlockSpec(wlin.shape, lambda b: (0, 0)))
        args.append(wlin)
        out_shape = jax.ShapeDtypeStruct((B, 8, 128), jnp.float32)
        out_spec = pl.BlockSpec((None, 8, 128), lambda b: (b, 0, 0))
    else:
        out_shape = jax.ShapeDtypeStruct((B, L, cout), jnp.bfloat16)
        out_spec = pl.BlockSpec((None, L, cout), lambda b: (b, 0, 0))

    return pl.pallas_call(
        kernel,
        out_shape=out_shape,
        grid=(B,),
        in_specs=in_specs,
        out_specs=out_spec,
        compiler_params=pltpu.CompilerParams(dimension_semantics=("parallel",)),
    )(*args)


# ---------------------------------------------------------------------------
# JAX-side glue (cheap, ~1-2x activation bytes)
# ---------------------------------------------------------------------------
def im2col_c1(x):
    # 5x5 / stride-2 / pad-2 patches for a single-channel NHWC input (layer 0 only).
    B, H, W, _ = x.shape
    Ho, Wo = H // 2, W // 2
    xp = jnp.pad(x[..., 0], ((0, 0), (2, 2), (2, 2)))
    taps = [xp[:, i:i + 2 * Ho:2, j:j + 2 * Wo:2]
            for i in range(5) for j in range(5)]
    p = jnp.stack(taps, axis=-1)                            # (B, Ho, Wo, 25)
    return p.reshape(B * Ho * Wo, 25).astype(jnp.bfloat16), Ho, Wo


def phase_split(x):
    # x: (B, H, W, C) -> four flattened bf16 phases of the zero-padded input,
    # each (B, (H//2 + 3) * (W//2 + 2), C), plus the conv output spatial dims.
    B, H, W, C = x.shape
    Ho, Wo = H // 2, W // 2
    Hc, Wc = Ho + 2, Wo + 2
    # pad by 2 (+2 extra zero bottom rows: wrap-around slack for in-kernel flat slices)
    xp = jnp.pad(x, ((0, 0), (2, 4), (2, 2), (0, 0)))
    phases = []
    for pi in range(2):
        for pj in range(2):
            ph = xp[:, pi::2, pj::2, :]                     # (B, Hc + 1, Wc, C)
            phases.append(ph.reshape(B, (Hc + 1) * Wc, C).astype(jnp.bfloat16))
    return phases, Ho, Wo


# ---------------------------------------------------------------------------
# Deterministic synthetic parameters (shapes from SimpleDiscriminator.__init__)
# ---------------------------------------------------------------------------
def init_params(key, num_in_ch=1, size=4, num_layers=4):
    channels = [num_in_ch, 16]
    for il in range(num_layers):
        channels.append(min(16 * 2 ** (il + 1), 256))

    eps = 1e-5
    conv_params, ref_convs = [], []
    for li in range(len(channels) - 1):
        cin, cout = channels[li], channels[li + 1]
        key, k1, k2, k3, k4, k5, k6 = jax.random.split(key, 7)
        # PyTorch Conv2d weight layout: (Cout, Cin, KH, KW)
        w = jax.random.normal(k1, (cout, cin, 5, 5), jnp.float32) * 0.05
        b = jax.random.normal(k2, (cout,), jnp.float32) * 0.05
        if li == 0:                       # first conv has no BatchNorm
            scale = jnp.ones((cout,), jnp.float32)
            shift = b
        else:                             # eval-mode BN folded into per-channel affine
            gamma = 1.0 + 0.1 * jax.random.normal(k3, (cout,), jnp.float32)
            beta = 0.1 * jax.random.normal(k4, (cout,), jnp.float32)
            mean = 0.1 * jax.random.normal(k5, (cout,), jnp.float32)
            var = jax.nn.softplus(jax.random.normal(k6, (cout,), jnp.float32)) + 0.5
            scale = gamma / jnp.sqrt(var + eps)
            shift = beta + scale * (b - mean)
        w_bf = w.astype(jnp.bfloat16)
        # matmul weight (25*Cin, Cout), rows ordered ((i*5 + j)*Cin + ci) to match both
        # the layer-0 im2col and the in-kernel tap slicing.
        w_mat = jnp.transpose(w_bf, (2, 3, 1, 0)).reshape(25 * cin, cout)
        conv_params.append((w_mat, scale.reshape(1, cout), shift.reshape(1, cout)))
        # HWIO f32 copy of the SAME (bf16-rounded) weights for the reference conv.
        ref_convs.append((jnp.transpose(w_bf.astype(jnp.float32), (2, 3, 1, 0)),
                          scale, shift))

    # Regressor weight, pre-permuted from PyTorch's (C,H,W)-flatten order to the last
    # kernel's (Ho*Wc, Cout) wide-activation layout (garbage columns get weight 0).
    cl = channels[-1]
    feat_dim = cl * size * size
    key, kw, kb = jax.random.split(key, 3)
    w_lin = jax.random.normal(kw, (1, feat_dim), jnp.float32) * 0.01   # torch (1, feat)
    b_lin = jax.random.normal(kb, (1,), jnp.float32) * 0.01
    w3 = jnp.transpose(w_lin.reshape(cl, size, size), (1, 2, 0))       # (H, W, C)
    w3 = jnp.pad(w3, ((0, 0), (0, 2), (0, 0)))                         # (H, W+2, C)
    wlin_arr = w3.reshape(size * (size + 2), cl)                       # (Ho*Wc, Cout)
    lin_params = (wlin_arr, b_lin.reshape(1, 1))
    return conv_params, lin_params, (ref_convs, (w_lin, b_lin))


# ---------------------------------------------------------------------------
# Forward pass (Pallas) and pure-JAX reference
# ---------------------------------------------------------------------------
def simple_discriminator_forward(img_nchw, conv_params, lin_params):
    assert len(conv_params) >= 2
    B, cin0 = img_nchw.shape[0], img_nchw.shape[1]
    x = jnp.transpose(img_nchw, (0, 2, 3, 1)).astype(jnp.float32)   # NCHW -> NHWC

    # ---- layer 0 -----------------------------------------------------------
    w0, s0, sh0 = conv_params[0]
    if cin0 == 1:
        patches, Ho, Wo = im2col_c1(x)
        y0 = conv0_pallas(patches, w0, s0, sh0)                     # (B*Ho*Wo, 16)
        act = y0.reshape(B, Ho, Wo, s0.shape[1])
    else:
        phases, Ho, Wo = phase_split(x)
        out = phase_conv_pallas(phases, w0, s0, sh0, Ho, Wo)
        act = out.reshape(B, Ho, Wo + 2, s0.shape[1])[:, :, :Wo, :]

    # ---- layers 1..N: fused phase-conv kernels (last one also runs the regressor) --
    wlin, b_lin = lin_params
    rest = conv_params[1:]
    for li, (w2, sc, sh) in enumerate(rest):
        phases, Ho, Wo = phase_split(act)
        last = li == len(rest) - 1
        out = phase_conv_pallas(phases, w2, sc, sh, Ho, Wo,
                                wlin=wlin if last else None)
        if last:
            return out[:, 0, 0:1] + b_lin                           # (B, 1)
        Wc = Wo + 2
        act = out.reshape(B, Ho, Wc, w2.shape[1])[:, :, :Wo, :]


def reference_forward(img_nchw, ref_convs, ref_lin):
    """Pure-JAX reference with the same bf16 activation/weight dtype flow."""
    x = jnp.transpose(img_nchw, (0, 2, 3, 1)).astype(jnp.float32)
    for w_hwio, scale, shift in ref_convs:
        xin = x.astype(jnp.bfloat16).astype(jnp.float32)
        y = lax.conv_general_dilated(
            xin, w_hwio, window_strides=(2, 2), padding=((2, 2), (2, 2)),
            dimension_numbers=("NHWC", "HWIO", "NHWC"))
        y = y * scale.reshape(1, 1, 1, -1) + shift.reshape(1, 1, 1, -1)
        x = jnp.where(y >= 0.0, y, 0.2 * y)
    w_lin, b_lin = ref_lin
    feats = jnp.transpose(x, (0, 3, 1, 2)).reshape(x.shape[0], -1)   # torch view order
    return feats @ w_lin.T + b_lin.reshape(1, 1)


if __name__ == "__main__":
    # Small config: num_layers=2 -> 3 stride-2 convs, so spatial = 4 * 2**3 = 32.
    NUM_IN_CH, SIZE, NUM_LAYERS, BATCH = 1, 4, 2, 2
    SPATIAL = SIZE * 2 ** (NUM_LAYERS + 1)

    key = jax.random.PRNGKey(0)
    key, pkey, xkey = jax.random.split(key, 3)
    conv_params, lin_params, ref_params = init_params(pkey, NUM_IN_CH, SIZE, NUM_LAYERS)
    img = jax.random.normal(xkey, (BATCH, NUM_IN_CH, SPATIAL, SPATIAL), jnp.float32)

    fwd = jax.jit(lambda im: simple_discriminator_forward(im, conv_params, lin_params))
    out = fwd(img)
    jax.block_until_ready(out)
    assert out.shape == (BATCH, 1), out.shape

    ref = reference_forward(img, *ref_params)
    err = float(jnp.max(jnp.abs(out - ref)))
    assert err < 3e-3, f"max abs error vs reference: {err}"
    print("KERNEL_OK")
</pallas_src>

<mosaic_0001>
module attributes {stable_mosaic.version = 11 : i64} {
  func.func @conv0_kernel(%arg0: i32, %arg1: memref<256x25xbf16, #tpu.memory_space<vmem>>, %arg2: memref<25x16xbf16, #tpu.memory_space<vmem>>, %arg3: memref<1x16xf32, #tpu.memory_space<vmem>>, %arg4: memref<1x16xf32, #tpu.memory_space<vmem>>, %arg5: memref<256x16xbf16, #tpu.memory_space<vmem>>) attributes {dimension_semantics = [#tpu.dimension_semantics<parallel>], iteration_bounds = array<i64: 2>, scalar_prefetch = 0 : i64, scratch_operands = 0 : i64, tpu.core_type = #tpu.core_type<tc>, window_params = [{transform_indices = @transform_0, window_bounds = array<i64: 256, 25>}, {pipeline_mode = #tpu.pipeline_mode<synchronous>, transform_indices = @transform_1, window_bounds = array<i64: 25, 16>}, {pipeline_mode = #tpu.pipeline_mode<synchronous>, transform_indices = @transform_2, window_bounds = array<i64: 1, 16>}, {pipeline_mode = #tpu.pipeline_mode<synchronous>, transform_indices = @transform_3, window_bounds = array<i64: 1, 16>}, {transform_indices = @transform_4, window_bounds = array<i64: 256, 16>}]} {
    %c0 = arith.constant 0 : index
    %c0_0 = arith.constant 0 : index
    %0 = vector.load %arg1[%c0, %c0_0] : memref<256x25xbf16, #tpu.memory_space<vmem>>, vector<256x25xbf16>
    %c0_1 = arith.constant 0 : index
    %c0_2 = arith.constant 0 : index
    %1 = vector.load %arg2[%c0_1, %c0_2] : memref<25x16xbf16, #tpu.memory_space<vmem>>, vector<25x16xbf16>
    %cst = arith.constant dense<0.000000e+00> : vector<256x16xf32>
    %2 = tpu.matmul %0, %1, %cst {dimension_numbers = #tpu.dot_dimension_numbers<[1], [0], [0], [1], [0, 0, 1, 1], [], []>} : vector<256x25xbf16>, vector<25x16xbf16>, vector<256x16xf32> -> vector<256x16xf32>
    %c0_3 = arith.constant 0 : index
    %c0_4 = arith.constant 0 : index
    %3 = vector.load %arg3[%c0_3, %c0_4] : memref<1x16xf32, #tpu.memory_space<vmem>>, vector<1x16xf32>
    %4 = vector.broadcast %3 : vector<1x16xf32> to vector<256x16xf32>
    %5 = arith.mulf %2, %4 : vector<256x16xf32>
    %c0_5 = arith.constant 0 : index
    %c0_6 = arith.constant 0 : index
    %6 = vector.load %arg4[%c0_5, %c0_6] : memref<1x16xf32, #tpu.memory_space<vmem>>, vector<1x16xf32>
    %7 = vector.broadcast %6 : vector<1x16xf32> to vector<256x16xf32>
    %8 = arith.addf %5, %7 : vector<256x16xf32>
    %cst_7 = arith.constant 0.000000e+00 : f32
    %9 = vector.broadcast %cst_7 : f32 to vector<256x16xf32>
    %10 = arith.cmpf oge, %8, %9 : vector<256x16xf32>
    %cst_8 = arith.constant 2.000000e-01 : f32
    %11 = vector.broadcast %cst_8 : f32 to vector<256x16xf32>
    %12 = arith.mulf %11, %8 : vector<256x16xf32>
    %13 = arith.select %10, %8, %12 : vector<256x16xi1>, vector<256x16xf32>
    %14 = arith.truncf %13 : vector<256x16xf32> to vector<256x16xbf16>
    %c0_9 = arith.constant 0 : index
    %c0_10 = arith.constant 0 : index
    %15 = vector.load %arg5[%c0_9, %c0_10] : memref<256x16xbf16, #tpu.memory_space<vmem>>, vector<256x16xbf16>
    tpu.vector_store %arg5[%c0_9, %c0_10], %14 {strides = array<i32>} : memref<256x16xbf16, #tpu.memory_space<vmem>>, vector<256x16xbf16>,
    return
  }
  func.func @transform_0(%arg0: i32) -> (i32, i32) {
    %c0_i32 = arith.constant 0 : i32
    %c0_i32_0 = arith.constant 0 : i32
    return %arg0, %c0_i32 : i32, i32
  }
  func.func @transform_1(%arg0: i32) -> (i32, i32) {
    %c0_i32 = arith.constant 0 : i32
    %c0_i32_0 = arith.constant 0 : i32
    %c0_i32_1 = arith.constant 0 : i32
    return %c0_i32, %c0_i32_0 : i32, i32
  }
  func.func @transform_2(%arg0: i32) -> (i32, i32) {
    %c0_i32 = arith.constant 0 : i32
    %c0_i32_0 = arith.constant 0 : i32
    %c0_i32_1 = arith.constant 0 : i32
    return %c0_i32, %c0_i32_0 : i32, i32
  }
  func.func @transform_3(%arg0: i32) -> (i32, i32) {
    %c0_i32 = arith.constant 0 : i32
    %c0_i32_0 = arith.constant 0 : i32
    %c0_i32_1 = arith.constant 0 : i32
    return %c0_i32, %c0_i32_0 : i32, i32
  }
  func.func @transform_4(%arg0: i32) -> (i32, i32) {
    %c0_i32 = arith.constant 0 : i32
    %c0_i32_0 = arith.constant 0 : i32
    return %arg0, %c0_i32 : i32, i32
  }
}

module attributes {stable_mosaic.version = 11 : i64} {
  func.func @kernel(%arg0: i32, %arg1: memref<1x110x16xbf16, #tpu.memory_space<vmem>>, %arg2: memref<1x110x16xbf16, #tpu.memory_space<vmem>>, %arg3: memref<1x110x16xbf16, #tpu.memory_space<vmem>>, %arg4: memref<1x110x16xbf16, #tpu.memory_space<vmem>>, %arg5: memref<400x32xbf16, #tpu.memory_space<vmem>>, %arg6: memref<1x32xf32, #tpu.memory_space<vmem>>, %arg7: memref<1x32xf32, #tpu.memory_space<vmem>>, %arg8: memref<1x80x32xbf16, #tpu.memory_space<vmem>>) attributes {dimension_semantics = [#tpu.dimension_semantics<parallel>], iteration_bounds = array<i64: 2>, scalar_prefetch = 0 : i64, scratch_operands = 0 : i64, tpu.core_type = #tpu.core_type<tc>, window_params = [{transform_indices = @transform_0, window_bounds = array<i64: 1, 110, 16>}, {transform_indices = @transform_1, window_bounds = array<i64: 1, 110, 16>}, {transform_indices = @transform_2, window_bounds = array<i64: 1, 110, 16>}, {transform_indices = @transform_3, window_bounds = array<i64: 1, 110, 16>}, {pipeline_mode = #tpu.pipeline_mode<synchronous>, transform_indices = @transform_4, window_bounds = array<i64: 400, 32>}, {pipeline_mode = #tpu.pipeline_mode<synchronous>, transform_indices = @transform_5, window_bounds = array<i64: 1, 32>}, {pipeline_mode = #tpu.pipeline_mode<synchronous>, transform_indices = @transform_6, window_bounds = array<i64: 1, 32>}, {transform_indices = @transform_7, window_bounds = array<i64: 1, 80, 32>}]} {
    %c0 = arith.constant 0 : index
    %c0_0 = arith.constant 0 : index
    %0 = vector.load %arg5[%c0, %c0_0] : memref<400x32xbf16, #tpu.memory_space<vmem>>, vector<400x32xbf16>
    %cst = arith.constant 0.000000e+00 : f32
    %1 = vector.broadcast %cst : f32 to vector<80x32xf32>
    %c0_1 = arith.constant 0 : index
    %c0_2 = arith.constant 0 : index
    %c0_3 = arith.constant 0 : index
    %2 = vector.load %arg1[%c0_1, %c0_2, %c0_3] : memref<1x110x16xbf16, #tpu.memory_space<vmem>>, vector<1x80x16xbf16>
    %3 = vector.shape_cast %2 : vector<1x80x16xbf16> to vector<80x16xbf16>
    %4 = vector.extract_strided_slice %0 {offsets = [0, 0], sizes = [16, 32], strides = [1, 1]} : vector<400x32xbf16> to vector<16x32xbf16>
    %cst_4 = arith.constant dense<0.000000e+00> : vector<80x32xf32>
    %5 = tpu.matmul %3, %4, %cst_4 {dimension_numbers = #tpu.dot_dimension_numbers<[1], [0], [0], [1], [0, 0, 1, 1], [], []>} : vector<80x16xbf16>, vector<16x32xbf16>, vector<80x32xf32> -> vector<80x32xf32>
    %6 = arith.addf %1, %5 : vector<80x32xf32>
    %c0_5 = arith.constant 0 : index
    %c0_6 = arith.constant 0 : index
    %c0_7 = arith.constant 0 : index
    %7 = vector.load %arg2[%c0_5, %c0_6, %c0_7] : memref<1x110x16xbf16, #tpu.memory_space<vmem>>, vector<1x80x16xbf16>
    %8 = vector.shape_cast %7 : vector<1x80x16xbf16> to vector<80x16xbf16>
    %9 = vector.extract_strided_slice %0 {offsets = [16, 0], sizes = [16, 32], strides = [1, 1]} : vector<400x32xbf16> to vector<16x32xbf16>
    %cst_8 = arith.constant dense<0.000000e+00> : vector<80x32xf32>
    %10 = tpu.matmul %8, %9, %cst_8 {dimension_numbers = #tpu.dot_dimension_numbers<[1], [0], [0], [1], [0, 0, 1, 1], [], []>} : vector<80x16xbf16>, vector<16x32xbf16>, vector<80x32xf32> -> vector<80x32xf32>
    %11 = arith.addf %6, %10 : vector<80x32xf32>
    %c0_9 = arith.constant 0 : index
    %c1 = arith.constant 1 : index
    %c0_10 = arith.constant 0 : index
    %12 = vector.load %arg1[%c0_9, %c1, %c0_10] : memref<1x110x16xbf16, #tpu.memory_space<vmem>>, vector<1x80x16xbf16>
    %13 = vector.shape_cast %12 : vector<1x80x16xbf16> to vector<80x16xbf16>
    %14 = vector.extract_strided_slice %0 {offsets = [32, 0], sizes = [16, 32], strides = [1, 1]} : vector<400x32xbf16> to vector<16x32xbf16>
    %cst_11 = arith.constant dense<0.000000e+00> : vector<80x32xf32>
    %15 = tpu.matmul %13, %14, %cst_11 {dimension_numbers = #tpu.dot_dimension_numbers<[1], [0], [0], [1], [0, 0, 1, 1], [], []>} : vector<80x16xbf16>, vector<16x32xbf16>, vector<80x32xf32> -> vector<80x32xf32>
    %16 = arith.addf %11, %15 : vector<80x32xf32>
    %c0_12 = arith.constant 0 : index
    %c1_13 = arith.constant 1 : index
    %c0_14 = arith.constant 0 : index
    %17 = vector.load %arg2[%c0_12, %c1_13, %c0_14] : memref<1x110x16xbf16, #tpu.memory_space<vmem>>, vector<1x80x16xbf16>
    %18 = vector.shape_cast %17 : vector<1x80x16xbf16> to vector<80x16xbf16>
    %19 = vector.extract_strided_slice %0 {offsets = [48, 0], sizes = [16, 32], strides = [1, 1]} : vector<400x32xbf16> to vector<16x32xbf16>
    %cst_15 = arith.constant dense<0.000000e+00> : vector<80x32xf32>
    %20 = tpu.matmul %18, %19, %cst_15 {dimension_numbers = #tpu.dot_dimension_numbers<[1], [0], [0], [1], [0, 0, 1, 1], [], []>} : vector<80x16xbf16>, vector<16x32xbf16>, vector<80x32xf32> -> vector<80x32xf32>
    %21 = arith.addf %16, %20 : vector<80x32xf32>
    %c0_16 = arith.constant 0 : index
    %c2 = arith.constant 2 : index
    %c0_17 = arith.constant 0 : index
    %22 = vector.load %arg1[%c0_16, %c2, %c0_17] : memref<1x110x16xbf16, #tpu.memory_space<vmem>>, vector<1x80x16xbf16>
    %23 = vector.shape_cast %22 : vector<1x80x16xbf16> to vector<80x16xbf16>
    %24 = vector.extract_strided_slice %0 {offsets = [64, 0], sizes = [16, 32], strides = [1, 1]} : vector<400x32xbf16> to vector<16x32xbf16>
    %cst_18 = arith.constant dense<0.000000e+00> : vector<80x32xf32>
    %25 = tpu.matmul %23, %24, %cst_18 {dimension_numbers = #tpu.dot_dimension_numbers<[1], [0], [0], [1], [0, 0, 1, 1], [], []>} : vector<80x16xbf16>, vector<16x32xbf16>, vector<80x32xf32> -> vector<80x32xf32>
    %26 = arith.addf %21, %25 : vector<80x32xf32>
    %c0_19 = arith.constant 0 : index
    %c0_20 = arith.constant 0 : index
    %c0_21 = arith.constant 0 : index
    %27 = vector.load %arg3[%c0_19, %c0_20, %c0_21] : memref<1x110x16xbf16, #tpu.memory_space<vmem>>, vector<1x80x16xbf16>
    %28 = vector.shape_cast %27 : vector<1x80x16xbf16> to vector<80x16xbf16>
    %29 = vector.extract_strided_slice %0 {offsets = [80, 0], sizes = [16, 32], strides = [1, 1]} : vector<400x32xbf16> to vector<16x32xbf16>
    %cst_22 = arith.constant dense<0.000000e+00> : vector<80x32xf32>
    %30 = tpu.matmul %28, %29, %cst_22 {dimension_numbers = #tpu.dot_dimension_numbers<[1], [0], [0], [1], [0, 0, 1, 1], [], []>} : vector<80x16xbf16>, vector<16x32xbf16>, vector<80x32xf32> -> vector<80x32xf32>
    %31 = arith.addf %26, %30 : vector<80x32xf32>
    %c0_23 = arith.constant 0 : index
    %c0_24 = arith.constant 0 : index
    %c0_25 = arith.constant 0 : index
    %32 = vector.load %arg4[%c0_23, %c0_24, %c0_25] : memref<1x110x16xbf16, #tpu.memory_space<vmem>>, vector<1x80x16xbf16>
    %33 = vector.shape_cast %32 : vector<1x80x16xbf16> to vector<80x16xbf16>
    %34 = vector.extract_strided_slice %0 {offsets = [96, 0], sizes = [16, 32], strides = [1, 1]} : vector<400x32xbf16> to vector<16x32xbf16>
    %cst_26 = arith.constant dense<0.000000e+00> : vector<80x32xf32>
    %35 = tpu.matmul %33, %34, %cst_26 {dimension_numbers = #tpu.dot_dimension_numbers<[1], [0], [0], [1], [0, 0, 1, 1], [], []>} : vector<80x16xbf16>, vector<16x32xbf16>, vector<80x32xf32> -> vector<80x32xf32>
    %36 = arith.addf %31, %35 : vector<80x32xf32>
    %c0_27 = arith.constant 0 : index
    %c1_28 = arith.constant 1 : index
    %c0_29 = arith.constant 0 : index
    %37 = vector.load %arg3[%c0_27, %c1_28, %c0_29] : memref<1x110x16xbf16, #tpu.memory_space<vmem>>, vector<1x80x16xbf16>
    %38 = vector.shape_cast %37 : vector<1x80x16xbf16> to vector<80x16xbf16>
    %39 = vector.extract_strided_slice %0 {offsets = [112, 0], sizes = [16, 32], strides = [1, 1]} : vector<400x32xbf16> to vector<16x32xbf16>
    %cst_30 = arith.constant dense<0.000000e+00> : vector<80x32xf32>
    %40 = tpu.matmul %38, %39, %cst_30 {dimension_numbers = #tpu.dot_dimension_numbers<[1], [0], [0], [1], [0, 0, 1, 1], [], []>} : vector<80x16xbf16>, vector<16x32xbf16>, vector<80x32xf32> -> vector<80x32xf32>
    %41 = arith.addf %36, %40 : vector<80x32xf32>
    %c0_31 = arith.constant 0 : index
    %c1_32 = arith.constant 1 : index
    %c0_33 = arith.constant 0 : index
    %42 = vector.load %arg4[%c0_31, %c1_32, %c0_33] : memref<1x110x16xbf16, #tpu.memory_space<vmem>>, vector<1x80x16xbf16>
    %43 = vector.shape_cast %42 : vector<1x80x16xbf16> to vector<80x16xbf16>
    %44 = vector.extract_strided_slice %0 {offsets = [128, 0], sizes = [16, 32], strides = [1, 1]} : vector<400x32xbf16> to vector<16x32xbf16>
    %cst_34 = arith.constant dense<0.000000e+00> : vector<80x32xf32>
    %45 = tpu.matmul %43, %44, %cst_34 {dimension_numbers = #tpu.dot_dimension_numbers<[1], [0], [0], [1], [0, 0, 1, 1], [], []>} : vector<80x16xbf16>, vector<16x32xbf16>, vector<80x32xf32> -> vector<80x32xf32>
    %46 = arith.addf %41, %45 : vector<80x32xf32>
    %c0_35 = arith.constant 0 : index
    %c2_36 = arith.constant 2 : index
    %c0_37 = arith.constant 0 : index
    %47 = vector.load %arg3[%c0_35, %c2_36, %c0_37] : memref<1x110x16xbf16, #tpu.memory_space<vmem>>, vector<1x80x16xbf16>
    %48 = vector.shape_cast %47 : vector<1x80x16xbf16> to vector<80x16xbf16>
    %49 = vector.extract_strided_slice %0 {offsets = [144, 0], sizes = [16, 32], strides = [1, 1]} : vector<400x32xbf16> to vector<16x32xbf16>
    %cst_38 = arith.constant dense<0.000000e+00> : vector<80x32xf32>
    %50 = tpu.matmul %48, %49, %cst_38 {dimension_numbers = #tpu.dot_dimension_numbers<[1], [0], [0], [1], [0, 0, 1, 1], [], []>} : vector<80x16xbf16>, vector<16x32xbf16>, vector<80x32xf32> -> vector<80x32xf32>
    %51 = arith.addf %46, %50 : vector<80x32xf32>
    %c0_39 = arith.constant 0 : index
    %c10 = arith.constant 10 : index
    %c0_40 = arith.constant 0 : index
    %52 = vector.load %arg1[%c0_39, %c10, %c0_40] : memref<1x110x16xbf16, #tpu.memory_space<vmem>>, vector<1x80x16xbf16>
    %53 = vector.shape_cast %52 : vector<1x80x16xbf16> to vector<80x16xbf16>
    %54 = vector.extract_strided_slice %0 {offsets = [160, 0], sizes = [16, 32], strides = [1, 1]} : vector<400x32xbf16> to vector<16x32xbf16>
    %cst_41 = arith.constant dense<0.000000e+00> : vector<80x32xf32>
    %55 = tpu.matmul %53, %54, %cst_41 {dimension_numbers = #tpu.dot_dimension_numbers<[1], [0], [0], [1], [0, 0, 1, 1], [], []>} : vector<80x16xbf16>, vector<16x32xbf16>, vector<80x32xf32> -> vector<80x32xf32>
    %56 = arith.addf %51, %55 : vector<80x32xf32>
    %c0_42 = arith.constant 0 : index
    %c10_43 = arith.constant 10 : index
    %c0_44 = arith.constant 0 : index
    %57 = vector.load %arg2[%c0_42, %c10_43, %c0_44] : memref<1x110x16xbf16, #tpu.memory_space<vmem>>, vector<1x80x16xbf16>
    %58 = vector.shape_cast %57 : vector<1x80x16xbf16> to vector<80x16xbf16>
    %59 = vector.extract_strided_slice %0 {offsets = [176, 0], sizes = [16, 32], strides = [1, 1]} : vector<400x32xbf16> to vector<16x32xbf16>
    %cst_45 = arith.constant dense<0.000000e+00> : vector<80x32xf32>
    %60 = tpu.matmul %58, %59, %cst_45 {dimension_numbers = #tpu.dot_dimension_numbers<[1], [0], [0], [1], [0, 0, 1, 1], [], []>} : vector<80x16xbf16>, vector<16x32xbf16>, vector<80x32xf32> -> vector<80x32xf32>
    %61 = arith.addf %56, %60 : vector<80x32xf32>
    %c0_46 = arith.constant 0 : index
    %c11 = arith.constant 11 : index
    %c0_47 = arith.constant 0 : index
    %62 = vector.load %arg1[%c0_46, %c11, %c0_47] : memref<1x110x16xbf16, #tpu.memory_space<vmem>>, vector<1x80x16xbf16>
    %63 = vector.shape_cast %62 : vector<1x80x16xbf16> to vector<80x16xbf16>
    %64 = vector.extract_strided_slice %0 {offsets = [192, 0], sizes = [16, 32], strides = [1, 1]} : vector<400x32xbf16> to vector<16x32xbf16>
    %cst_48 = arith.constant dense<0.000000e+00> : vector<80x32xf32>
    %65 = tpu.matmul %63, %64, %cst_48 {dimension_numbers = #tpu.dot_dimension_numbers<[1], [0], [0], [1], [0, 0, 1, 1], [], []>} : vector<80x16xbf16>, vector<16x32xbf16>, vector<80x32xf32> -> vector<80x32xf32>
    %66 = arith.addf %61, %65 : vector<80x32xf32>
    %c0_49 = arith.constant 0 : index
    %c11_50 = arith.constant 11 : index
    %c0_51 = arith.constant 0 : index
    %67 = vector.load %arg2[%c0_49, %c11_50, %c0_51] : memref<1x110x16xbf16, #tpu.memory_space<vmem>>, vector<1x80x16xbf16>
    %68 = vector.shape_cast %67 : vector<1x80x16xbf16> to vector<80x16xbf16>
    %69 = vector.extract_strided_slice %0 {offsets = [208, 0], sizes = [16, 32], strides = [1, 1]} : vector<400x32xbf16> to vector<16x32xbf16>
    %cst_52 = arith.constant dense<0.000000e+00> : vector<80x32xf32>
    %70 = tpu.matmul %68, %69, %cst_52 {dimension_numbers = #tpu.dot_dimension_numbers<[1], [0], [0], [1], [0, 0, 1, 1], [], []>} : vector<80x16xbf16>, vector<16x32xbf16>, vector<80x32xf32> -> vector<80x32xf32>
    %71 = arith.addf %66, %70 : vector<80x32xf32>
    %c0_53 = arith.constant 0 : index
    %c12 = arith.constant 12 : index
    %c0_54 = arith.constant 0 : index
    %72 = vector.load %arg1[%c0_53, %c12, %c0_54] : memref<1x110x16xbf16, #tpu.memory_space<vmem>>, vector<1x80x16xbf16>
    %73 = vector.shape_cast %72 : vector<1x80x16xbf16> to vector<80x16xbf16>
    %74 = vector.extract_strided_slice %0 {offsets = [224, 0], sizes = [16, 32], strides = [1, 1]} : vector<400x32xbf16> to vector<16x32xbf16>
    %cst_55 = arith.constant dense<0.000000e+00> : vector<80x32xf32>
    %75 = tpu.matmul %73, %74, %cst_55 {dimension_numbers = #tpu.dot_dimension_numbers<[1], [0], [0], [1], [0, 0, 1, 1], [], []>} : vector<80x16xbf16>, vector<16x32xbf16>, vector<80x32xf32> -> vector<80x32xf32>
    %76 = arith.addf %71, %75 : vector<80x32xf32>
    %c0_56 = arith.constant 0 : index
    %c10_57 = arith.constant 10 : index
    %c0_58 = arith.constant 0 : index
    %77 = vector.load %arg3[%c0_56, %c10_57, %c0_58] : memref<1x110x16xbf16, #tpu.memory_space<vmem>>, vector<1x80x16xbf16>
    %78 = vector.shape_cast %77 : vector<1x80x16xbf16> to vector<80x16xbf16>
    %79 = vector.extract_strided_slice %0 {offsets = [240, 0], sizes = [16, 32], strides = [1, 1]} : vector<400x32xbf16> to vector<16x32xbf16>
    %cst_59 = arith.constant dense<0.000000e+00> : vector<80x32xf32>
    %80 = tpu.matmul %78, %79, %cst_59 {dimension_numbers = #tpu.dot_dimension_numbers<[1], [0], [0], [1], [0, 0, 1, 1], [], []>} : vector<80x16xbf16>, vector<16x32xbf16>, vector<80x32xf32> -> vector<80x32xf32>
    %81 = arith.addf %76, %80 : vector<80x32xf32>
    %c0_60 = arith.constant 0 : index
    %c10_61 = arith.constant 10 : index
    %c0_62 = arith.constant 0 : index
    %82 = vector.load %arg4[%c0_60, %c10_61, %c0_62] : memref<1x110x16xbf16, #tpu.memory_space<vmem>>, vector<1x80x16xbf16>
    %83 = vector.shape_cast %82 : vector<1x80x16xbf16> to vector<80x16xbf16>
    %84 = vector.extract_strided_slice %0 {offsets = [256, 0], sizes = [16, 32], strides = [1, 1]} : vector<400x32xbf16> to vector<16x32xbf16>
    %cst_63 = arith.constant dense<0.000000e+00> : vector<80x32xf32>
    %85 = tpu.matmul %83, %84, %cst_63 {dimension_numbers = #tpu.dot_dimension_numbers<[1], [0], [0], [1], [0, 0, 1, 1], [], []>} : vector<80x16xbf16>, vector<16x32xbf16>, vector<80x32xf32> -> vector<80x32xf32>
    %86 = arith.addf %81, %85 : vector<80x32xf32>
    %c0_64 = arith.constant 0 : index
    %c11_65 = arith.constant 11 : index
    %c0_66 = arith.constant 0 : index
    %87 = vector.load %arg3[%c0_64, %c11_65, %c0_66] : memref<1x110x16xbf16, #tpu.memory_space<vmem>>, vector<1x80x16xbf16>
    %88 = vector.shape_cast %87 : vector<1x80x16xbf16> to vector<80x16xbf16>
    %89 = vector.extract_strided_slice %0 {offsets = [272, 0], sizes = [16, 32], strides = [1, 1]} : vector<400x32xbf16> to vector<16x32xbf16>
    %cst_67 = arith.constant dense<0.000000e+00> : vector<80x32xf32>
    %90 = tpu.matmul %88, %89, %cst_67 {dimension_numbers = #tpu.dot_dimension_numbers<[1], [0], [0], [1], [0, 0, 1, 1], [], []>} : vector<80x16xbf16>, vector<16x32xbf16>, vector<80x32xf32> -> vector<80x32xf32>
    %91 = arith.addf %86, %90 : vector<80x32xf32>
    %c0_68 = arith.constant 0 : index
    %c11_69 = arith.constant 11 : index
    %c0_70 = arith.constant 0 : index
    %92 = vector.load %arg4[%c0_68, %c11_69, %c0_70] : memref<1x110x16xbf16, #tpu.memory_space<vmem>>, vector<1x80x16xbf16>
    %93 = vector.shape_cast %92 : vector<1x80x16xbf16> to vector<80x16xbf16>
    %94 = vector.extract_strided_slice %0 {offsets = [288, 0], sizes = [16, 32], strides = [1, 1]} : vector<400x32xbf16> to vector<16x32xbf16>
    %cst_71 = arith.constant dense<0.000000e+00> : vector<80x32xf32>
    %95 = tpu.matmul %93, %94, %cst_71 {dimension_numbers = #tpu.dot_dimension_numbers<[1], [0], [0], [1], [0, 0, 1, 1], [], []>} : vector<80x16xbf16>, vector<16x32xbf16>, vector<80x32xf32> -> vector<80x32xf32>
    %96 = arith.addf %91, %95 : vector<80x32xf32>
    %c0_72 = arith.constant 0 : index
    %c12_73 = arith.constant 12 : index
    %c0_74 = arith.constant 0 : index
    %97 = vector.load %arg3[%c0_72, %c12_73, %c0_74] : memref<1x110x16xbf16, #tpu.memory_space<vmem>>, vector<1x80x16xbf16>
    %98 = vector.shape_cast %97 : vector<1x80x16xbf16> to vector<80x16xbf16>
    %99 = vector.extract_strided_slice %0 {offsets = [304, 0], sizes = [16, 32], strides = [1, 1]} : vector<400x32xbf16> to vector<16x32xbf16>
    %cst_75 = arith.constant dense<0.000000e+00> : vector<80x32xf32>
    %100 = tpu.matmul %98, %99, %cst_75 {dimension_numbers = #tpu.dot_dimension_numbers<[1], [0], [0], [1], [0, 0, 1, 1], [], []>} : vector<80x16xbf16>, vector<16x32xbf16>, vector<80x32xf32> -> vector<80x32xf32>
    %101 = arith.addf %96, %100 : vector<80x32xf32>
    %c0_76 = arith.constant 0 : index
    %c20 = arith.constant 20 : index
    %c0_77 = arith.constant 0 : index
    %102 = vector.load %arg1[%c0_76, %c20, %c0_77] : memref<1x110x16xbf16, #tpu.memory_space<vmem>>, vector<1x80x16xbf16>
    %103 = vector.shape_cast %102 : vector<1x80x16xbf16> to vector<80x16xbf16>
    %104 = vector.extract_strided_slice %0 {offsets = [320, 0], sizes = [16, 32], strides = [1, 1]} : vector<400x32xbf16> to vector<16x32xbf16>
    %cst_78 = arith.constant dense<0.000000e+00> : vector<80x32xf32>
    %105 = tpu.matmul %103, %104, %cst_78 {dimension_numbers = #tpu.dot_dimension_numbers<[1], [0], [0], [1], [0, 0, 1, 1], [], []>} : vector<80x16xbf16>, vector<16x32xbf16>, vector<80x32xf32> -> vector<80x32xf32>
    %106 = arith.addf %101, %105 : vector<80x32xf32>
    %c0_79 = arith.constant 0 : index
    %c20_80 = arith.constant 20 : index
    %c0_81 = arith.constant 0 : index
    %107 = vector.load %arg2[%c0_79, %c20_80, %c0_81] : memref<1x110x16xbf16, #tpu.memory_space<vmem>>, vector<1x80x16xbf16>
    %108 = vector.shape_cast %107 : vector<1x80x16xbf16> to vector<80x16xbf16>
    %109 = vector.extract_strided_slice %0 {offsets = [336, 0], sizes = [16, 32], strides = [1, 1]} : vector<400x32xbf16> to vector<16x32xbf16>
    %cst_82 = arith.constant dense<0.000000e+00> : vector<80x32xf32>
    %110 = tpu.matmul %108, %109, %cst_82 {dimension_numbers = #tpu.dot_dimension_numbers<[1], [0], [0], [1], [0, 0, 1, 1], [], []>} : vector<80x16xbf16>, vector<16x32xbf16>, vector<80x32xf32> -> vector<80x32xf32>
    %111 = arith.addf %106, %110 : vector<80x32xf32>
    %c0_83 = arith.constant 0 : index
    %c21 = arith.constant 21 : index
    %c0_84 = arith.constant 0 : index
    %112 = vector.load %arg1[%c0_83, %c21, %c0_84] : memref<1x110x16xbf16, #tpu.memory_space<vmem>>, vector<1x80x16xbf16>
    %113 = vector.shape_cast %112 : vector<1x80x16xbf16> to vector<80x16xbf16>
    %114 = vector.extract_strided_slice %0 {offsets = [352, 0], sizes = [16, 32], strides = [1, 1]} : vector<400x32xbf16> to vector<16x32xbf16>
    %cst_85 = arith.constant dense<0.000000e+00> : vector<80x32xf32>
    %115 = tpu.matmul %113, %114, %cst_85 {dimension_numbers = #tpu.dot_dimension_numbers<[1], [0], [0], [1], [0, 0, 1, 1], [], []>} : vector<80x16xbf16>, vector<16x32xbf16>, vector<80x32xf32> -> vector<80x32xf32>
    %116 = arith.addf %111, %115 : vector<80x32xf32>
    %c0_86 = arith.constant 0 : index
    %c21_87 = arith.constant 21 : index
    %c0_88 = arith.constant 0 : index
    %117 = vector.load %arg2[%c0_86, %c21_87, %c0_88] : memref<1x110x16xbf16, #tpu.memory_space<vmem>>, vector<1x80x16xbf16>
    %118 = vector.shape_cast %117 : vector<1x80x16xbf16> to vector<80x16xbf16>
    %119 = vector.extract_strided_slice %0 {offsets = [368, 0], sizes = [16, 32], strides = [1, 1]} : vector<400x32xbf16> to vector<16x32xbf16>
    %cst_89 = arith.constant dense<0.000000e+00> : vector<80x32xf32>
    %120 = tpu.matmul %118, %119, %cst_89 {dimension_numbers = #tpu.dot_dimension_numbers<[1], [0], [0], [1], [0, 0, 1, 1], [], []>} : vector<80x16xbf16>, vector<16x32xbf16>, vector<80x32xf32> -> vector<80x32xf32>
    %121 = arith.addf %116, %120 : vector<80x32xf32>
    %c0_90 = arith.constant 0 : index
    %c22 = arith.constant 22 : index
    %c0_91 = arith.constant 0 : index
    %122 = vector.load %arg1[%c0_90, %c22, %c0_91] : memref<1x110x16xbf16, #tpu.memory_space<vmem>>, vector<1x80x16xbf16>
    %123 = vector.shape_cast %122 : vector<1x80x16xbf16> to vector<80x16xbf16>
    %124 = vector.extract_strided_slice %0 {offsets = [384, 0], sizes = [16, 32], strides = [1, 1]} : vector<400x32xbf16> to vector<16x32xbf16>
    %cst_92 = arith.constant dense<0.000000e+00> : vector<80x32xf32>
    %125 = tpu.matmul %123, %124, %cst_92 {dimension_numbers = #tpu.dot_dimension_numbers<[1], [0], [0], [1], [0, 0, 1, 1], [], []>} : vector<80x16xbf16>, vector<16x32xbf16>, vector<80x32xf32> -> vector<80x32xf32>
    %126 = arith.addf %121, %125 : vector<80x32xf32>
    %c0_93 = arith.constant 0 : index
    %c0_94 = arith.constant 0 : index
    %127 = vector.load %arg6[%c0_93, %c0_94] : memref<1x32xf32, #tpu.memory_space<vmem>>, vector<1x32xf32>
    %128 = vector.broadcast %127 : vector<1x32xf32> to vector<80x32xf32>
    %129 = arith.mulf %126, %128 : vector<80x32xf32>
    %c0_95 = arith.constant 0 : index
    %c0_96 = arith.constant 0 : index
    %130 = vector.load %arg7[%c0_95, %c0_96] : memref<1x32xf32, #tpu.memory_space<vmem>>, vector<1x32xf32>
    %131 = vector.broadcast %130 : vector<1x32xf32> to vector<80x32xf32>
    %132 = arith.addf %129, %131 : vector<80x32xf32>
    %cst_97 = arith.constant 0.000000e+00 : f32
    %133 = vector.broadcast %cst_97 : f32 to vector<80x32xf32>
    %134 = arith.cmpf oge, %132, %133 : vector<80x32xf32>
    %cst_98 = arith.constant 2.000000e-01 : f32
    %135 = vector.broadcast %cst_98 : f32 to vector<80x32xf32>
    %136 = arith.mulf %135, %132 : vector<80x32xf32>
    %137 = arith.select %134, %132, %136 : vector<80x32xi1>, vector<80x32xf32>
    %138 = arith.truncf %137 : vector<80x32xf32> to vector<80x32xbf16>
    %c0_99 = arith.constant 0 : index
    %c0_100 = arith.constant 0 : index
    %c0_101 = arith.constant 0 : index
    %139 = vector.load %arg8[%c0_99, %c0_100, %c0_101] : memref<1x80x32xbf16, #tpu.memory_space<vmem>>, vector<1x80x32xbf16>
    %140 = vector.shape_cast %139 : vector<1x80x32xbf16> to vector<80x32xbf16>
    %141 = vector.shape_cast %138 : vector<80x32xbf16> to vector<1x80x32xbf16>
    tpu.vector_store %arg8[%c0_99, %c0_100, %c0_101], %141 {strides = array<i32>} : memref<1x80x32xbf16, #tpu.memory_space<vmem>>, vector<1x80x32xbf16>,
    return
  }
  func.func @transform_0(%arg0: i32) -> (i32, i32, i32) {
    %c0_i32 = arith.constant 0 : i32
    %c0_i32_0 = arith.constant 0 : i32
    %c0_i32_1 = arith.constant 0 : i32
    return %arg0, %c0_i32, %c0_i32_0 : i32, i32, i32
  }
  func.func @transform_1(%arg0: i32) -> (i32, i32, i32) {
    %c0_i32 = arith.constant 0 : i32
    %c0_i32_0 = arith.constant 0 : i32
    %c0_i32_1 = arith.constant 0 : i32
    return %arg0, %c0_i32, %c0_i32_0 : i32, i32, i32
  }
  func.func @transform_2(%arg0: i32) -> (i32, i32, i32) {
    %c0_i32 = arith.constant 0 : i32
    %c0_i32_0 = arith.constant 0 : i32
    %c0_i32_1 = arith.constant 0 : i32
    return %arg0, %c0_i32, %c0_i32_0 : i32, i32, i32
  }
  func.func @transform_3(%arg0: i32) -> (i32, i32, i32) {
    %c0_i32 = arith.constant 0 : i32
    %c0_i32_0 = arith.constant 0 : i32
    %c0_i32_1 = arith.constant 0 : i32
    return %arg0, %c0_i32, %c0_i32_0 : i32, i32, i32
  }
  func.func @transform_4(%arg0: i32) -> (i32, i32) {
    %c0_i32 = arith.constant 0 : i32
    %c0_i32_0 = arith.constant 0 : i32
    %c0_i32_1 = arith.constant 0 : i32
    return %c0_i32, %c0_i32_0 : i32, i32
  }
  func.func @transform_5(%arg0: i32) -> (i32, i32) {
    %c0_i32 = arith.constant 0 : i32
    %c0_i32_0 = arith.constant 0 : i32
    %c0_i32_1 = arith.constant 0 : i32
    return %c0_i32, %c0_i32_0 : i32, i32
  }
  func.func @transform_6(%arg0: i32) -> (i32, i32) {
    %c0_i32 = arith.constant 0 : i32
    %c0_i32_0 = arith.constant 0 : i32
    %c0_i32_1 = arith.constant 0 : i32
    return %c0_i32, %c0_i32_0 : i32, i32
  }
  func.func @transform_7(%arg0: i32) -> (i32, i32, i32) {
    %c0_i32 = arith.constant 0 : i32
    %c0_i32_0 = arith.constant 0 : i32
    %c0_i32_1 = arith.constant 0 : i32
    return %arg0, %c0_i32, %c0_i32_0 : i32, i32, i32
  }
}

module attributes {stable_mosaic.version = 11 : i64} {
  func.func @kernel(%arg0: i32, %arg1: memref<1x42x32xbf16, #tpu.memory_space<vmem>>, %arg2: memref<1x42x32xbf16, #tpu.memory_space<vmem>>, %arg3: memref<1x42x32xbf16, #tpu.memory_space<vmem>>, %arg4: memref<1x42x32xbf16, #tpu.memory_space<vmem>>, %arg5: memref<800x64xbf16, #tpu.memory_space<vmem>>, %arg6: memref<1x64xf32, #tpu.memory_space<vmem>>, %arg7: memref<1x64xf32, #tpu.memory_space<vmem>>, %arg8: memref<24x64xf32, #tpu.memory_space<vmem>>, %arg9: memref<1x8x128xf32, #tpu.memory_space<vmem>>) attributes {dimension_semantics = [#tpu.dimension_semantics<parallel>], iteration_bounds = array<i64: 2>, scalar_prefetch = 0 : i64, scratch_operands = 0 : i64, tpu.core_type = #tpu.core_type<tc>, window_params = [{transform_indices = @transform_0, window_bounds = array<i64: 1, 42, 32>}, {transform_indices = @transform_1, window_bounds = array<i64: 1, 42, 32>}, {transform_indices = @transform_2, window_bounds = array<i64: 1, 42, 32>}, {transform_indices = @transform_3, window_bounds = array<i64: 1, 42, 32>}, {pipeline_mode = #tpu.pipeline_mode<synchronous>, transform_indices = @transform_4, window_bounds = array<i64: 800, 64>}, {pipeline_mode = #tpu.pipeline_mode<synchronous>, transform_indices = @transform_5, window_bounds = array<i64: 1, 64>}, {pipeline_mode = #tpu.pipeline_mode<synchronous>, transform_indices = @transform_6, window_bounds = array<i64: 1, 64>}, {pipeline_mode = #tpu.pipeline_mode<synchronous>, transform_indices = @transform_7, window_bounds = array<i64: 24, 64>}, {transform_indices = @transform_8, window_bounds = array<i64: 1, 8, 128>}]} {
    %c0 = arith.constant 0 : index
    %c0_0 = arith.constant 0 : index
    %0 = vector.load %arg5[%c0, %c0_0] : memref<800x64xbf16, #tpu.memory_space<vmem>>, vector<800x64xbf16>
    %cst = arith.constant 0.000000e+00 : f32
    %1 = vector.broadcast %cst : f32 to vector<24x64xf32>
    %c0_1 = arith.constant 0 : index
    %c0_2 = arith.constant 0 : index
    %c0_3 = arith.constant 0 : index
    %2 = vector.load %arg1[%c0_1, %c0_2, %c0_3] : memref<1x42x32xbf16, #tpu.memory_space<vmem>>, vector<1x24x32xbf16>
    %3 = vector.shape_cast %2 : vector<1x24x32xbf16> to vector<24x32xbf16>
    %4 = vector.extract_strided_slice %0 {offsets = [0, 0], sizes = [32, 64], strides = [1, 1]} : vector<800x64xbf16> to vector<32x64xbf16>
    %cst_4 = arith.constant dense<0.000000e+00> : vector<24x64xf32>
    %5 = tpu.matmul %3, %4, %cst_4 {dimension_numbers = #tpu.dot_dimension_numbers<[1], [0], [0], [1], [0, 0, 1, 1], [], []>} : vector<24x32xbf16>, vector<32x64xbf16>, vector<24x64xf32> -> vector<24x64xf32>
    %6 = arith.addf %1, %5 : vector<24x64xf32>
    %c0_5 = arith.constant 0 : index
    %c0_6 = arith.constant 0 : index
    %c0_7 = arith.constant 0 : index
    %7 = vector.load %arg2[%c0_5, %c0_6, %c0_7] : memref<1x42x32xbf16, #tpu.memory_space<vmem>>, vector<1x24x32xbf16>
    %8 = vector.shape_cast %7 : vector<1x24x32xbf16> to vector<24x32xbf16>
    %9 = vector.extract_strided_slice %0 {offsets = [32, 0], sizes = [32, 64], strides = [1, 1]} : vector<800x64xbf16> to vector<32x64xbf16>
    %cst_8 = arith.constant dense<0.000000e+00> : vector<24x64xf32>
    %10 = tpu.matmul %8, %9, %cst_8 {dimension_numbers = #tpu.dot_dimension_numbers<[1], [0], [0], [1], [0, 0, 1, 1], [], []>} : vector<24x32xbf16>, vector<32x64xbf16>, vector<24x64xf32> -> vector<24x64xf32>
    %11 = arith.addf %6, %10 : vector<24x64xf32>
    %c0_9 = arith.constant 0 : index
    %c1 = arith.constant 1 : index
    %c0_10 = arith.constant 0 : index
    %12 = vector.load %arg1[%c0_9, %c1, %c0_10] : memref<1x42x32xbf16, #tpu.memory_space<vmem>>, vector<1x24x32xbf16>
    %13 = vector.shape_cast %12 : vector<1x24x32xbf16> to vector<24x32xbf16>
    %14 = vector.extract_strided_slice %0 {offsets = [64, 0], sizes = [32, 64], strides = [1, 1]} : vector<800x64xbf16> to vector<32x64xbf16>
    %cst_11 = arith.constant dense<0.000000e+00> : vector<24x64xf32>
    %15 = tpu.matmul %13, %14, %cst_11 {dimension_numbers = #tpu.dot_dimension_numbers<[1], [0], [0], [1], [0, 0, 1, 1], [], []>} : vector<24x32xbf16>, vector<32x64xbf16>, vector<24x64xf32> -> vector<24x64xf32>
    %16 = arith.addf %11, %15 : vector<24x64xf32>
    %c0_12 = arith.constant 0 : index
    %c1_13 = arith.constant 1 : index
    %c0_14 = arith.constant 0 : index
    %17 = vector.load %arg2[%c0_12, %c1_13, %c0_14] : memref<1x42x32xbf16, #tpu.memory_space<vmem>>, vector<1x24x32xbf16>
    %18 = vector.shape_cast %17 : vector<1x24x32xbf16> to vector<24x32xbf16>
    %19 = vector.extract_strided_slice %0 {offsets = [96, 0], sizes = [32, 64], strides = [1, 1]} : vector<800x64xbf16> to vector<32x64xbf16>
    %cst_15 = arith.constant dense<0.000000e+00> : vector<24x64xf32>
    %20 = tpu.matmul %18, %19, %cst_15 {dimension_numbers = #tpu.dot_dimension_numbers<[1], [0], [0], [1], [0, 0, 1, 1], [], []>} : vector<24x32xbf16>, vector<32x64xbf16>, vector<24x64xf32> -> vector<24x64xf32>
    %21 = arith.addf %16, %20 : vector<24x64xf32>
    %c0_16 = arith.constant 0 : index
    %c2 = arith.constant 2 : index
    %c0_17 = arith.constant 0 : index
    %22 = vector.load %arg1[%c0_16, %c2, %c0_17] : memref<1x42x32xbf16, #tpu.memory_space<vmem>>, vector<1x24x32xbf16>
    %23 = vector.shape_cast %22 : vector<1x24x32xbf16> to vector<24x32xbf16>
    %24 = vector.extract_strided_slice %0 {offsets = [128, 0], sizes = [32, 64], strides = [1, 1]} : vector<800x64xbf16> to vector<32x64xbf16>
    %cst_18 = arith.constant dense<0.000000e+00> : vector<24x64xf32>
    %25 = tpu.matmul %23, %24, %cst_18 {dimension_numbers = #tpu.dot_dimension_numbers<[1], [0], [0], [1], [0, 0, 1, 1], [], []>} : vector<24x32xbf16>, vector<32x64xbf16>, vector<24x64xf32> -> vector<24x64xf32>
    %26 = arith.addf %21, %25 : vector<24x64xf32>
    %c0_19 = arith.constant 0 : index
    %c0_20 = arith.constant 0 : index
    %c0_21 = arith.constant 0 : index
    %27 = vector.load %arg3[%c0_19, %c0_20, %c0_21] : memref<1x42x32xbf16, #tpu.memory_space<vmem>>, vector<1x24x32xbf16>
    %28 = vector.shape_cast %27 : vector<1x24x32xbf16> to vector<24x32xbf16>
    %29 = vector.extract_strided_slice %0 {offsets = [160, 0], sizes = [32, 64], strides = [1, 1]} : vector<800x64xbf16> to vector<32x64xbf16>
    %cst_22 = arith.constant dense<0.000000e+00> : vector<24x64xf32>
    %30 = tpu.matmul %28, %29, %cst_22 {dimension_numbers = #tpu.dot_dimension_numbers<[1], [0], [0], [1], [0, 0, 1, 1], [], []>} : vector<24x32xbf16>, vector<32x64xbf16>, vector<24x64xf32> -> vector<24x64xf32>
    %31 = arith.addf %26, %30 : vector<24x64xf32>
    %c0_23 = arith.constant 0 : index
    %c0_24 = arith.constant 0 : index
    %c0_25 = arith.constant 0 : index
    %32 = vector.load %arg4[%c0_23, %c0_24, %c0_25] : memref<1x42x32xbf16, #tpu.memory_space<vmem>>, vector<1x24x32xbf16>
    %33 = vector.shape_cast %32 : vector<1x24x32xbf16> to vector<24x32xbf16>
    %34 = vector.extract_strided_slice %0 {offsets = [192, 0], sizes = [32, 64], strides = [1, 1]} : vector<800x64xbf16> to vector<32x64xbf16>
    %cst_26 = arith.constant dense<0.000000e+00> : vector<24x64xf32>
    %35 = tpu.matmul %33, %34, %cst_26 {dimension_numbers = #tpu.dot_dimension_numbers<[1], [0], [0], [1], [0, 0, 1, 1], [], []>} : vector<24x32xbf16>, vector<32x64xbf16>, vector<24x64xf32> -> vector<24x64xf32>
    %36 = arith.addf %31, %35 : vector<24x64xf32>
    %c0_27 = arith.constant 0 : index
    %c1_28 = arith.constant 1 : index
    %c0_29 = arith.constant 0 : index
    %37 = vector.load %arg3[%c0_27, %c1_28, %c0_29] : memref<1x42x32xbf16, #tpu.memory_space<vmem>>, vector<1x24x32xbf16>
    %38 = vector.shape_cast %37 : vector<1x24x32xbf16> to vector<24x32xbf16>
    %39 = vector.extract_strided_slice %0 {offsets = [224, 0], sizes = [32, 64], strides = [1, 1]} : vector<800x64xbf16> to vector<32x64xbf16>
    %cst_30 = arith.constant dense<0.000000e+00> : vector<24x64xf32>
    %40 = tpu.matmul %38, %39, %cst_30 {dimension_numbers = #tpu.dot_dimension_numbers<[1], [0], [0], [1], [0, 0, 1, 1], [], []>} : vector<24x32xbf16>, vector<32x64xbf16>, vector<24x64xf32> -> vector<24x64xf32>
    %41 = arith.addf %36, %40 : vector<24x64xf32>
    %c0_31 = arith.constant 0 : index
    %c1_32 = arith.constant 1 : index
    %c0_33 = arith.constant 0 : index
    %42 = vector.load %arg4[%c0_31, %c1_32, %c0_33] : memref<1x42x32xbf16, #tpu.memory_space<vmem>>, vector<1x24x32xbf16>
    %43 = vector.shape_cast %42 : vector<1x24x32xbf16> to vector<24x32xbf16>
    %44 = vector.extract_strided_slice %0 {offsets = [256, 0], sizes = [32, 64], strides = [1, 1]} : vector<800x64xbf16> to vector<32x64xbf16>
    %cst_34 = arith.constant dense<0.000000e+00> : vector<24x64xf32>
    %45 = tpu.matmul %43, %44, %cst_34 {dimension_numbers = #tpu.dot_dimension_numbers<[1], [0], [0], [1], [0, 0, 1, 1], [], []>} : vector<24x32xbf16>, vector<32x64xbf16>, vector<24x64xf32> -> vector<24x64xf32>
    %46 = arith.addf %41, %45 : vector<24x64xf32>
    %c0_35 = arith.constant 0 : index
    %c2_36 = arith.constant 2 : index
    %c0_37 = arith.constant 0 : index
    %47 = vector.load %arg3[%c0_35, %c2_36, %c0_37] : memref<1x42x32xbf16, #tpu.memory_space<vmem>>, vector<1x24x32xbf16>
    %48 = vector.shape_cast %47 : vector<1x24x32xbf16> to vector<24x32xbf16>
    %49 = vector.extract_strided_slice %0 {offsets = [288, 0], sizes = [32, 64], strides = [1, 1]} : vector<800x64xbf16> to vector<32x64xbf16>
    %cst_38 = arith.constant dense<0.000000e+00> : vector<24x64xf32>
    %50 = tpu.matmul %48, %49, %cst_38 {dimension_numbers = #tpu.dot_dimension_numbers<[1], [0], [0], [1], [0, 0, 1, 1], [], []>} : vector<24x32xbf16>, vector<32x64xbf16>, vector<24x64xf32> -> vector<24x64xf32>
    %51 = arith.addf %46, %50 : vector<24x64xf32>
    %c0_39 = arith.constant 0 : index
    %c6 = arith.constant 6 : index
    %c0_40 = arith.constant 0 : index
    %52 = vector.load %arg1[%c0_39, %c6, %c0_40] : memref<1x42x32xbf16, #tpu.memory_space<vmem>>, vector<1x24x32xbf16>
    %53 = vector.shape_cast %52 : vector<1x24x32xbf16> to vector<24x32xbf16>
    %54 = vector.extract_strided_slice %0 {offsets = [320, 0], sizes = [32, 64], strides = [1, 1]} : vector<800x64xbf16> to vector<32x64xbf16>
    %cst_41 = arith.constant dense<0.000000e+00> : vector<24x64xf32>
    %55 = tpu.matmul %53, %54, %cst_41 {dimension_numbers = #tpu.dot_dimension_numbers<[1], [0], [0], [1], [0, 0, 1, 1], [], []>} : vector<24x32xbf16>, vector<32x64xbf16>, vector<24x64xf32> -> vector<24x64xf32>
    %56 = arith.addf %51, %55 : vector<24x64xf32>
    %c0_42 = arith.constant 0 : index
    %c6_43 = arith.constant 6 : index
    %c0_44 = arith.constant 0 : index
    %57 = vector.load %arg2[%c0_42, %c6_43, %c0_44] : memref<1x42x32xbf16, #tpu.memory_space<vmem>>, vector<1x24x32xbf16>
    %58 = vector.shape_cast %57 : vector<1x24x32xbf16> to vector<24x32xbf16>
    %59 = vector.extract_strided_slice %0 {offsets = [352, 0], sizes = [32, 64], strides = [1, 1]} : vector<800x64xbf16> to vector<32x64xbf16>
    %cst_45 = arith.constant dense<0.000000e+00> : vector<24x64xf32>
    %60 = tpu.matmul %58, %59, %cst_45 {dimension_numbers = #tpu.dot_dimension_numbers<[1], [0], [0], [1], [0, 0, 1, 1], [], []>} : vector<24x32xbf16>, vector<32x64xbf16>, vector<24x64xf32> -> vector<24x64xf32>
    %61 = arith.addf %56, %60 : vector<24x64xf32>
    %c0_46 = arith.constant 0 : index
    %c7 = arith.constant 7 : index
    %c0_47 = arith.constant 0 : index
    %62 = vector.load %arg1[%c0_46, %c7, %c0_47] : memref<1x42x32xbf16, #tpu.memory_space<vmem>>, vector<1x24x32xbf16>
    %63 = vector.shape_cast %62 : vector<1x24x32xbf16> to vector<24x32xbf16>
    %64 = vector.extract_strided_slice %0 {offsets = [384, 0], sizes = [32, 64], strides = [1, 1]} : vector<800x64xbf16> to vector<32x64xbf16>
    %cst_48 = arith.constant dense<0.000000e+00> : vector<24x64xf32>
    %65 = tpu.matmul %63, %64, %cst_48 {dimension_numbers = #tpu.dot_dimension_numbers<[1], [0], [0], [1], [0, 0, 1, 1], [], []>} : vector<24x32xbf16>, vector<32x64xbf16>, vector<24x64xf32> -> vector<24x64xf32>
    %66 = arith.addf %61, %65 : vector<24x64xf32>
    %c0_49 = arith.constant 0 : index
    %c7_50 = arith.constant 7 : index
    %c0_51 = arith.constant 0 : index
    %67 = vector.load %arg2[%c0_49, %c7_50, %c0_51] : memref<1x42x32xbf16, #tpu.memory_space<vmem>>, vector<1x24x32xbf16>
    %68 = vector.shape_cast %67 : vector<1x24x32xbf16> to vector<24x32xbf16>
    %69 = vector.extract_strided_slice %0 {offsets = [416, 0], sizes = [32, 64], strides = [1, 1]} : vector<800x64xbf16> to vector<32x64xbf16>
    %cst_52 = arith.constant dense<0.000000e+00> : vector<24x64xf32>
    %70 = tpu.matmul %68, %69, %cst_52 {dimension_numbers = #tpu.dot_dimension_numbers<[1], [0], [0], [1], [0, 0, 1, 1], [], []>} : vector<24x32xbf16>, vector<32x64xbf16>, vector<24x64xf32> -> vector<24x64xf32>
    %71 = arith.addf %66, %70 : vector<24x64xf32>
    %c0_53 = arith.constant 0 : index
    %c8 = arith.constant 8 : index
    %c0_54 = arith.constant 0 : index
    %72 = vector.load %arg1[%c0_53, %c8, %c0_54] : memref<1x42x32xbf16, #tpu.memory_space<vmem>>, vector<1x24x32xbf16>
    %73 = vector.shape_cast %72 : vector<1x24x32xbf16> to vector<24x32xbf16>
    %74 = vector.extract_strided_slice %0 {offsets = [448, 0], sizes = [32, 64], strides = [1, 1]} : vector<800x64xbf16> to vector<32x64xbf16>
    %cst_55 = arith.constant dense<0.000000e+00> : vector<24x64xf32>
    %75 = tpu.matmul %73, %74, %cst_55 {dimension_numbers = #tpu.dot_dimension_numbers<[1], [0], [0], [1], [0, 0, 1, 1], [], []>} : vector<24x32xbf16>, vector<32x64xbf16>, vector<24x64xf32> -> vector<24x64xf32>
    %76 = arith.addf %71, %75 : vector<24x64xf32>
    %c0_56 = arith.constant 0 : index
    %c6_57 = arith.constant 6 : index
    %c0_58 = arith.constant 0 : index
    %77 = vector.load %arg3[%c0_56, %c6_57, %c0_58] : memref<1x42x32xbf16, #tpu.memory_space<vmem>>, vector<1x24x32xbf16>
    %78 = vector.shape_cast %77 : vector<1x24x32xbf16> to vector<24x32xbf16>
    %79 = vector.extract_strided_slice %0 {offsets = [480, 0], sizes = [32, 64], strides = [1, 1]} : vector<800x64xbf16> to vector<32x64xbf16>
    %cst_59 = arith.constant dense<0.000000e+00> : vector<24x64xf32>
    %80 = tpu.matmul %78, %79, %cst_59 {dimension_numbers = #tpu.dot_dimension_numbers<[1], [0], [0], [1], [0, 0, 1, 1], [], []>} : vector<24x32xbf16>, vector<32x64xbf16>, vector<24x64xf32> -> vector<24x64xf32>
    %81 = arith.addf %76, %80 : vector<24x64xf32>
    %c0_60 = arith.constant 0 : index
    %c6_61 = arith.constant 6 : index
    %c0_62 = arith.constant 0 : index
    %82 = vector.load %arg4[%c0_60, %c6_61, %c0_62] : memref<1x42x32xbf16, #tpu.memory_space<vmem>>, vector<1x24x32xbf16>
    %83 = vector.shape_cast %82 : vector<1x24x32xbf16> to vector<24x32xbf16>
    %84 = vector.extract_strided_slice %0 {offsets = [512, 0], sizes = [32, 64], strides = [1, 1]} : vector<800x64xbf16> to vector<32x64xbf16>
    %cst_63 = arith.constant dense<0.000000e+00> : vector<24x64xf32>
    %85 = tpu.matmul %83, %84, %cst_63 {dimension_numbers = #tpu.dot_dimension_numbers<[1], [0], [0], [1], [0, 0, 1, 1], [], []>} : vector<24x32xbf16>, vector<32x64xbf16>, vector<24x64xf32> -> vector<24x64xf32>
    %86 = arith.addf %81, %85 : vector<24x64xf32>
    %c0_64 = arith.constant 0 : index
    %c7_65 = arith.constant 7 : index
    %c0_66 = arith.constant 0 : index
    %87 = vector.load %arg3[%c0_64, %c7_65, %c0_66] : memref<1x42x32xbf16, #tpu.memory_space<vmem>>, vector<1x24x32xbf16>
    %88 = vector.shape_cast %87 : vector<1x24x32xbf16> to vector<24x32xbf16>
    %89 = vector.extract_strided_slice %0 {offsets = [544, 0], sizes = [32, 64], strides = [1, 1]} : vector<800x64xbf16> to vector<32x64xbf16>
    %cst_67 = arith.constant dense<0.000000e+00> : vector<24x64xf32>
    %90 = tpu.matmul %88, %89, %cst_67 {dimension_numbers = #tpu.dot_dimension_numbers<[1], [0], [0], [1], [0, 0, 1, 1], [], []>} : vector<24x32xbf16>, vector<32x64xbf16>, vector<24x64xf32> -> vector<24x64xf32>
    %91 = arith.addf %86, %90 : vector<24x64xf32>
    %c0_68 = arith.constant 0 : index
    %c7_69 = arith.constant 7 : index
    %c0_70 = arith.constant 0 : index
    %92 = vector.load %arg4[%c0_68, %c7_69, %c0_70] : memref<1x42x32xbf16, #tpu.memory_space<vmem>>, vector<1x24x32xbf16>
    %93 = vector.shape_cast %92 : vector<1x24x32xbf16> to vector<24x32xbf16>
    %94 = vector.extract_strided_slice %0 {offsets = [576, 0], sizes = [32, 64], strides = [1, 1]} : vector<800x64xbf16> to vector<32x64xbf16>
    %cst_71 = arith.constant dense<0.000000e+00> : vector<24x64xf32>
    %95 = tpu.matmul %93, %94, %cst_71 {dimension_numbers = #tpu.dot_dimension_numbers<[1], [0], [0], [1], [0, 0, 1, 1], [], []>} : vector<24x32xbf16>, vector<32x64xbf16>, vector<24x64xf32> -> vector<24x64xf32>
    %96 = arith.addf %91, %95 : vector<24x64xf32>
    %c0_72 = arith.constant 0 : index
    %c8_73 = arith.constant 8 : index
    %c0_74 = arith.constant 0 : index
    %97 = vector.load %arg3[%c0_72, %c8_73, %c0_74] : memref<1x42x32xbf16, #tpu.memory_space<vmem>>, vector<1x24x32xbf16>
    %98 = vector.shape_cast %97 : vector<1x24x32xbf16> to vector<24x32xbf16>
    %99 = vector.extract_strided_slice %0 {offsets = [608, 0], sizes = [32, 64], strides = [1, 1]} : vector<800x64xbf16> to vector<32x64xbf16>
    %cst_75 = arith.constant dense<0.000000e+00> : vector<24x64xf32>
    %100 = tpu.matmul %98, %99, %cst_75 {dimension_numbers = #tpu.dot_dimension_numbers<[1], [0], [0], [1], [0, 0, 1, 1], [], []>} : vector<24x32xbf16>, vector<32x64xbf16>, vector<24x64xf32> -> vector<24x64xf32>
    %101 = arith.addf %96, %100 : vector<24x64xf32>
    %c0_76 = arith.constant 0 : index
    %c12 = arith.constant 12 : index
    %c0_77 = arith.constant 0 : index
    %102 = vector.load %arg1[%c0_76, %c12, %c0_77] : memref<1x42x32xbf16, #tpu.memory_space<vmem>>, vector<1x24x32xbf16>
    %103 = vector.shape_cast %102 : vector<1x24x32xbf16> to vector<24x32xbf16>
    %104 = vector.extract_strided_slice %0 {offsets = [640, 0], sizes = [32, 64], strides = [1, 1]} : vector<800x64xbf16> to vector<32x64xbf16>
    %cst_78 = arith.constant dense<0.000000e+00> : vector<24x64xf32>
    %105 = tpu.matmul %103, %104, %cst_78 {dimension_numbers = #tpu.dot_dimension_numbers<[1], [0], [0], [1], [0, 0, 1, 1], [], []>} : vector<24x32xbf16>, vector<32x64xbf16>, vector<24x64xf32> -> vector<24x64xf32>
    %106 = arith.addf %101, %105 : vector<24x64xf32>
    %c0_79 = arith.constant 0 : index
    %c12_80 = arith.constant 12 : index
    %c0_81 = arith.constant 0 : index
    %107 = vector.load %arg2[%c0_79, %c12_80, %c0_81] : memref<1x42x32xbf16, #tpu.memory_space<vmem>>, vector<1x24x32xbf16>
    %108 = vector.shape_cast %107 : vector<1x24x32xbf16> to vector<24x32xbf16>
    %109 = vector.extract_strided_slice %0 {offsets = [672, 0], sizes = [32, 64], strides = [1, 1]} : vector<800x64xbf16> to vector<32x64xbf16>
    %cst_82 = arith.constant dense<0.000000e+00> : vector<24x64xf32>
    %110 = tpu.matmul %108, %109, %cst_82 {dimension_numbers = #tpu.dot_dimension_numbers<[1], [0], [0], [1], [0, 0, 1, 1], [], []>} : vector<24x32xbf16>, vector<32x64xbf16>, vector<24x64xf32> -> vector<24x64xf32>
    %111 = arith.addf %106, %110 : vector<24x64xf32>
    %c0_83 = arith.constant 0 : index
    %c13 = arith.constant 13 : index
    %c0_84 = arith.constant 0 : index
    %112 = vector.load %arg1[%c0_83, %c13, %c0_84] : memref<1x42x32xbf16, #tpu.memory_space<vmem>>, vector<1x24x32xbf16>
    %113 = vector.shape_cast %112 : vector<1x24x32xbf16> to vector<24x32xbf16>
    %114 = vector.extract_strided_slice %0 {offsets = [704, 0], sizes = [32, 64], strides = [1, 1]} : vector<800x64xbf16> to vector<32x64xbf16>
    %cst_85 = arith.constant dense<0.000000e+00> : vector<24x64xf32>
    %115 = tpu.matmul %113, %114, %cst_85 {dimension_numbers = #tpu.dot_dimension_numbers<[1], [0], [0], [1], [0, 0, 1, 1], [], []>} : vector<24x32xbf16>, vector<32x64xbf16>, vector<24x64xf32> -> vector<24x64xf32>
    %116 = arith.addf %111, %115 : vector<24x64xf32>
    %c0_86 = arith.constant 0 : index
    %c13_87 = arith.constant 13 : index
    %c0_88 = arith.constant 0 : index
    %117 = vector.load %arg2[%c0_86, %c13_87, %c0_88] : memref<1x42x32xbf16, #tpu.memory_space<vmem>>, vector<1x24x32xbf16>
    %118 = vector.shape_cast %117 : vector<1x24x32xbf16> to vector<24x32xbf16>
    %119 = vector.extract_strided_slice %0 {offsets = [736, 0], sizes = [32, 64], strides = [1, 1]} : vector<800x64xbf16> to vector<32x64xbf16>
    %cst_89 = arith.constant dense<0.000000e+00> : vector<24x64xf32>
    %120 = tpu.matmul %118, %119, %cst_89 {dimension_numbers = #tpu.dot_dimension_numbers<[1], [0], [0], [1], [0, 0, 1, 1], [], []>} : vector<24x32xbf16>, vector<32x64xbf16>, vector<24x64xf32> -> vector<24x64xf32>
    %121 = arith.addf %116, %120 : vector<24x64xf32>
    %c0_90 = arith.constant 0 : index
    %c14 = arith.constant 14 : index
    %c0_91 = arith.constant 0 : index
    %122 = vector.load %arg1[%c0_90, %c14, %c0_91] : memref<1x42x32xbf16, #tpu.memory_space<vmem>>, vector<1x24x32xbf16>
    %123 = vector.shape_cast %122 : vector<1x24x32xbf16> to vector<24x32xbf16>
    %124 = vector.extract_strided_slice %0 {offsets = [768, 0], sizes = [32, 64], strides = [1, 1]} : vector<800x64xbf16> to vector<32x64xbf16>
    %cst_92 = arith.constant dense<0.000000e+00> : vector<24x64xf32>
    %125 = tpu.matmul %123, %124, %cst_92 {dimension_numbers = #tpu.dot_dimension_numbers<[1], [0], [0], [1], [0, 0, 1, 1], [], []>} : vector<24x32xbf16>, vector<32x64xbf16>, vector<24x64xf32> -> vector<24x64xf32>
    %126 = arith.addf %121, %125 : vector<24x64xf32>
    %c0_93 = arith.constant 0 : index
    %c0_94 = arith.constant 0 : index
    %127 = vector.load %arg6[%c0_93, %c0_94] : memref<1x64xf32, #tpu.memory_space<vmem>>, vector<1x64xf32>
    %128 = vector.broadcast %127 : vector<1x64xf32> to vector<24x64xf32>
    %129 = arith.mulf %126, %128 : vector<24x64xf32>
    %c0_95 = arith.constant 0 : index
    %c0_96 = arith.constant 0 : index
    %130 = vector.load %arg7[%c0_95, %c0_96] : memref<1x64xf32, #tpu.memory_space<vmem>>, vector<1x64xf32>
    %131 = vector.broadcast %130 : vector<1x64xf32> to vector<24x64xf32>
    %132 = arith.addf %129, %131 : vector<24x64xf32>
    %cst_97 = arith.constant 0.000000e+00 : f32
    %133 = vector.broadcast %cst_97 : f32 to vector<24x64xf32>
    %134 = arith.cmpf oge, %132, %133 : vector<24x64xf32>
    %cst_98 = arith.constant 2.000000e-01 : f32
    %135 = vector.broadcast %cst_98 : f32 to vector<24x64xf32>
    %136 = arith.mulf %135, %132 : vector<24x64xf32>
    %137 = arith.select %134, %132, %136 : vector<24x64xi1>, vector<24x64xf32>
    %c0_99 = arith.constant 0 : index
    %c0_100 = arith.constant 0 : index
    %138 = vector.load %arg8[%c0_99, %c0_100] : memref<24x64xf32, #tpu.memory_space<vmem>>, vector<24x64xf32>
    %139 = arith.mulf %137, %138 : vector<24x64xf32>
    %140 = vector.shape_cast %139 : vector<24x64xf32> to vector<1x24x64xf32>
    %cst_101 = arith.constant dense<0.000000e+00> : vector<1xf32>
    %141 = vector.multi_reduction <add>, %140, %cst_101 [1, 2] : vector<1x24x64xf32> to vector<1xf32>
    %142 = vector.shape_cast %141 : vector<1xf32> to vector<1x1x1xf32>
    %143 = vector.extract %142[0, 0, 0] : f32 from vector<1x1x1xf32>
    %cst_102 = arith.constant 0.000000e+00 : f32
    %144 = vector.broadcast %cst_102 : f32 to vector<8x128xf32>
    %145 = vector.broadcast %143 : f32 to vector<8x128xf32>
    %146 = arith.addf %144, %145 : vector<8x128xf32>
    %c0_103 = arith.constant 0 : index
    %c0_104 = arith.constant 0 : index
    %c0_105 = arith.constant 0 : index
    %147 = vector.load %arg9[%c0_103, %c0_104, %c0_105] : memref<1x8x128xf32, #tpu.memory_space<vmem>>, vector<1x8x128xf32>
    %148 = vector.shape_cast %147 : vector<1x8x128xf32> to vector<8x128xf32>
    %149 = vector.shape_cast %146 : vector<8x128xf32> to vector<1x8x128xf32>
    tpu.vector_store %arg9[%c0_103, %c0_104, %c0_105], %149 {strides = array<i32>} : memref<1x8x128xf32, #tpu.memory_space<vmem>>, vector<1x8x128xf32>,
    return
  }
  func.func @transform_0(%arg0: i32) -> (i32, i32, i32) {
    %c0_i32 = arith.constant 0 : i32
    %c0_i32_0 = arith.constant 0 : i32
    %c0_i32_1 = arith.constant 0 : i32
    return %arg0, %c0_i32, %c0_i32_0 : i32, i32, i32
  }
  func.func @transform_1(%arg0: i32) -> (i32, i32, i32) {
    %c0_i32 = arith.constant 0 : i32
    %c0_i32_0 = arith.constant 0 : i32
    %c0_i32_1 = arith.constant 0 : i32
    return %arg0, %c0_i32, %c0_i32_0 : i32, i32, i32
  }
  func.func @transform_2(%arg0: i32) -> (i32, i32, i32) {
    %c0_i32 = arith.constant 0 : i32
    %c0_i32_0 = arith.constant 0 : i32
    %c0_i32_1 = arith.constant 0 : i32
    return %arg0, %c0_i32, %c0_i32_0 : i32, i32, i32
  }
  func.func @transform_3(%arg0: i32) -> (i32, i32, i32) {
    %c0_i32 = arith.constant 0 : i32
    %c0_i32_0 = arith.constant 0 : i32
    %c0_i32_1 = arith.constant 0 : i32
    return %arg0, %c0_i32, %c0_i32_0 : i32, i32, i32
  }
  func.func @transform_4(%arg0: i32) -> (i32, i32) {
    %c0_i32 = arith.constant 0 : i32
    %c0_i32_0 = arith.constant 0 : i32
    %c0_i32_1 = arith.constant 0 : i32
    return %c0_i32, %c0_i32_0 : i32, i32
  }
  func.func @transform_5(%arg0: i32) -> (i32, i32) {
    %c0_i32 = arith.constant 0 : i32
    %c0_i32_0 = arith.constant 0 : i32
    %c0_i32_1 = arith.constant 0 : i32
    return %c0_i32, %c0_i32_0 : i32, i32
  }
  func.func @transform_6(%arg0: i32) -> (i32, i32) {
    %c0_i32 = arith.constant 0 : i32
    %c0_i32_0 = arith.constant 0 : i32
    %c0_i32_1 = arith.constant 0 : i32
    return %c0_i32, %c0_i32_0 : i32, i32
  }
  func.func @transform_7(%arg0: i32) -> (i32, i32) {
    %c0_i32 = arith.constant 0 : i32
    %c0_i32_0 = arith.constant 0 : i32
    %c0_i32_1 = arith.constant 0 : i32
    return %c0_i32, %c0_i32_0 : i32, i32
  }
  func.func @transform_8(%arg0: i32) -> (i32, i32, i32) {
    %c0_i32 = arith.constant 0 : i32
    %c0_i32_0 = arith.constant 0 : i32
    %c0_i32_1 = arith.constant 0 : i32
    return %arg0, %c0_i32, %c0_i32_0 : i32, i32, i32
  }
}

</mosaic_0001>

<bundles_post_ra>
// kernel: _lambda_.3
= control target key start
LH: loop header
LB: loop body
LE: loop exit
PB: predicated region body
PF: predicated region fallthrough
CT: control target
= control target key end

     0   :  { %s1167_s15 = smov 0   ;;  %s1372_s0 = inlined_call_operand.vmem [shape: bf16[512,25], index: 0, kind: input, shape index: {}]   ;;  %s1373_s1 = inlined_call_operand.vmem [shape: bf16[25,16], index: 1, kind: input, shape index: {}]   ;;  %s1374_s2 = inlined_call_operand.vmem [shape: f32[1,16], index: 2, kind: input, shape index: {}]   ;;  %s1375_s3 = inlined_call_operand.vmem [shape: f32[1,16], index: 3, kind: input, shape index: {}]   ;;  %s1376_s4 = inlined_call_operand.vmem [shape: bf16[512,16], index: 4, kind: output, shape index: {}]  }
   0x1 LB: > { %s937_s16 = sadd.s32 4294967295, %s1139_s15   ;;  %p941_p0 = scmp.ge.s32.totalorder %s1139_s15, 1  ;;  %s1139_s15 = sphi %s1167_s15, %s14_s15  }
   0x2   : > { %p163_p1 = scmp.lt.s32.totalorder %s1139_s15, 3 }
   0x4   : > { %p164_p2 = pnand %p941_p0, %p163_p1 }
   0x5   : > { %s942_s19 = sshll.u32 (!%p164_p2), %s937_s16, 5 }
   0x6   : > { %167 = sbr.rel (%p164_p2) target bundleno = 274 (0x112), region = 36  ;;  %p190_p3 = scmp.lt.s32.totalorder (!%p164_p2), %s942_s19, 63 }
   0xb   : > { %v1115_v0 = vld [vmem:[%s1373_s1 + $0x8] sm:$0x1f]   ;;  %vm378_vm0 = vcmask 1043456   ;;  %vm379_vm1 = vcmask 1044480   ;;  %v1141_v1 = vmov 65535   ;;  %v1116_v5 = vld [vmem:[%s1373_s1] sm:$0xff]  }
   0xc   : > { %v380_v2 = vsel %vm378_vm0, 4294967295, %v1141_v1  ;;  %s1378_s19 = smov (!%p190_p3, %s942_s19), 63  ;;  %vm329_vm2 = vcmask 203776   ;;  %v1226_v22 = vld [vmem:[%s1374_s2] ss:$0 sm:$0xff]  ;;  %vm848_vm3 = vcmask 125952  }
   0xd   : > { %v381_v3 = vsel %vm379_vm1, %v380_v2, 0  ;;  %s943_s22 = sshll.u32 %s1378_s19, 2  ;;  %v1231_v24 = vld [vmem:[%s1375_s3] ss:$0 sm:$0xff] }
   0xe   : > { %v383_v4 = vand.u32 %v1115_v0, %v381_v3  ;;  %s1189_s25 = scalar_lea.vmem %s1372_s0, %s943_s22  ;;  %s1248_s6 = scalar_lea.vmem %s1376_s4, %s943_s22 }
   0xf   : > { %v1117_v6 = vld [vmem:[%s1189_s25] sm:$0xff]   ;;  %v1119_v8 = vld [vmem:[%s1189_s25 + $0x8] sm:$0xff]   ;;  %v1121_v10 = vld [vmem:[%s1189_s25 + $0x10] sm:$0xff]  }
  0x10   : > { %1066 = vmatprep.subr.bf16.mxu0 %v383_v4  ;;  %1102 = vmatprep.subr.bf16.mxu1 %v383_v4  ;;  %v1118_v7 = vld [vmem:[%s1189_s25 + $0x40] sm:$0xff]   ;;  %v1120_v9 = vld [vmem:[%s1189_s25 + $0x48] sm:$0xff]   ;;  %v1122_v11 = vld [vmem:[%s1189_s25 + $0x50] sm:$0xff]  }
  0x11   : > { %1067 = vmatpush3.bf16.msra.mxu0 %v383_v4  ;;  %1104 = vmatpush3.bf16.msra.mxu1 %v383_v4  ;;  %v1123_v12 = vld [vmem:[%s1189_s25 + $0x18] sm:$0xff]   ;;  %v1125_v14 = vld [vmem:[%s1189_s25 + $0x20] sm:$0xff]   ;;  %v1127_v16 = vld [vmem:[%s1189_s25 + $0x28] sm:$0xff]  }
  0x12   : > { %1068 = vmatprep.subr.bf16.mxu0 %v1116_v5  ;;  %1103 = vmatprep.subr.bf16.mxu1 %v1116_v5  ;;  %v1124_v13 = vld [vmem:[%s1189_s25 + $0x58] sm:$0xff]   ;;  %v1126_v15 = vld [vmem:[%s1189_s25 + $0x60] sm:$0xff]   ;;  %v1128_v17 = vld [vmem:[%s1189_s25 + $0x68] sm:$0xff]  }
  0x13   : > { %1070 = vmatprep.mubr.msk.bf16.mxu0 %vm329_vm2, %v1117_v6  ;;  %1086 = vmatprep.mubr.msk.bf16.mxu1 %vm329_vm2, %v1118_v7  ;;  %v1129_v18 = vld [vmem:[%s1189_s25 + $0x30] sm:$0xff]   ;;  %v1131_v20 = vld [vmem:[%s1189_s25 + $0x38] sm:$0xff]  }
  0x14   : > { %v1130_v19 = vld [vmem:[%s1189_s25 + $0x70] sm:$0xff]   ;;  %v1132_v21 = vld [vmem:[%s1189_s25 + $0x78] sm:$0xff]  }
  0x15   : > { %1069 = vmatpush3.bf16.msra.mxu0 %v1116_v5  ;;  %1105 = vmatpush3.bf16.msra.mxu1 %v1116_v5 }
  0x18   : > { %1071 = vmatmul.mubr.msk.bf16.vlgmr.msra.gmra.mxu0 %vm329_vm2, %v1119_v8  ;;  %1087 = vmatmul.mubr.msk.bf16.vlgmr.msra.gmra.mxu1 %vm329_vm2, %v1120_v9 }
  0x19   : > { %1074 = vmatprep.mubr.msk.bf16.mxu0 %vm329_vm2, %v1121_v10  ;;  %1090 = vmatprep.mubr.msk.bf16.mxu1 %vm329_vm2, %v1122_v11 }
  0x20   : > { %1075 = vmatmul.mubr.msk.bf16.gmra.mxu0 %vm329_vm2, %v1123_v12  ;;  %1091 = vmatmul.mubr.msk.bf16.gmra.mxu1 %vm329_vm2, %v1124_v13 }
  0x21   : > { %1078 = vmatprep.mubr.msk.bf16.mxu0 %vm329_vm2, %v1125_v14  ;;  %1094 = vmatprep.mubr.msk.bf16.mxu1 %vm329_vm2, %v1126_v15 }
  0x28   : > { %1079 = vmatmul.mubr.msk.bf16.gmra.mxu0 %vm329_vm2, %v1127_v16  ;;  %1095 = vmatmul.mubr.msk.bf16.gmra.mxu1 %vm329_vm2, %v1128_v17 }
  0x29   : > { %1082 = vmatprep.mubr.msk.bf16.mxu0 %vm329_vm2, %v1129_v18  ;;  %1098 = vmatprep.mubr.msk.bf16.mxu1 %vm329_vm2, %v1130_v19 }
  0x30   : > { %1083 = vmatmul.mubr.msk.bf16.gmra.mxu0 %vm329_vm2, %v1131_v20  ;;  %1099 = vmatmul.mubr.msk.bf16.gmra.mxu1 %vm329_vm2, %v1132_v21 }
  0xd8   : > { %v1072_v23 = vpop.f32.mrf.mxu0  ;;  %v1088_v25 = vpop.f32.mrf.mxu1 }
  0xd9   : > { %v555_v26 = vmul.f32 %v1072_v23, %v1226_v22  ;;  %v571_v27 = vmul.f32 %v1088_v25, %v1226_v22 }
  0xda   : > { %v419_v28 = vpop.f32.mrf.mxu0  ;;  %v483_v29 = vpop.f32.mrf.mxu1 }
  0xdb   : > { %v594_v30 = vadd.f32 %v1231_v24, %v555_v26  ;;  %v610_v31 = vadd.f32 %v1231_v24, %v571_v27  ;;  %v553_v32 = vmul.f32 %v1226_v22, %v419_v28  ;;  %v569_v33 = vmul.f32 %v1226_v22, %v483_v29 }
  0xdc   : > { %v1073_v34 = vpop.f32.mrf.mxu0  ;;  %v1089_v35 = vpop.f32.mrf.mxu1 }
  0xdd   : > { %vm626_vm4 = vcmp.ge.f32.partialorder %v594_v30, 0.0  ;;  %v658_v36 = vmul.f32 0.2, %v594_v30  ;;  %vm642_vm5 = vcmp.ge.f32.partialorder %v610_v31, 0.0  ;;  %v674_v37 = vmul.f32 0.2, %v610_v31 }
  0xde   : > { %v592_v38 = vadd.f32 %v1231_v24, %v553_v32  ;;  %v608_v39 = vadd.f32 %v1231_v24, %v569_v33  ;;  %v556_v40 = vmul.f32 %v1073_v34, %v1226_v22  ;;  %v572_v41 = vmul.f32 %v1089_v35, %v1226_v22  ;;  %v422_v42 = vpop.f32.mrf.mxu0  ;;  %v486_v43 = vpop.f32.mrf.mxu1 }
  0xdf   : > { %v690_v44 = vsel %vm626_vm4, %v594_v30, %v658_v36  ;;  %v706_v45 = vsel %vm642_vm5, %v610_v31, %v674_v37  ;;  %v554_v46 = vmul.f32 %v1226_v22, %v422_v42  ;;  %v570_v47 = vmul.f32 %v1226_v22, %v486_v43 }
  0xe0   : > { %v1018_v48 = vpack.c.bf16 %v690_v44, %v690_v44  ;;  %v1034_v49 = vpack.c.bf16 %v706_v45, %v706_v45  ;;  %vm624_vm6 = vcmp.ge.f32.partialorder %v592_v38, 0.0  ;;  %v656_v50 = vmul.f32 0.2, %v592_v38  ;;  %v1076_v51 = vpop.f32.mrf.mxu0  ;;  %v1092_v52 = vpop.f32.mrf.mxu1 }
  0xe1   : > { %vm640_vm7 = vcmp.ge.f32.partialorder %v608_v39, 0.0  ;;  %v672_v53 = vmul.f32 0.2, %v608_v39  ;;  %v595_v54 = vadd.f32 %v1231_v24, %v556_v40  ;;  %v611_v55 = vadd.f32 %v1231_v24, %v572_v41 }
  0xe2   : > { %851 = vst.msk [vmem:[%s1248_s6 + $0x8] sm:$0xf] %vm848_vm3, %v1018_v48  ;;  %867 = vst.msk [vmem:[%s1248_s6 + $0x48] sm:$0xf] %vm848_vm3, %v1034_v49  ;;  %v688_v56 = vsel %vm624_vm6, %v592_v38, %v656_v50  ;;  %v593_v57 = vadd.f32 %v1231_v24, %v554_v46  ;;  %v609_v58 = vadd.f32 %v1231_v24, %v570_v47  ;;  %v435_v60 = vpop.f32.mrf.mxu0  ;;  %v499_v61 = vpop.f32.mrf.mxu1 }
  0xe3   : > { %v559_v59 = vmul.f32 %v1076_v51, %v1226_v22  ;;  %v1016_v62 = vpack.c.bf16 %v688_v56, %v688_v56  ;;  %v704_v63 = vsel %vm640_vm7, %v608_v39, %v672_v53  ;;  %vm627_vm8 = vcmp.ge.f32.partialorder %v595_v54, 0.0 }
  0xe4   : > { %v659_v0 = vmul.f32 0.2, %v595_v54  ;;  %v1032_v1 = vpack.c.bf16 %v704_v63, %v704_v63  ;;  %vm643_vm9 = vcmp.ge.f32.partialorder %v611_v55, 0.0  ;;  %v675_v2 = vmul.f32 0.2, %v611_v55  ;;  %v1077_v3 = vpop.f32.mrf.mxu0  ;;  %v1093_v4 = vpop.f32.mrf.mxu1 }
  0xe5   : > { %vm625_vm10 = vcmp.ge.f32.partialorder %v593_v57, 0.0  ;;  %849 = vst.msk [vmem:[%s1248_s6] sm:$0xf] %vm848_vm3, %v1016_v62  ;;  %v657_v6 = vmul.f32 0.2, %v593_v57  ;;  %vm641_vm11 = vcmp.ge.f32.partialorder %v609_v58, 0.0  ;;  %v598_v10 = vadd.f32 %v1231_v24, %v559_v59 }
  0xe6   : > { %v691_v5 = vsel %vm627_vm8, %v595_v54, %v659_v0  ;;  %v673_v7 = vmul.f32 0.2, %v609_v58  ;;  %865 = vst.msk [vmem:[%s1248_s6 + $0x40] sm:$0xf] %vm848_vm3, %v1032_v1  ;;  %v707_v9 = vsel %vm643_vm9, %v611_v55, %v675_v2  ;;  %v575_v11 = vmul.f32 %v1092_v52, %v1226_v22  ;;  %v438_v12 = vpop.f32.mrf.mxu0  ;;  %v502_v13 = vpop.f32.mrf.mxu1 }
  0xe7   : > { %v1019_v8 = vpack.c.bf16 %v691_v5, %v691_v5  ;;  %v1035_v14 = vpack.c.bf16 %v707_v9, %v707_v9  ;;  %v689_v15 = vsel %vm625_vm10, %v593_v57, %v657_v6  ;;  %v557_v17 = vmul.f32 %v1226_v22, %v435_v60 }
  0xe8   : > { %v705_v16 = vsel %vm641_vm11, %v609_v58, %v673_v7  ;;  %v1017_v18 = vpack.c.bf16 %v689_v15, %v689_v15  ;;  %vm630_vm12 = vcmp.ge.f32.partialorder %v598_v10, 0.0  ;;  %v662_v20 = vmul.f32 0.2, %v598_v10  ;;  %v1080_v21 = vpop.f32.mrf.mxu0  ;;  %v1096_v23 = vpop.f32.mrf.mxu1 }
  0xe9   : > { %852 = vst.msk [vmem:[%s1248_s6 + $0xc] sm:$0xf] %vm848_vm3, %v1019_v8  ;;  %v1033_v19 = vpack.c.bf16 %v705_v16, %v705_v16  ;;  %868 = vst.msk [vmem:[%s1248_s6 + $0x4c] sm:$0xf] %vm848_vm3, %v1035_v14  ;;  %v614_v25 = vadd.f32 %v1231_v24, %v575_v11  ;;  %v596_v26 = vadd.f32 %v1231_v24, %v557_v17 }
  0xea   : > { %v573_v27 = vmul.f32 %v1226_v22, %v499_v61  ;;  %v560_v28 = vmul.f32 %v1077_v3, %v1226_v22  ;;  %850 = vst.msk [vmem:[%s1248_s6 + $0x4] sm:$0xf] %vm848_vm3, %v1017_v18  ;;  %v694_v29 = vsel %vm630_vm12, %v598_v10, %v662_v20  ;;  %v576_v30 = vmul.f32 %v1093_v4, %v1226_v22  ;;  %v451_v33 = vpop.f32.mrf.mxu0  ;;  %v515_v34 = vpop.f32.mrf.mxu1 }
  0xeb   : > { %866 = vst.msk [vmem:[%s1248_s6 + $0x44] sm:$0xf] %vm848_vm3, %v1033_v19  ;;  %v558_v31 = vmul.f32 %v1226_v22, %v438_v12  ;;  %v574_v32 = vmul.f32 %v1226_v22, %v502_v13  ;;  %v1022_v35 = vpack.c.bf16 %v694_v29, %v694_v29  ;;  %vm646_vm13 = vcmp.ge.f32.partialorder %v614_v25, 0.0 }
  0xec   : > { %v678_v36 = vmul.f32 0.2, %v614_v25  ;;  %vm628_vm14 = vcmp.ge.f32.partialorder %v596_v26, 0.0  ;;  %v660_v37 = vmul.f32 0.2, %v596_v26  ;;  %v612_v38 = vadd.f32 %v1231_v24, %v573_v27  ;;  %v1081_v45 = vpop.f32.mrf.mxu0  ;;  %v1097_v49 = vpop.f32.mrf.mxu1 }
  0xed   : > { %v599_v39 = vadd.f32 %v1231_v24, %v560_v28  ;;  %v615_v40 = vadd.f32 %v1231_v24, %v576_v30  ;;  %855 = vst.msk [vmem:[%s1248_s6 + $0x18] sm:$0xf] %vm848_vm3, %v1022_v35  ;;  %v597_v42 = vadd.f32 %v1231_v24, %v558_v31  ;;  %v613_v43 = vadd.f32 %v1231_v24, %v574_v32 }
  0xee   : > { %v710_v41 = vsel %vm646_vm13, %v614_v25, %v678_v36  ;;  %v563_v44 = vmul.f32 %v1080_v21, %v1226_v22  ;;  %v692_v47 = vsel %vm628_vm14, %v596_v26, %v660_v37  ;;  %vm644_vm15 = vcmp.ge.f32.partialorder %v612_v38, 0.0  ;;  %v454_v58 = vpop.f32.mrf.mxu0  ;;  %v518_v63 = vpop.f32.mrf.mxu1 }
  0xef   : > { %v1038_v46 = vpack.c.bf16 %v710_v41, %v710_v41  ;;  %v676_v48 = vmul.f32 0.2, %v612_v38  ;;  %v1020_v50 = vpack.c.bf16 %v692_v47, %v692_v47  ;;  %vm631_vm0 = vcmp.ge.f32.partialorder %v599_v39, 0.0 }
  0xf0   : > { %v663_v51 = vmul.f32 0.2, %v599_v39  ;;  %vm647_vm1 = vcmp.ge.f32.partialorder %v615_v40, 0.0  ;;  %v679_v53 = vmul.f32 0.2, %v615_v40  ;;  %vm629_vm2 = vcmp.ge.f32.partialorder %v597_v42, 0.0  ;;  %v1084_v11 = vpop.f32.mrf.mxu0  ;;  %v1100_v16 = vpop.f32.mrf.mxu1 }
  0xf1   : > { %871 = vst.msk [vmem:[%s1248_s6 + $0x58] sm:$0xf] %vm848_vm3, %v1038_v46  ;;  %v708_v52 = vsel %vm644_vm15, %v612_v38, %v676_v48  ;;  %v661_v54 = vmul.f32 0.2, %v597_v42  ;;  %853 = vst.msk [vmem:[%s1248_s6 + $0x10] sm:$0xf] %vm848_vm3, %v1020_v50  ;;  %v602_v62 = vadd.f32 %v1231_v24, %v563_v44  ;;  %v579_v3 = vmul.f32 %v1096_v23, %v1226_v22 }
  0xf2   : > { %v1036_v55 = vpack.c.bf16 %v708_v52, %v708_v52  ;;  %v695_v56 = vsel %vm631_vm0, %v599_v39, %v663_v51  ;;  %vm645_vm4 = vcmp.ge.f32.partialorder %v613_v43, 0.0  ;;  %v677_v57 = vmul.f32 0.2, %v613_v43  ;;  %v467_v28 = vpop.f32.mrf.mxu0  ;;  %v531_v32 = vpop.f32.mrf.mxu1 }
  0xf3   : > { %v1023_v59 = vpack.c.bf16 %v695_v56, %v695_v56  ;;  %v711_v60 = vsel %vm647_vm1, %v615_v40, %v679_v53  ;;  %v693_v61 = vsel %vm629_vm2, %v597_v42, %v661_v54  ;;  %vm634_vm5 = vcmp.ge.f32.partialorder %v602_v62, 0.0 }
  0xf4   : > { %869 = vst.msk [vmem:[%s1248_s6 + $0x50] sm:$0xf] %vm848_vm3, %v1036_v55  ;;  %v1039_v0 = vpack.c.bf16 %v711_v60, %v711_v60  ;;  %v1021_v1 = vpack.c.bf16 %v693_v61, %v693_v61  ;;  %v709_v2 = vsel %vm645_vm4, %v613_v43, %v677_v57  ;;  %v666_v5 = vmul.f32 0.2, %v602_v62  ;;  %v1085_v43 = vpop.f32.mrf.mxu0  ;;  %v1101_v48 = vpop.f32.mrf.mxu1 }
  0xf5   : > { %856 = vst.msk [vmem:[%s1248_s6 + $0x1c] sm:$0xf] %vm848_vm3, %v1023_v59  ;;  %v1037_v4 = vpack.c.bf16 %v709_v2, %v709_v2  ;;  %v561_v6 = vmul.f32 %v1226_v22, %v451_v33  ;;  %v618_v7 = vadd.f32 %v1231_v24, %v579_v3  ;;  %v577_v8 = vmul.f32 %v1226_v22, %v515_v34 }
  0xf6   : > { %872 = vst.msk [vmem:[%s1248_s6 + $0x5c] sm:$0xf] %vm848_vm3, %v1039_v0  ;;  %854 = vst.msk [vmem:[%s1248_s6 + $0x14] sm:$0xf] %vm848_vm3, %v1021_v1  ;;  %v564_v9 = vmul.f32 %v1081_v45, %v1226_v22  ;;  %v580_v10 = vmul.f32 %v1097_v49, %v1226_v22  ;;  %v698_v12 = vsel %vm634_vm5, %v602_v62, %v666_v5  ;;  %v470_v59 = vpop.f32.mrf.mxu0 }
  0xf7   : > { %870 = vst.msk [vmem:[%s1248_s6 + $0x54] sm:$0xf] %vm848_vm3, %v1037_v4  ;;  %v600_v13 = vadd.f32 %v1231_v24, %v561_v6  ;;  %v562_v14 = vmul.f32 %v1226_v22, %v454_v58  ;;  %v578_v15 = vmul.f32 %v1226_v22, %v518_v63  ;;  %v1026_v17 = vpack.c.bf16 %v698_v12, %v698_v12  ;;  %v534_v6 = vpop.f32.mrf.mxu1 }
  0xf8   : > { %vm650_vm6 = vcmp.ge.f32.partialorder %v618_v7, 0.0  ;;  %v682_v18 = vmul.f32 0.2, %v618_v7  ;;  %v616_v19 = vadd.f32 %v1231_v24, %v577_v8  ;;  %v603_v21 = vadd.f32 %v1231_v24, %v564_v9 }
  0xf9   : > { %vm632_vm7 = vcmp.ge.f32.partialorder %v600_v13, 0.0  ;;  %v664_v20 = vmul.f32 0.2, %v600_v13  ;;  %v619_v23 = vadd.f32 %v1231_v24, %v580_v10  ;;  %859 = vst.msk [vmem:[%s1248_s6 + $0x28] sm:$0xf] %vm848_vm3, %v1026_v17  ;;  %v601_v27 = vadd.f32 %v1231_v24, %v562_v14 }
  0xfa   : > { %v714_v25 = vsel %vm650_vm6, %v618_v7, %v682_v18  ;;  %vm648_vm8 = vcmp.ge.f32.partialorder %v616_v19, 0.0  ;;  %v680_v26 = vmul.f32 0.2, %v616_v19  ;;  %vm635_vm9 = vcmp.ge.f32.partialorder %v603_v21, 0.0 }
  0xfb   : > { %v1042_v29 = vpack.c.bf16 %v714_v25, %v714_v25  ;;  %v696_v30 = vsel %vm632_vm7, %v600_v13, %v664_v20  ;;  %v667_v31 = vmul.f32 0.2, %v603_v21  ;;  %vm651_vm10 = vcmp.ge.f32.partialorder %v619_v23, 0.0 }
  0xfc   : > { %v1024_v33 = vpack.c.bf16 %v696_v30, %v696_v30  ;;  %v712_v34 = vsel %vm648_vm8, %v616_v19, %v680_v26  ;;  %v683_v35 = vmul.f32 0.2, %v619_v23  ;;  %vm633_vm11 = vcmp.ge.f32.partialorder %v601_v27, 0.0 }
  0xfd   : > { %875 = vst.msk [vmem:[%s1248_s6 + $0x68] sm:$0xf] %vm848_vm3, %v1042_v29  ;;  %v1040_v36 = vpack.c.bf16 %v712_v34, %v712_v34  ;;  %v699_v37 = vsel %vm635_vm9, %v603_v21, %v667_v31  ;;  %v665_v38 = vmul.f32 0.2, %v601_v27  ;;  %v617_v41 = vadd.f32 %v1231_v24, %v578_v15 }
  0xfe   : > { %857 = vst.msk [vmem:[%s1248_s6 + $0x20] sm:$0xf] %vm848_vm3, %v1024_v33  ;;  %v1027_v39 = vpack.c.bf16 %v699_v37, %v699_v37  ;;  %v715_v40 = vsel %vm651_vm10, %v619_v23, %v683_v35  ;;  %v567_v42 = vmul.f32 %v1084_v11, %v1226_v22  ;;  %v583_v46 = vmul.f32 %v1100_v16, %v1226_v22 }
  0xff   : > { %873 = vst.msk [vmem:[%s1248_s6 + $0x60] sm:$0xf] %vm848_vm3, %v1040_v36  ;;  %v1043_v44 = vpack.c.bf16 %v715_v40, %v715_v40  ;;  %v697_v45 = vsel %vm633_vm11, %v601_v27, %v665_v38  ;;  %v565_v47 = vmul.f32 %v1226_v22, %v467_v28  ;;  %vm649_vm12 = vcmp.ge.f32.partialorder %v617_v41, 0.0 }
 0x100   : > { %860 = vst.msk [vmem:[%s1248_s6 + $0x2c] sm:$0xf] %vm848_vm3, %v1027_v39  ;;  %v1025_v49 = vpack.c.bf16 %v697_v45, %v697_v45  ;;  %v681_v50 = vmul.f32 0.2, %v617_v41  ;;  %v606_v51 = vadd.f32 %v1231_v24, %v567_v42  ;;  %v622_v52 = vadd.f32 %v1231_v24, %v583_v46 }
 0x101   : > { %876 = vst.msk [vmem:[%s1248_s6 + $0x6c] sm:$0xf] %vm848_vm3, %v1043_v44  ;;  %v604_v53 = vadd.f32 %v1231_v24, %v565_v47  ;;  %v581_v54 = vmul.f32 %v1226_v22, %v531_v32  ;;  %v568_v55 = vmul.f32 %v1085_v43, %v1226_v22  ;;  %v584_v58 = vmul.f32 %v1101_v48, %v1226_v22 }
 0x102   : > { %858 = vst.msk [vmem:[%s1248_s6 + $0x24] sm:$0xf] %vm848_vm3, %v1025_v49  ;;  %v713_v56 = vsel %vm649_vm12, %v617_v41, %v681_v50  ;;  %vm638_vm13 = vcmp.ge.f32.partialorder %v606_v51, 0.0  ;;  %v670_v57 = vmul.f32 0.2, %v606_v51  ;;  %vm654_vm14 = vcmp.ge.f32.partialorder %v622_v52, 0.0 }
 0x103   : > { %v1041_v60 = vpack.c.bf16 %v713_v56, %v713_v56  ;;  %v686_v61 = vmul.f32 0.2, %v622_v52  ;;  %vm636_vm15 = vcmp.ge.f32.partialorder %v604_v53, 0.0  ;;  %v668_v63 = vmul.f32 0.2, %v604_v53 }
 0x104   : > { %v702_v62 = vsel %vm638_vm13, %v606_v51, %v670_v57  ;;  %v620_v0 = vadd.f32 %v1231_v24, %v581_v54  ;;  %v607_v1 = vadd.f32 %v1231_v24, %v568_v55  ;;  %v623_v4 = vadd.f32 %v1231_v24, %v584_v58 }
 0x105   : > { %874 = vst.msk [vmem:[%s1248_s6 + $0x64] sm:$0xf] %vm848_vm3, %v1041_v60  ;;  %v1030_v2 = vpack.c.bf16 %v702_v62, %v702_v62  ;;  %v718_v3 = vsel %vm654_vm14, %v622_v52, %v686_v61  ;;  %v566_v5 = vmul.f32 %v1226_v22, %v470_v59  ;;  %v700_v8 = vsel %vm636_vm15, %v604_v53, %v668_v63 }
 0x106   : > { %v1046_v7 = vpack.c.bf16 %v718_v3, %v718_v3  ;;  %vm652_vm0 = vcmp.ge.f32.partialorder %v620_v0, 0.0  ;;  %v684_v9 = vmul.f32 0.2, %v620_v0  ;;  %v1028_v10 = vpack.c.bf16 %v700_v8, %v700_v8 }
 0x107   : > { %863 = vst.msk [vmem:[%s1248_s6 + $0x38] sm:$0xf] %vm848_vm3, %v1030_v2  ;;  %vm639_vm1 = vcmp.ge.f32.partialorder %v607_v1, 0.0  ;;  %v671_v11 = vmul.f32 0.2, %v607_v1  ;;  %vm655_vm2 = vcmp.ge.f32.partialorder %v623_v4, 0.0  ;;  %v605_v14 = vadd.f32 %v1231_v24, %v566_v5 }
 0x108   : > { %879 = vst.msk [vmem:[%s1248_s6 + $0x78] sm:$0xf] %vm848_vm3, %v1046_v7  ;;  %v716_v12 = vsel %vm652_vm0, %v620_v0, %v684_v9  ;;  %v687_v13 = vmul.f32 0.2, %v623_v4  ;;  %v582_v15 = vmul.f32 %v1226_v22, %v534_v6  ;;  %861 = vst.msk [vmem:[%s1248_s6 + $0x30] sm:$0xf] %vm848_vm3, %v1028_v10 }
 0x109   : > { %v1044_v16 = vpack.c.bf16 %v716_v12, %v716_v12  ;;  %v703_v17 = vsel %vm639_vm1, %v607_v1, %v671_v11  ;;  %vm637_vm4 = vcmp.ge.f32.partialorder %v605_v14, 0.0  ;;  %v669_v20 = vmul.f32 0.2, %v605_v14 }
 0x10a   : > { %v1031_v18 = vpack.c.bf16 %v703_v17, %v703_v17  ;;  %v719_v19 = vsel %vm655_vm2, %v623_v4, %v687_v13  ;;  %v621_v23 = vadd.f32 %v1231_v24, %v582_v15 }
 0x10b   : > { %877 = vst.msk [vmem:[%s1248_s6 + $0x70] sm:$0xf] %vm848_vm3, %v1044_v16  ;;  %v1047_v21 = vpack.c.bf16 %v719_v19, %v719_v19  ;;  %v701_v25 = vsel %vm637_vm4, %v605_v14, %v669_v20 }
 0x10c   : > { %864 = vst.msk [vmem:[%s1248_s6 + $0x3c] sm:$0xf] %vm848_vm3, %v1031_v18  ;;  %v1029_v22 = vpack.c.bf16 %v701_v25, %v701_v25  ;;  %vm653_vm5 = vcmp.ge.f32.partialorder %v621_v23, 0.0  ;;  %v685_v26 = vmul.f32 0.2, %v621_v23 }
 0x10d   : > { %880 = vst.msk [vmem:[%s1248_s6 + $0x7c] sm:$0xf] %vm848_vm3, %v1047_v21 }
 0x10e   : > { %862 = vst.msk [vmem:[%s1248_s6 + $0x34] sm:$0xf] %vm848_vm3, %v1029_v22  ;;  %v717_v27 = vsel %vm653_vm5, %v621_v23, %v685_v26 }
 0x10f   : > { %v1045_v28 = vpack.c.bf16 %v717_v27, %v717_v27 }
 0x111   : > { %878 = vst.msk [vmem:[%s1248_s6 + $0x74] sm:$0xf] %vm848_vm3, %v1045_v28 }
 0x112 PF: > { %s14_s15 = sadd.s32 1, %s1139_s15  }
 0x113   : > { %p11_p4 = scmp.ge.s32.totalorder %s14_s15, 4  }
 0x115   :  { %13 = sbr.rel (!%p11_p4) target bundleno = 1 (0x1), region = 66 }

// kernel: _lambda_.4
= control target key start
LH: loop header
LB: loop body
LE: loop exit
PB: predicated region body
PF: predicated region fallthrough
CT: control target
= control target key end

     0   :  { %s5527_s24 = smov 0   ;;  %s6830_s0 = inlined_call_operand.vmem [shape: bf16[2,110,16], index: 0, kind: input, shape index: {}]   ;;  %s6831_s1 = inlined_call_operand.vmem [shape: bf16[2,110,16], index: 1, kind: input, shape index: {}]   ;;  %s6832_s2 = inlined_call_operand.vmem [shape: bf16[2,110,16], index: 2, kind: input, shape index: {}]   ;;  %s6833_s3 = inlined_call_operand.vmem [shape: bf16[2,110,16], index: 3, kind: input, shape index: {}]   ;;  %s6834_s4 = inlined_call_operand.vmem [shape: bf16[400,32], index: 4, kind: input, shape index: {}]   ;;  %s6835_s5 = inlined_call_operand.vmem [shape: f32[1,32], index: 5, kind: input, shape index: {}]   ;;  %s6836_s6 = inlined_call_operand.vmem [shape: f32[1,32], index: 6, kind: input, shape index: {}]   ;;  %s6837_s7 = inlined_call_operand.vmem [shape: bf16[2,80,32], index: 7, kind: output, shape index: {}]  }
   0x1 LB: > { %s4372_s25 = sadd.s32 4294967295, %s5483_s24   ;;  %p4376_p0 = scmp.ge.s32.totalorder %s5483_s24, 1  ;;  %s5483_s24 = sphi %s5527_s24, %s17_s24  }
   0x2   : > { %p267_p1 = scmp.lt.s32.totalorder %s5483_s24, 3 }
   0x4   : > { %p268_p2 = pnand %p4376_p0, %p267_p1 }
   0x5   : > { %p314_p3 = scmp.lt.s32.totalorder (!%p268_p2), %s4372_s25, 1 }
   0x6   : > { %271 = sbr.rel (%p268_p2) target bundleno = 721 (0x2d1), region = 48 }
   0xb   : > { %v5361_v0 = vld [vmem:[%s6834_s4 + $0x8] sm:$0xff]   ;;  %v5485_v1 = vmov 0.0   ;;  %vm5486_vm0 = vmmov 0   ;;  %s6839_s25 = smov (!%p314_p3, %s4372_s25), 1  ;;  %v5364_v2 = vld [vmem:[%s6834_s4 + $0x10] sm:$0xff]   ;;  %vm441_vm1 = vcmask 130048  }
   0xc   : > { %4797 = vmatprep.subr.bf16.mxu0 %v5485_v1  ;;  %5347 = vmatprep.subr.bf16.mxu1 %v5485_v1  ;;  %s5549_s28 = smul.u32 56, %s6839_s25  ;;  %v5365_v3 = vld [vmem:[%s6834_s4] sm:$0xff]   ;;  %v5370_v18 = vld [vmem:[%s6834_s4 + $0x18] sm:$0xff]   ;;  %vm688_vm2 = vsmask.f32 7424  ;;  %vm1028_vm3 = vcmask 1046528  }
   0xd   : > { %4798 = vmatpush3.bf16.msra.mxu0 %v5361_v0  ;;  %5348 = vmatpush3.bf16.msra.mxu1 %v5361_v0  ;;  %v5374_v24 = vld [vmem:[%s6834_s4 + $0x20] sm:$0xff]   ;;  %vm2227_vm4 = vsmask.f32 6400  ;;  %vm2550_vm5 = vcmask 1045504   ;;  %vm3727_vm6 = vsmask.f32 5376 }
   0xe   : > { %4799 = vmatprep.mubr.msk.bf16.mxu0 %vm5486_vm0, %v5485_v1  ;;  %4811 = vmatprep.mubr.msk.bf16.mxu1 %vm5486_vm0, %v5485_v1  ;;  %s5561_s12 = scalar_lea.vmem %s6831_s1, %s5549_s28  ;;  %s5571_s15 = scalar_lea.vmem %s6830_s0, %s5549_s28  ;;  %vm4050_vm7 = vcmask 1044480   ;;  %vm4270_vm9 = vcmask 257024  }
   0xf   : > { %4841 = vmatprep.subr.bf16.mxu0 %v5485_v1  ;;  %4819 = vmatprep.subr.bf16.mxu1 %v5485_v1  ;;  %v5362_v4 = vld [vmem:[%s5561_s12] sm:$0xff]   ;;  %v5363_v5 = vld [vmem:[%s5561_s12 + $0x18] sm:$0xff]   ;;  %v5366_v6 = vld [vmem:[%s5561_s12 + $0x8] sm:$0xff]   ;;  %s5622_s22 = scalar_lea.vmem %s6832_s2, %s5549_s28  ;;  %s5633_s27 = scalar_lea.vmem %s6833_s3, %s5549_s28 }
  0x10   : > { %4800 = vmatmul.mubr.msk.bf16.vlgmr.msra.gmra.mxu0 %vm441_vm1, %v5362_v4  ;;  %4812 = vmatmul.mubr.msk.bf16.vlgmr.msra.gmra.mxu1 %vm441_vm1, %v5363_v5  ;;  %v5367_v7 = vld [vmem:[%s5561_s12 + $0x20] sm:$0xff]   ;;  %v5591_v11 = vld [vmem:[%s5571_s15 + $0x8] sm:$0xff]   ;;  %v5368_v13 = vld [vmem:[%s5561_s12 + $0x10] sm:$0xff]   ;;  %s5350_s11 = smul.u32 40, %s6839_s25 }
  0x11   : > { %4842 = vmatpush3.bf16.msra.mxu0 %v5364_v2  ;;  %4820 = vmatpush3.bf16.msra.mxu1 %v5365_v3  ;;  %v649_v8 = vld [vmem:[%s5571_s15] sm:$0xf]  ;;  %v5583_v9 = vld [vmem:[%s5571_s15 + $0x4] sm:$0xf]  ;;  %v697_v17 = vshll.u32 %v5591_v11, 16  ;;  %v5606_v21 = vld [vmem:[%s5571_s15 + $0x10] sm:$0xff]  }
  0x12   : > { %4803 = vmatprep.mubr.msk.bf16.mxu0 %vm5486_vm0, %v5485_v1  ;;  %4815 = vmatprep.mubr.msk.bf16.mxu1 %vm5486_vm0, %v5485_v1  ;;  %v4404_v10 = vcombine.low %v649_v8, %v5583_v9  ;;  %v5369_v14 = vld [vmem:[%s5571_s15] sm:$0xff]   ;;  %v5371_v22 = vld [vmem:[%s5571_s15 + $0x8] sm:$0xff]   ;;  %v701_v25 = vshrl.u32 %v5591_v11, 16  ;;  %v705_v26 = vshll.u32 %v5606_v21, 16  ;;  %v5627_v29 = vld [vmem:[%s5571_s15 + $0x18] sm:$0xff]   ;;  %v709_v32 = vshrl.u32 %v5606_v21, 16  ;;  %s6770_s25 = scalar_lea.vmem %s6837_s7, %s5350_s11 }
  0x13   : > { %4863 = vmatprep.subr.bf16.mxu1 %v5485_v1  ;;  %4885 = vmatprep.subr.bf16.mxu0 %v5485_v1  ;;  %v699_v20 = vrot.slane %v697_v17, 1  ;;  %v5375_v30 = vld [vmem:[%s5571_s15 + $0x10] sm:$0xff]   ;;  %v713_v33 = vshll.u32 %v5627_v29, 16  ;;  %v5649_v36 = vld [vmem:[%s5571_s15 + $0x20] sm:$0xff]   ;;  %v5377_v37 = vld [vmem:[%s5571_s15 + $0x18] sm:$0xff]   ;;  %v717_v39 = vshrl.u32 %v5627_v29, 16 }
  0x14   : > { %v692_v12 = vshll.u32 %v4404_v10, 16  ;;  %v690_v15 = vshrl.u32 %v4404_v10, 16  ;;  %v707_v28 = vrot.slane %v705_v26, 1  ;;  %v721_v40 = vshll.u32 %v5649_v36, 16  ;;  %v5382_v41 = vld [vmem:[%s5561_s12] sm:$0xff]   ;;  %v5383_v45 = vld [vmem:[%s5561_s12 + $0x8] sm:$0xff]  }
  0x15   : > { %v703_v27 = vor.u32 %v701_v25, %v699_v20  ;;  %v715_v35 = vrot.slane %v713_v33, 1  ;;  %v5660_v42 = vld [vmem:[%s5571_s15 + $0x28] ss:$0 sps:$4 sm:$0x11]   ;;  %v879_v46 = vshll.u32 %v5382_v41, 16  ;;  %v5379_v47 = vld [vmem:[%s5571_s15 + $0x20] sm:$0xff]  }
  0x16   : > { %v694_v16 = vrot.slane %v692_v12, 1  ;;  %v711_v34 = vor.u32 %v709_v32, %v707_v28  ;;  %v723_v44 = vrot.slane %v721_v40, 1  ;;  %v725_v49 = vshrl.u32 %v5649_v36, 16  ;;  %v5385_v56 = vld [vmem:[%s5561_s12 + $0x10] sm:$0xff]   ;;  %v1024_v57 = vld [vmem:[%s5571_s15] sm:$0xe] }
  0x17   : > { %v708_v31 = vsel %vm688_vm2, %v703_v27, %v707_v28  ;;  %v719_v43 = vor.u32 %v717_v39, %v715_v35  ;;  %v729_v50 = vshll.u32 %v5660_v42, 16  ;;  %v877_v51 = vshrl.u32 %v5382_v41, 16  ;;  %v5388_v63 = vld [vmem:[%s5561_s12 + $0x18] sm:$0xff]   ;;  %v5384_v2 = vld [vmem:[%s6834_s4 + $0x28] sm:$0xff]   ;;  %v5389_v8 = vld [vmem:[%s5561_s12 + $0x20] sm:$0xff]  }
  0x18   : > { %4804 = vmatmul.mubr.msk.bf16.gmra.mxu0 %vm441_vm1, %v5366_v6  ;;  %4816 = vmatmul.mubr.msk.bf16.gmra.mxu1 %vm441_vm1, %v5367_v7  ;;  %v695_v19 = vor.u32 %v694_v16, %v690_v15  ;;  %v716_v38 = vsel %vm688_vm2, %v711_v34, %v715_v35  ;;  %v881_v52 = vrot.slane %v879_v46, 1  ;;  %v884_v53 = vshll.u32 %v5383_v45, 16  ;;  %v5387_v10 = vld [vmem:[%s6834_s4 + $0x30] sm:$0xff]   ;;  %v5390_v17 = vld [vmem:[%s5561_s12 + $0x28] ss:$0 sps:$4 sm:$0x11]  }
  0x19   : > { %4807 = vmatprep.mubr.msk.bf16.mxu0 %vm5486_vm0, %v5485_v1  ;;  %4821 = vmatprep.mubr.msk.bf16.mxu1 %vm5486_vm0, %v5485_v1  ;;  %v724_v48 = vsel %vm688_vm2, %v719_v43, %v723_v44  ;;  %v727_v54 = vor.u32 %v725_v49, %v723_v44  ;;  %v731_v55 = vrot.slane %v729_v50, 1  ;;  %v892_v61 = vshll.u32 %v5385_v56, 16  ;;  %v5393_v39 = vld [vmem:[%s5622_s22 + $0x8] sm:$0xff]   ;;  %v5395_v40 = vld [vmem:[%s6834_s4 + $0x40] sm:$0xff]   ;;  %v5398_v46 = vld [vmem:[%s5622_s22 + $0x18] sm:$0xff]  }
  0x1a   : > { %v700_v23 = vsel %vm688_vm2, %v695_v19, %v699_v20  ;;  %v882_v58 = vor.u32 %v881_v52, %v877_v51  ;;  %v886_v59 = vrot.slane %v884_v53, 1  ;;  %v4428_v62 = vcombine.low %v1024_v57, %v5583_v9  ;;  %v5397_v41 = vld [vmem:[%s5633_s27 + $0x8] sm:$0xff]   ;;  %v1422_v43 = vld [vmem:[%s5622_s22] sm:$0xf]  ;;  %v5771_v44 = vld [vmem:[%s5622_s22 + $0x4] sm:$0xf] }
  0x1b   : > { %v732_v60 = vsel %vm688_vm2, %v727_v54, %v731_v55  ;;  %v888_v3 = vshrl.u32 %v5383_v45, 16  ;;  %v1030_v4 = vrot.slane %v5591_v11, 1  ;;  %v894_v5 = vrot.slane %v892_v61, 1  ;;  %v5399_v45 = vld [vmem:[%s5633_s27 + $0x10] sm:$0xff]   ;;  %v5401_v50 = vld [vmem:[%s5633_s27 + $0x18] sm:$0xff]   ;;  %v5400_v51 = vld [vmem:[%s5622_s22 + $0x20] sm:$0xff]  }
  0x1c   : > { %v887_v0 = vsel %vm688_vm2, %v882_v58, %v886_v59  ;;  %v1029_v6 = vrot.slane %v4428_v62, 1  ;;  %v900_v7 = vshll.u32 %v5388_v63, 16  ;;  %v896_v11 = vshrl.u32 %v5385_v56, 16  ;;  %v5407_v52 = vld [vmem:[%s5633_s27] sm:$0xff]   ;;  %v5408_v56 = vld [vmem:[%s5633_s27 + $0x8] sm:$0xff]  }
  0x1d   : > { %v890_v9 = vor.u32 %v888_v3, %v886_v59  ;;  %v1032_v12 = vrot.slane %v5606_v21, 1  ;;  %v908_v16 = vshll.u32 %v5389_v8, 16  ;;  %v904_v19 = vshrl.u32 %v5388_v63, 16  ;;  %v5402_v61 = vld [vmem:[%s5633_s27 + $0x20] sm:$0xff]   ;;  %v5405_v3 = vld [vmem:[%s6834_s4 + $0x48] sm:$0xff]  }
  0x1e   : > { %v902_v15 = vrot.slane %v900_v7, 1  ;;  %v1034_v20 = vrot.slane %v5627_v29, 1  ;;  %v912_v26 = vshrl.u32 %v5389_v8, 16  ;;  %v1038_v34 = vrot.slane %v5660_v42, 1  ;;  %v5396_v42 = vld [vmem:[%s5622_s22 + $0x10] sm:$0xff]  }
  0x1f   : > { %v1033_v21 = vsel %vm1028_vm3, %v1030_v4, %v1032_v12  ;;  %v1651_v57 = vshll.u32 %v5407_v52, 16  ;;  %v1649_v62 = vshrl.u32 %v5407_v52, 16  ;;  %v5411_v8 = vld [vmem:[%s5633_s27 + $0x10] sm:$0xff]  }
  0x20   : > { %4808 = vmatmul.mubr.msk.bf16.gmra.mxu0 %vm441_vm1, %v5368_v13  ;;  %4822 = vmatmul.mubr.msk.bf16.vlgmr.msra.gmra.mxu1 %vm441_vm1, %v5369_v14  ;;  %v1031_v13 = vsel %vm1028_vm3, %v1029_v6, %v1030_v4  ;;  %v895_v14 = vsel %vm688_vm2, %v890_v9, %v894_v5  ;;  %v906_v25 = vor.u32 %v904_v19, %v902_v15 }
  0x21   : > { %4843 = vmatprep.mubr.msk.bf16.mxu0 %vm5486_vm0, %v5485_v1  ;;  %4864 = vmatpush3.bf16.msra.mxu1 %v5370_v18  ;;  %v898_v18 = vor.u32 %v896_v11, %v894_v5  ;;  %v1035_v27 = vsel %vm1028_vm3, %v1032_v12, %v1034_v20  ;;  %v1653_v63 = vrot.slane %v1651_v57, 1  ;;  %v5814_v11 = vld [vmem:[%s5622_s22 + $0x18] sm:$0xff]  }
  0x22   : > { %4825 = vmatprep.mubr.msk.bf16.mxu1 %vm5486_vm0, %v5485_v1  ;;  %4907 = vmatprep.subr.bf16.mxu1 %v5485_v1 }
  0x23   : > { %v1654_v6 = vor.u32 %v1653_v63, %v1649_v62  ;;  %v5873_v62 = vld [vmem:[%s5571_s15 + $0x8] sm:$0xf] }
  0x28   : > { %4844 = vmatmul.mubr.msk.bf16.vlgmr.msra.gmra.mxu0 %vm441_vm1, %v700_v23  ;;  %4826 = vmatmul.mubr.msk.bf16.gmra.mxu1 %vm441_vm1, %v5371_v22  ;;  %v903_v22 = vsel %vm688_vm2, %v898_v18, %v902_v15  ;;  %v910_v23 = vrot.slane %v908_v16, 1  ;;  %v1664_v15 = vshll.u32 %v5411_v8, 16  ;;  %v1485_v18 = vshll.u32 %v5814_v11, 16 }
  0x29   : > { %4886 = vmatpush3.bf16.msra.mxu0 %v5374_v24  ;;  %4829 = vmatprep.mubr.msk.bf16.mxu1 %vm5486_vm0, %v5485_v1  ;;  %v916_v24 = vshll.u32 %v5390_v17, 16 }
  0x2a   : > { %4847 = vmatprep.mubr.msk.bf16.mxu0 %vm5486_vm0, %v5485_v1  ;;  %4929 = vmatprep.subr.bf16.mxu0 %v5485_v1  ;;  %v911_v28 = vsel %vm688_vm2, %v906_v25, %v910_v23 }
  0x2b   : > { %v918_v29 = vrot.slane %v916_v24, 1  ;;  %v5832_v24 = vld [vmem:[%s5622_s22 + $0x20] sm:$0xff]  }
  0x30   : > { %4848 = vmatmul.mubr.msk.bf16.gmra.mxu0 %vm441_vm1, %v708_v31  ;;  %4830 = vmatmul.mubr.msk.bf16.gmra.mxu1 %vm441_vm1, %v5375_v30  ;;  %v1036_v30 = vrot.slane %v5649_v36, 1  ;;  %v914_v31 = vor.u32 %v912_v26, %v910_v23  ;;  %v5391_v36 = vld [vmem:[%s5622_s22] sm:$0xff]   ;;  %v1487_v23 = vrot.slane %v1485_v18, 1  ;;  %v1668_v26 = vshrl.u32 %v5411_v8, 16  ;;  %v5901_v8 = vld [vmem:[%s5571_s15 + $0x14] sm:$0xff]  }
  0x31   : > { %4851 = vmatprep.mubr.msk.bf16.mxu0 %vm5486_vm0, %v5485_v1  ;;  %4833 = vmatprep.mubr.msk.bf16.mxu1 %vm5486_vm0, %v5485_v1  ;;  %v1807_v18 = vrot.slane %v5832_v24, 1 }
  0x32   : > { %v1037_v32 = vsel %vm1028_vm3, %v1034_v20, %v1036_v30  ;;  %v919_v33 = vsel %vm688_vm2, %v914_v31, %v918_v29  ;;  %v1039_v35 = vsel %vm1028_vm3, %v1036_v30, %v1038_v34  ;;  %v1666_v20 = vrot.slane %v1664_v15, 1 }
  0x33   : > { %v1489_v29 = vshrl.u32 %v5814_v11, 16  ;;  %v1493_v30 = vshll.u32 %v5832_v24, 16 }
  0x34   : > { %v1670_v31 = vor.u32 %v1668_v26, %v1666_v20 }
  0x35   : > { %v1491_v34 = vor.u32 %v1489_v29, %v1487_v23 }
  0x38   : > { %4852 = vmatmul.mubr.msk.bf16.gmra.mxu0 %vm441_vm1, %v716_v38  ;;  %4834 = vmatmul.mubr.msk.bf16.gmra.mxu1 %vm441_vm1, %v5377_v37  ;;  %v5392_v37 = vld [vmem:[%s6834_s4 + $0x38] sm:$0xff]   ;;  %v5394_v38 = vld [vmem:[%s5633_s27] sm:$0xff]  }
  0x39   : > { %4855 = vmatprep.mubr.msk.bf16.mxu0 %vm5486_vm0, %v5485_v1  ;;  %4837 = vmatprep.mubr.msk.bf16.mxu1 %vm5486_vm0, %v5485_v1 }
  0x40   : > { %4856 = vmatmul.mubr.msk.bf16.gmra.mxu0 %vm441_vm1, %v724_v48  ;;  %4838 = vmatmul.mubr.msk.bf16.gmra.mxu1 %vm441_vm1, %v5379_v47  ;;  %v4457_v47 = vcombine.low %v1422_v43, %v5771_v44  ;;  %v5783_v48 = vld [vmem:[%s5622_s22 + $0x8] sm:$0xff]  }
  0x41   : > { %4859 = vmatprep.mubr.msk.bf16.mxu0 %vm5486_vm0, %v5485_v1  ;;  %4865 = vmatprep.mubr.msk.bf16.mxu1 %vm5486_vm0, %v5485_v1  ;;  %v1469_v55 = vshll.u32 %v5783_v48, 16  ;;  %v1473_v4 = vshrl.u32 %v5783_v48, 16 }
  0x42   : > { %v1464_v49 = vshll.u32 %v4457_v47, 16  ;;  %v1462_v53 = vshrl.u32 %v4457_v47, 16 }
  0x43   : > { %v1471_v59 = vrot.slane %v1469_v55, 1 }
  0x44   : > { %v1466_v54 = vrot.slane %v1464_v49, 1 }
  0x45   : > { %v1475_v9 = vor.u32 %v1473_v4, %v1471_v59 }
  0x46   : > { %v1467_v58 = vor.u32 %v1466_v54, %v1462_v53 }
  0x48   : > { %4860 = vmatmul.mubr.msk.bf16.gmra.mxu0 %vm441_vm1, %v732_v60  ;;  %4866 = vmatmul.mubr.msk.bf16.vlgmr.msra.gmra.mxu1 %vm441_vm1, %v887_v0  ;;  %v5797_v60 = vld [vmem:[%s5622_s22 + $0x10] sm:$0xff]   ;;  %v1656_v0 = vshll.u32 %v5408_v56, 16 }
  0x49   : > { %4887 = vmatprep.mubr.msk.bf16.mxu0 %vm5486_vm0, %v5485_v1  ;;  %4908 = vmatpush3.bf16.msra.mxu1 %v5384_v2  ;;  %v1472_v2 = vsel %vm688_vm2, %v1467_v58, %v1471_v59  ;;  %v1477_v5 = vshll.u32 %v5797_v60, 16  ;;  %v1481_v17 = vshrl.u32 %v5797_v60, 16  ;;  %v1801_v59 = vrot.slane %v5783_v48, 1 }
  0x4a   : > { %4869 = vmatprep.mubr.msk.bf16.mxu1 %vm5486_vm0, %v5485_v1  ;;  %4951 = vmatprep.subr.bf16.mxu1 %v5485_v1  ;;  %v1658_v7 = vrot.slane %v1656_v0, 1  ;;  %v5880_v0 = vld [vmem:[%s5571_s15 + $0xc] sm:$0xff]  }
  0x4b   : > { %v1955_v4 = vrot.slane %v5880_v0, 1 }
  0x4c   : > { %v1659_v12 = vsel %vm688_vm2, %v1654_v6, %v1658_v7 }
  0x50   : > { %4888 = vmatmul.mubr.msk.bf16.vlgmr.msra.gmra.mxu0 %vm441_vm1, %v1031_v13  ;;  %4870 = vmatmul.mubr.msk.bf16.gmra.mxu1 %vm441_vm1, %v895_v14  ;;  %v5409_v13 = vld [vmem:[%s6834_s4 + $0x50] sm:$0xff]   ;;  %v1660_v14 = vshrl.u32 %v5408_v56, 16 }
  0x51   : > { %4930 = vmatpush3.bf16.msra.mxu0 %v5387_v10  ;;  %4873 = vmatprep.mubr.msk.bf16.mxu1 %vm5486_vm0, %v5485_v1  ;;  %v1479_v10 = vrot.slane %v1477_v5, 1  ;;  %v1803_v5 = vrot.slane %v5797_v60, 1  ;;  %v1805_v60 = vrot.slane %v5814_v11, 1 }
  0x52   : > { %4891 = vmatprep.mubr.msk.bf16.mxu0 %vm5486_vm0, %v5485_v1  ;;  %4973 = vmatprep.subr.bf16.mxu0 %v5485_v1  ;;  %v1662_v19 = vor.u32 %v1660_v14, %v1658_v7  ;;  %v5421_v7 = vld [vmem:[%s6834_s4 + $0x60] sm:$0xff]  }
  0x53   : > { %v1480_v16 = vsel %vm688_vm2, %v1475_v9, %v1479_v10  ;;  %v1804_v9 = vsel %vm1028_vm3, %v1801_v59, %v1803_v5  ;;  %v1806_v14 = vsel %vm1028_vm3, %v1803_v5, %v1805_v60  ;;  %v1808_v26 = vsel %vm1028_vm3, %v1805_v60, %v1807_v18  ;;  %v5980_v5 = vld [vmem:[%s5561_s12 + $0x14] sm:$0xff]  }
  0x54   : > { %v1667_v25 = vsel %vm688_vm2, %v1662_v19, %v1666_v20 }
  0x58   : > { %4892 = vmatmul.mubr.msk.bf16.gmra.mxu0 %vm441_vm1, %v1033_v21  ;;  %4874 = vmatmul.mubr.msk.bf16.gmra.mxu1 %vm441_vm1, %v903_v22  ;;  %v5413_v21 = vld [vmem:[%s5633_s27 + $0x18] sm:$0xff]   ;;  %v1483_v22 = vor.u32 %v1481_v17, %v1479_v10  ;;  %v1957_v10 = vrot.slane %v5901_v8, 1 }
  0x59   : > { %4895 = vmatprep.mubr.msk.bf16.mxu0 %vm5486_vm0, %v5485_v1  ;;  %4877 = vmatprep.mubr.msk.bf16.mxu1 %vm5486_vm0, %v5485_v1 }
  0x60   : > { %4896 = vmatmul.mubr.msk.bf16.gmra.mxu0 %vm441_vm1, %v1035_v27  ;;  %4878 = vmatmul.mubr.msk.bf16.gmra.mxu1 %vm441_vm1, %v911_v28  ;;  %v1672_v27 = vshll.u32 %v5413_v21, 16  ;;  %v1488_v28 = vsel %vm688_vm2, %v1483_v22, %v1487_v23  ;;  %v5932_v23 = vld [vmem:[%s5571_s15 + $0x24] sm:$0xff]  }
  0x61   : > { %4899 = vmatprep.mubr.msk.bf16.mxu0 %vm5486_vm0, %v5485_v1  ;;  %4881 = vmatprep.mubr.msk.bf16.mxu1 %vm5486_vm0, %v5485_v1 }
  0x68   : > { %4900 = vmatmul.mubr.msk.bf16.gmra.mxu0 %vm441_vm1, %v1037_v32  ;;  %4882 = vmatmul.mubr.msk.bf16.gmra.mxu1 %vm441_vm1, %v919_v33  ;;  %v1674_v32 = vrot.slane %v1672_v27, 1  ;;  %v5415_v33 = vld [vmem:[%s5633_s27 + $0x20] sm:$0xff]  }
  0x69   : > { %4903 = vmatprep.mubr.msk.bf16.mxu0 %vm5486_vm0, %v5485_v1  ;;  %4909 = vmatprep.mubr.msk.bf16.mxu1 %vm5486_vm0, %v5485_v1  ;;  %v1684_v52 = vshrl.u32 %v5415_v33, 16 }
  0x70   : > { %4904 = vmatmul.mubr.msk.bf16.gmra.mxu0 %vm441_vm1, %v1039_v35  ;;  %4910 = vmatmul.mubr.msk.bf16.vlgmr.msra.gmra.mxu1 %vm441_vm1, %v5391_v36  ;;  %v1495_v35 = vrot.slane %v1493_v30, 1  ;;  %v5847_v36 = vld [vmem:[%s5622_s22 + $0x28] ss:$0 sps:$4 sm:$0x11]  }
  0x71   : > { %4931 = vmatprep.mubr.msk.bf16.mxu0 %vm5486_vm0, %v5485_v1  ;;  %4952 = vmatpush3.bf16.msra.mxu1 %v5392_v37  ;;  %v1675_v37 = vsel %vm688_vm2, %v1670_v31, %v1674_v32  ;;  %v1809_v31 = vrot.slane %v5847_v36, 1 }
  0x72   : > { %4913 = vmatprep.mubr.msk.bf16.mxu1 %vm5486_vm0, %v5485_v1  ;;  %4995 = vmatprep.subr.bf16.mxu1 %v5485_v1 }
  0x78   : > { %4932 = vmatmul.mubr.msk.bf16.vlgmr.msra.gmra.mxu0 %vm441_vm1, %v5394_v38  ;;  %4914 = vmatmul.mubr.msk.bf16.gmra.mxu1 %vm441_vm1, %v5393_v39  ;;  %v1676_v38 = vshrl.u32 %v5413_v21, 16  ;;  %v1680_v39 = vshll.u32 %v5415_v33, 16 }
  0x79   : > { %4974 = vmatpush3.bf16.msra.mxu0 %v5395_v40  ;;  %4917 = vmatprep.mubr.msk.bf16.mxu1 %vm5486_vm0, %v5485_v1  ;;  %v1496_v40 = vsel %vm688_vm2, %v1491_v34, %v1495_v35 }
  0x7a   : > { %4935 = vmatprep.mubr.msk.bf16.mxu0 %vm5486_vm0, %v5485_v1  ;;  %5017 = vmatprep.subr.bf16.mxu0 %v5485_v1  ;;  %v1678_v43 = vor.u32 %v1676_v38, %v1674_v32 }
  0x80   : > { %4936 = vmatmul.mubr.msk.bf16.gmra.mxu0 %vm441_vm1, %v5397_v41  ;;  %4918 = vmatmul.mubr.msk.bf16.gmra.mxu1 %vm441_vm1, %v5396_v42  ;;  %v1497_v41 = vshrl.u32 %v5832_v24, 16  ;;  %v1501_v42 = vshll.u32 %v5847_v36, 16  ;;  %v1961_v24 = vrot.slane %v5932_v23, 1 }
  0x81   : > { %4939 = vmatprep.mubr.msk.bf16.mxu0 %vm5486_vm0, %v5485_v1  ;;  %4921 = vmatprep.mubr.msk.bf16.mxu1 %vm5486_vm0, %v5485_v1 }
  0x82   : > { %v1499_v47 = vor.u32 %v1497_v41, %v1495_v35  ;;  %v1503_v49 = vrot.slane %v1501_v42, 1  ;;  %v5956_v41 = vld [vmem:[%s5561_s12 + $0xc] sm:$0xff]  }
  0x84   : > { %v1504_v54 = vsel %vm688_vm2, %v1499_v47, %v1503_v49  ;;  %v2237_v49 = vshrl.u32 %v5880_v0, 16 }
  0x88   : > { %4940 = vmatmul.mubr.msk.bf16.gmra.mxu0 %vm441_vm1, %v5399_v45  ;;  %4922 = vmatmul.mubr.msk.bf16.gmra.mxu1 %vm441_vm1, %v5398_v46  ;;  %v1682_v45 = vrot.slane %v1680_v39, 1  ;;  %v5416_v46 = vld [vmem:[%s5633_s27 + $0x28] ss:$0 sps:$4 sm:$0x11]   ;;  %v1810_v39 = vsel %vm1028_vm3, %v1807_v18, %v1809_v31  ;;  %v2111_v18 = vrot.slane %v5980_v5, 1 }
  0x89   : > { %4943 = vmatprep.mubr.msk.bf16.mxu0 %vm5486_vm0, %v5485_v1  ;;  %4925 = vmatprep.mubr.msk.bf16.mxu1 %vm5486_vm0, %v5485_v1  ;;  %v1688_v53 = vshll.u32 %v5416_v46, 16 }
  0x8a   : > { %v1686_v56 = vor.u32 %v1684_v52, %v1682_v45 }
  0x8b   : > { %v1690_v57 = vrot.slane %v1688_v53, 1 }
  0x90   : > { %4944 = vmatmul.mubr.msk.bf16.gmra.mxu0 %vm441_vm1, %v5401_v50  ;;  %4926 = vmatmul.mubr.msk.bf16.gmra.mxu1 %vm441_vm1, %v5400_v51  ;;  %v1796_v50 = vld [vmem:[%s5622_s22] sm:$0xe]  ;;  %v1683_v51 = vsel %vm688_vm2, %v1678_v43, %v1682_v45 }
  0x91   : > { %4947 = vmatprep.mubr.msk.bf16.mxu0 %vm5486_vm0, %v5485_v1  ;;  %4953 = vmatprep.mubr.msk.bf16.mxu1 %vm5486_vm0, %v5485_v1  ;;  %v4481_v55 = vcombine.low %v1796_v50, %v5771_v44  ;;  %v1691_v44 = vsel %vm688_vm2, %v1686_v56, %v1690_v57  ;;  %v2240_v50 = vshll.u32 %v5880_v0, 16 }
  0x93   : > { %v1800_v58 = vrot.slane %v4481_v55, 1 }
  0x98   : > { %4948 = vmatmul.mubr.msk.bf16.gmra.mxu0 %vm441_vm1, %v5402_v61  ;;  %4954 = vmatmul.mubr.msk.bf16.vlgmr.msra.gmra.mxu1 %vm441_vm1, %v1472_v2  ;;  %v1915_v61 = vld [vmem:[%s5571_s15 + $0x4] sm:$0xe]  ;;  %v1802_v2 = vsel %vm1028_vm3, %v1800_v58, %v1801_v59 }
  0x99   : > { %4975 = vmatprep.mubr.msk.bf16.mxu0 %vm5486_vm0, %v5485_v1  ;;  %4996 = vmatpush3.bf16.msra.mxu1 %v5405_v3  ;;  %v5877_v63 = vcombine.low %v1915_v61, %v5873_v62  ;;  %v5418_v3 = vld [vmem:[%s6834_s4 + $0x58] sm:$0xff]  }
  0x9a   : > { %4957 = vmatprep.mubr.msk.bf16.mxu1 %vm5486_vm0, %v5485_v1  ;;  %5039 = vmatprep.subr.bf16.mxu1 %v5485_v1 }
  0x9b   : > { %v1954_v48 = vrot.slane %v5877_v63, 1  ;;  %v2229_v36 = vshrl.u32 %v5877_v63, 16  ;;  %v2232_v45 = vshll.u32 %v5877_v63, 16  ;;  %v2242_v63 = vrot.slane %v2240_v50, 2 }
  0x9d   : > { %v1956_v6 = vsel %vm1028_vm3, %v1954_v48, %v1955_v4  ;;  %v2231_v57 = vrot.slane %v2229_v36, 1  ;;  %v2234_v58 = vrot.slane %v2232_v45, 2 }
  0xa0   : > { %4976 = vmatmul.mubr.msk.bf16.vlgmr.msra.gmra.mxu0 %vm441_vm1, %v1659_v12  ;;  %4958 = vmatmul.mubr.msk.bf16.gmra.mxu1 %vm441_vm1, %v1480_v16  ;;  %v1958_v12 = vsel %vm1028_vm3, %v1955_v4, %v1957_v10  ;;  %v5428_v4 = vld [vmem:[%s6834_s4 + $0x68] sm:$0xff]  }
  0xa1   : > { %5018 = vmatpush3.bf16.msra.mxu0 %v5409_v13  ;;  %4961 = vmatprep.mubr.msk.bf16.mxu1 %vm5486_vm0, %v5485_v1  ;;  %v5915_v13 = vld [vmem:[%s5571_s15 + $0x1c] sm:$0xff]  }
  0xa2   : > { %4979 = vmatprep.mubr.msk.bf16.mxu0 %vm5486_vm0, %v5485_v1  ;;  %5061 = vmatprep.subr.bf16.mxu0 %v5485_v1  ;;  %v1959_v11 = vrot.slane %v5915_v13, 1  ;;  %v2255_v45 = vshrl.u32 %v5915_v13, 16 }
  0xa4   : > { %v1960_v22 = vsel %vm1028_vm3, %v1957_v10, %v1959_v11  ;;  %v1962_v35 = vsel %vm1028_vm3, %v1959_v11, %v1961_v24 }
  0xa8   : > { %4980 = vmatmul.mubr.msk.bf16.gmra.mxu0 %vm441_vm1, %v1667_v25  ;;  %4962 = vmatmul.mubr.msk.bf16.gmra.mxu1 %vm441_vm1, %v1488_v28 }
  0xa9   : > { %4983 = vmatprep.mubr.msk.bf16.mxu0 %vm5486_vm0, %v5485_v1  ;;  %4965 = vmatprep.mubr.msk.bf16.mxu1 %vm5486_vm0, %v5485_v1 }
  0xb0   : > { %4984 = vmatmul.mubr.msk.bf16.gmra.mxu0 %vm441_vm1, %v1675_v37  ;;  %4966 = vmatmul.mubr.msk.bf16.gmra.mxu1 %vm441_vm1, %v1496_v40  ;;  %v5425_v37 = vld [vmem:[%s5571_s15 + $0x2c] ss:$0 sps:$4 sm:$0x11]   ;;  %v5953_v40 = vld [vmem:[%s5561_s12 + $0x4] sm:$0xfe]  }
  0xb1   : > { %4987 = vmatprep.mubr.msk.bf16.mxu0 %vm5486_vm0, %v5485_v1  ;;  %4969 = vmatprep.mubr.msk.bf16.mxu1 %vm5486_vm0, %v5485_v1  ;;  %v1963_v47 = vrot.slane %v5425_v37, 1  ;;  %v2108_v53 = vrot.slane %v5953_v40, 1 }
  0xb3   : > { %v1964_v61 = vsel %vm1028_vm3, %v1961_v24, %v1963_v47 }
  0xb8   : > { %4988 = vmatmul.mubr.msk.bf16.gmra.mxu0 %vm441_vm1, %v1683_v51  ;;  %4970 = vmatmul.mubr.msk.bf16.gmra.mxu1 %vm441_vm1, %v1504_v54  ;;  %v2109_v54 = vrot.slane %v5956_v41, 1 }
  0xb9   : > { %4991 = vmatprep.mubr.msk.bf16.mxu0 %vm5486_vm0, %v5485_v1  ;;  %4997 = vmatprep.mubr.msk.bf16.mxu1 %vm5486_vm0, %v5485_v1 }
  0xba   : > { %v2110_v48 = vsel %vm1028_vm3, %v2108_v53, %v2109_v54 }
  0xc0   : > { %4992 = vmatmul.mubr.msk.bf16.gmra.mxu0 %vm441_vm1, %v1691_v44  ;;  %4998 = vmatmul.mubr.msk.bf16.vlgmr.msra.gmra.mxu1 %vm441_vm1, %v1802_v2  ;;  %v2239_v44 = vrot.slane %v2237_v49, 1 }
  0xc1   : > { %5019 = vmatprep.mubr.msk.bf16.mxu0 %vm5486_vm0, %v5485_v1  ;;  %5040 = vmatpush3.bf16.msra.mxu1 %v5418_v3 }
  0xc2   : > { %5001 = vmatprep.mubr.msk.bf16.mxu1 %vm5486_vm0, %v5485_v1  ;;  %5083 = vmatprep.subr.bf16.mxu1 %v5485_v1 }
  0xc8   : > { %5020 = vmatmul.mubr.msk.bf16.vlgmr.msra.gmra.mxu0 %vm441_vm1, %v1956_v6  ;;  %5002 = vmatmul.mubr.msk.bf16.gmra.mxu1 %vm441_vm1, %v1804_v9  ;;  %v2235_v9 = vor.u32 %v2234_v58, %v2231_v57 }
  0xc9   : > { %5062 = vmatpush3.bf16.msra.mxu0 %v5421_v7  ;;  %5005 = vmatprep.mubr.msk.bf16.mxu1 %vm5486_vm0, %v5485_v1 }
  0xca   : > { %5023 = vmatprep.mubr.msk.bf16.mxu0 %vm5486_vm0, %v5485_v1  ;;  %5105 = vmatprep.subr.bf16.mxu0 %v5485_v1 }
  0xd0   : > { %v491_v15 = vpop.f32.mrf.mxu0  ;;  %5024 = vmatmul.mubr.msk.bf16.gmra.mxu0 %vm441_vm1, %v1958_v12  ;;  %v5919_v16 = vpop.f32.mrf.mxu1  ;;  %5006 = vmatmul.mubr.msk.bf16.gmra.mxu1 %vm441_vm1, %v1806_v14  ;;  %v2243_v12 = vor.u32 %v2242_v63, %v2239_v44  ;;  %v2246_v14 = vshrl.u32 %v5901_v8, 16 }
  0xd1   : > { %5027 = vmatprep.mubr.msk.bf16.mxu0 %vm5486_vm0, %v5485_v1  ;;  %5009 = vmatprep.mubr.msk.bf16.mxu1 %vm5486_vm0, %v5485_v1 }
  0xd2   : > { %v4801_v17 = vpop.f32.mrf.mxu0  ;;  %v4813_v19 = vpop.f32.mrf.mxu1 }
  0xd4   : > { %v494_v20 = vpop.f32.mrf.mxu0  ;;  %v5928_v21 = vpop.f32.mrf.mxu1 }
  0xd6   : > { %v4802_v25 = vpop.f32.mrf.mxu0  ;;  %v4814_v27 = vpop.f32.mrf.mxu1 }
  0xd7   : > { %v5430_v27 = vld [vmem:[%s6834_s4 + $0x70] sm:$0xff]  }
  0xd8   : > { %v499_v28 = vpop.f32.mrf.mxu0  ;;  %5028 = vmatmul.mubr.msk.bf16.gmra.mxu0 %vm441_vm1, %v1960_v22  ;;  %v5936_v29 = vpop.f32.mrf.mxu1  ;;  %5010 = vmatmul.mubr.msk.bf16.gmra.mxu1 %vm441_vm1, %v1808_v26  ;;  %v2244_v26 = vsel %vm2227_vm4, %v2235_v9, %v2243_v12 }
  0xd9   : > { %5031 = vmatprep.mubr.msk.bf16.mxu0 %vm5486_vm0, %v5485_v1  ;;  %5013 = vmatprep.mubr.msk.bf16.mxu1 %vm5486_vm0, %v5485_v1 }
  0xda   : > { %v4805_v30 = vpop.f32.mrf.mxu0  ;;  %v4817_v32 = vpop.f32.mrf.mxu1 }
  0xdb   : > { %v2112_v32 = vsel %vm1028_vm3, %v2109_v54, %v2111_v18 }
  0xdc   : > { %v5945_v33 = vpop.f32.mrf.mxu0  ;;  %v5947_v34 = vpop.f32.mrf.mxu1 }
  0xde   : > { %v4806_v38 = vpop.f32.mrf.mxu0  ;;  %v4818_v42 = vpop.f32.mrf.mxu1 }
  0xe0   : > { %v5958_v43 = vpop.f32.mrf.mxu0  ;;  %5032 = vmatmul.mubr.msk.bf16.gmra.mxu0 %vm441_vm1, %v1962_v35  ;;  %v610_v46 = vpop.f32.mrf.mxu1  ;;  %5014 = vmatmul.mubr.msk.bf16.gmra.mxu1 %vm441_vm1, %v1810_v39  ;;  %v6003_v35 = vld [vmem:[%s5561_s12 + $0x1c] sm:$0xff]  }
  0xe1   : > { %5035 = vmatprep.mubr.msk.bf16.mxu0 %vm5486_vm0, %v5485_v1  ;;  %v611_v51 = vadd.f32 %v610_v46, %v491_v15  ;;  %5041 = vmatprep.mubr.msk.bf16.mxu1 %vm5486_vm0, %v5485_v1  ;;  %v2249_v15 = vshll.u32 %v5901_v8, 16  ;;  %v2113_v49 = vrot.slane %v6003_v35, 1 }
  0xe2   : > { %v4809_v52 = vpop.f32.mrf.mxu0  ;;  %v4823_v55 = vpop.f32.mrf.mxu1 }
  0xe3   : > { %v2251_v24 = vrot.slane %v2249_v15, 2 }
  0xe4   : > { %v5972_v56 = vpop.f32.mrf.mxu0  ;;  %v613_v59 = vpop.f32.mrf.mxu1 }
  0xe5   : > { %v614_v2 = vadd.f32 %v613_v59, %v494_v20  ;;  %v2114_v59 = vsel %vm1028_vm3, %v2111_v18, %v2113_v49  ;;  %v5433_v18 = vld [vmem:[%s5561_s12 + $0x2c] ss:$0 sps:$4 sm:$0x11]  }
  0xe6   : > { %v4810_v3 = vpop.f32.mrf.mxu0  ;;  %v4824_v6 = vpop.f32.mrf.mxu1 }
  0xe8   : > { %v788_v7 = vpop.f32.mrf.mxu0  ;;  %5036 = vmatmul.mubr.msk.bf16.gmra.mxu0 %vm441_vm1, %v1964_v61  ;;  %v618_v10 = vpop.f32.mrf.mxu1  ;;  %5042 = vmatmul.mubr.msk.bf16.vlgmr.msra.gmra.mxu1 %vm441_vm1, %v2110_v48  ;;  %v6024_v61 = vld [vmem:[%s5561_s12 + $0x24] sm:$0xff]   ;;  %v2264_v48 = vshrl.u32 %v5932_v23, 16 }
  0xe9   : > { %v5983_v60 = vadd.f32 %v788_v7, %v611_v51  ;;  %5063 = vmatprep.mubr.msk.bf16.mxu0 %vm5486_vm0, %v5485_v1  ;;  %v619_v11 = vadd.f32 %v618_v10, %v499_v28  ;;  %5084 = vmatpush3.bf16.msra.mxu1 %v5428_v4  ;;  %v2248_v28 = vrot.slane %v2246_v14, 1  ;;  %v2267_v4 = vshll.u32 %v5932_v23, 16  ;;  %v6039_v14 = vld [vmem:[%s5571_s15 + $0x2c] ss:$0 sps:$4 sm:$0x33]  }
  0xea   : > { %v4845_v17 = vpop.f32.mrf.mxu0  ;;  %5045 = vmatprep.mubr.msk.bf16.mxu1 %vm5486_vm0, %v5485_v1  ;;  %v4827_v19 = vpop.f32.mrf.mxu1  ;;  %5127 = vmatprep.subr.bf16.mxu1 %v5485_v1  ;;  %v2115_v9 = vrot.slane %v6024_v61, 1 }
  0xeb   : > { %v2252_v36 = vor.u32 %v2251_v24, %v2248_v28  ;;  %v2266_v19 = vrot.slane %v2264_v48, 1  ;;  %v2273_v24 = vshrl.u32 %v6039_v14, 16 }
  0xec   : > { %v791_v20 = vpop.f32.mrf.mxu0  ;;  %v621_v22 = vpop.f32.mrf.mxu1 }
  0xed   : > { %v5994_v25 = vadd.f32 %v791_v20, %v614_v2  ;;  %v622_v30 = vadd.f32 %v621_v22, %v5945_v33  ;;  %v2258_v33 = vshll.u32 %v5915_v13, 16  ;;  %v2253_v54 = vsel %vm2227_vm4, %v2243_v12, %v2252_v36 }
  0xee   : > { %v4846_v31 = vpop.f32.mrf.mxu0  ;;  %v4828_v37 = vpop.f32.mrf.mxu1  ;;  %v2269_v20 = vrot.slane %v2267_v4, 2 }
  0xef   : > { %v2260_v55 = vrot.slane %v2258_v33, 2  ;;  %v2398_v33 = vshrl.u32 %v5956_v41, 16 }
  0xf0   : > { %v796_v38 = vpop.f32.mrf.mxu0  ;;  %5064 = vmatmul.mubr.msk.bf16.vlgmr.msra.gmra.mxu0 %vm441_vm1, %v2244_v26  ;;  %v626_v39 = vpop.f32.mrf.mxu1  ;;  %5046 = vmatmul.mubr.msk.bf16.gmra.mxu1 %vm441_vm1, %v2112_v32  ;;  %v2116_v26 = vsel %vm1028_vm3, %v2113_v49, %v2115_v9  ;;  %v2270_v37 = vor.u32 %v2269_v20, %v2266_v19 }
  0xf1   : > { %v6006_v42 = vadd.f32 %v796_v38, %v619_v11  ;;  %5106 = vmatpush3.bf16.msra.mxu0 %v5430_v27  ;;  %v627_v46 = vadd.f32 %v626_v39, %v5958_v43  ;;  %5049 = vmatprep.mubr.msk.bf16.mxu1 %vm5486_vm0, %v5485_v1  ;;  %v2257_v43 = vrot.slane %v2255_v45, 1  ;;  %v2390_v38 = vshrl.u32 %v5953_v40, 16 }
  0xf2   : > { %v4849_v47 = vpop.f32.mrf.mxu0  ;;  %5067 = vmatprep.mubr.msk.bf16.mxu0 %vm5486_vm0, %v5485_v1  ;;  %v4831_v50 = vpop.f32.mrf.mxu1  ;;  %5149 = vmatprep.subr.bf16.mxu0 %v5485_v1  ;;  %v2393_v45 = vshll.u32 %v5953_v40, 16 }
  0xf3   : > { %v2275_v50 = vrot.slane %v2273_v24, 1 }
  0xf4   : > { %v799_v51 = vpop.f32.mrf.mxu0  ;;  %v629_v52 = vpop.f32.mrf.mxu1  ;;  %v2395_v40 = vrot.slane %v2393_v45, 2  ;;  %v2419_v45 = vshll.u32 %v6003_v35, 16 }
  0xf5   : > { %v6018_v53 = vadd.f32 %v799_v51, %v622_v30  ;;  %v630_v57 = vadd.f32 %v629_v52, %v5972_v56  ;;  %v2261_v56 = vor.u32 %v2260_v55, %v2257_v43  ;;  %v2276_v30 = vshll.u32 %v6039_v14, 16 }
  0xf6   : > { %v4850_v58 = vpop.f32.mrf.mxu0  ;;  %v4832_v44 = vpop.f32.mrf.mxu1  ;;  %v2392_v55 = vrot.slane %v2390_v38, 1 }
  0xf7   : > { %v2262_v17 = vsel %vm2227_vm4, %v2252_v36, %v2261_v56  ;;  %v2278_v51 = vrot.slane %v2276_v30, 2 }
  0xf8   : > { %v804_v63 = vpop.f32.mrf.mxu0  ;;  %5068 = vmatmul.mubr.msk.bf16.gmra.mxu0 %vm441_vm1, %v2253_v54  ;;  %v634_v2 = vpop.f32.mrf.mxu1  ;;  %5050 = vmatmul.mubr.msk.bf16.gmra.mxu1 %vm441_vm1, %v2114_v59  ;;  %v2400_v59 = vrot.slane %v2398_v33, 1 }
  0xf9   : > { %v6027_v3 = vadd.f32 %v804_v63, %v627_v46  ;;  %5071 = vmatprep.mubr.msk.bf16.mxu0 %vm5486_vm0, %v5485_v1  ;;  %v635_v6 = vadd.f32 %v634_v2, %v5919_v16  ;;  %5053 = vmatprep.mubr.msk.bf16.mxu1 %vm5486_vm0, %v5485_v1  ;;  %v2401_v46 = vshll.u32 %v5956_v41, 16  ;;  %v2279_v2 = vor.u32 %v2278_v51, %v2275_v50 }
  0xfa   : > { %v4853_v7 = vpop.f32.mrf.mxu0  ;;  %v4835_v10 = vpop.f32.mrf.mxu1 }
  0xfb   : > { %v2403_v44 = vrot.slane %v2401_v46, 2 }
  0xfc   : > { %v807_v12 = vpop.f32.mrf.mxu0  ;;  %v637_v15 = vpop.f32.mrf.mxu1 }
  0xfd   : > { %v6041_v11 = vadd.f32 %v807_v12, %v630_v57  ;;  %v638_v16 = vadd.f32 %v637_v15, %v5928_v21  ;;  %v2117_v21 = vrot.slane %v5433_v18, 1  ;;  %v2404_v10 = vor.u32 %v2403_v44, %v2400_v59  ;;  %v2546_v12 = vld [vmem:[%s5571_s15 + $0x4] sm:$0xc] }
  0xfe   : > { %v4854_v22 = vpop.f32.mrf.mxu0  ;;  %v4836_v27 = vpop.f32.mrf.mxu1  ;;  %v2280_v18 = vsel %vm2227_vm4, %v2270_v37, %v2279_v2 }
  0xff   : > { %v2118_v43 = vsel %vm1028_vm3, %v2115_v9, %v2117_v21  ;;  %v2396_v9 = vor.u32 %v2395_v40, %v2392_v55  ;;  %v2554_v40 = vrot.slane %v5901_v8, 2 }
 0x100   : > { %v812_v28 = vpop.f32.mrf.mxu0  ;;  %5072 = vmatmul.mubr.msk.bf16.gmra.mxu0 %vm441_vm1, %v2262_v17  ;;  %v642_v31 = vpop.f32.mrf.mxu1  ;;  %5054 = vmatmul.mubr.msk.bf16.gmra.mxu1 %vm441_vm1, %v2116_v26 }
 0x101   : > { %v6050_v32 = vadd.f32 %v812_v28, %v635_v6  ;;  %5075 = vmatprep.mubr.msk.bf16.mxu0 %vm5486_vm0, %v5485_v1  ;;  %v643_v39 = vadd.f32 %v642_v31, %v5936_v29  ;;  %5057 = vmatprep.mubr.msk.bf16.mxu1 %vm5486_vm0, %v5485_v1  ;;  %v2271_v29 = vsel %vm2227_vm4, %v2261_v56, %v2270_v37  ;;  %v2410_v56 = vshll.u32 %v5980_v5, 16  ;;  %v5435_v28 = vld [vmem:[%s6834_s4 + $0x78] sm:$0xff]  }
 0x102   : > { %v4857_v36 = vpop.f32.mrf.mxu0  ;;  %v4839_v47 = vpop.f32.mrf.mxu1  ;;  %v2405_v27 = vsel %vm2227_vm4, %v2396_v9, %v2404_v10  ;;  %v2552_v37 = vrot.slane %v5880_v0, 2 }
 0x103   : > { %v2412_v22 = vrot.slane %v2410_v56, 2  ;;  %v2416_v36 = vshrl.u32 %v6003_v35, 16  ;;  %v2421_v35 = vrot.slane %v2419_v45, 2 }
 0x104   : > { %v815_v49 = vpop.f32.mrf.mxu0  ;;  %v645_v52 = vpop.f32.mrf.mxu1 }
 0x105   : > { %v6062_v54 = vadd.f32 %v815_v49, %v638_v16  ;;  %v646_v57 = vadd.f32 %v645_v52, %v5947_v34  ;;  %v2407_v34 = vshrl.u32 %v5980_v5, 16  ;;  %v4526_v5 = vcombine.low %v2546_v12, %v5873_v62  ;;  %v5438_v12 = vld [vmem:[%s5561_s12 + $0x2c] ss:$0 sps:$4 sm:$0x33]  }
 0x106   : > { %v4858_v58 = vpop.f32.mrf.mxu0  ;;  %v4840_v41 = vpop.f32.mrf.mxu1 }
 0x107   : > { %v2409_v16 = vrot.slane %v2407_v34, 1  ;;  %v2425_v41 = vshrl.u32 %v6024_v61, 16 }
 0x108   : > { %v820_v63 = vpop.f32.mrf.mxu0  ;;  %5076 = vmatmul.mubr.msk.bf16.gmra.mxu0 %vm441_vm1, %v2271_v29  ;;  %v975_v4 = vpop.f32.mrf.mxu1  ;;  %5058 = vmatmul.mubr.msk.bf16.gmra.mxu1 %vm441_vm1, %v2118_v43  ;;  %v2418_v43 = vrot.slane %v2416_v36, 1 }
 0x109   : > { %v6068_v48 = vadd.f32 %v820_v63, %v643_v39  ;;  %5079 = vmatprep.mubr.msk.bf16.mxu0 %vm5486_vm0, %v5485_v1  ;;  %v1014_v6 = vadd.f32 %v975_v4, %v5983_v60  ;;  %5085 = vmatprep.mubr.msk.bf16.mxu1 %vm5486_vm0, %v5485_v1  ;;  %v2413_v62 = vor.u32 %v2412_v22, %v2409_v16  ;;  %v2428_v63 = vshll.u32 %v6024_v61, 16 }
 0x10a   : > { %v4861_v7 = vpop.f32.mrf.mxu0  ;;  %v4867_v15 = vpop.f32.mrf.mxu1  ;;  %v2422_v44 = vor.u32 %v2421_v35, %v2418_v43  ;;  %v2427_v9 = vrot.slane %v2425_v41, 1 }
 0x10b   : > { %v2414_v52 = vsel %vm2227_vm4, %v2404_v10, %v2413_v62  ;;  %v2430_v10 = vrot.slane %v2428_v63, 2 }
 0x10c   : > { %v823_v17 = vpop.f32.mrf.mxu0  ;;  %v978_v20 = vpop.f32.mrf.mxu1  ;;  %v2423_v7 = vsel %vm2227_vm4, %v2413_v62, %v2422_v44 }
 0x10d   : > { %v6080_v19 = vadd.f32 %v823_v17, %v646_v57  ;;  %v1015_v60 = vadd.f32 %v978_v20, %v5994_v25  ;;  %v2551_v25 = vrot.slane %v4526_v5, 2  ;;  %v2431_v22 = vor.u32 %v2430_v10, %v2427_v9 }
 0x10e   : > { %v4862_v26 = vpop.f32.mrf.mxu0  ;;  %v4868_v24 = vpop.f32.mrf.mxu1  ;;  %v2434_v5 = vshrl.u32 %v5438_v12, 16 }
 0x10f   : > { %v2553_v0 = vsel %vm2550_vm5, %v2551_v25, %v2552_v37 }
 0x110   : > { %v1095_v30 = vpop.f32.mrf.mxu0  ;;  %5080 = vmatmul.mubr.msk.bf16.gmra.mxu0 %vm441_vm1, %v2280_v18  ;;  %v983_v31 = vpop.f32.mrf.mxu1  ;;  %5086 = vmatmul.mubr.msk.bf16.vlgmr.msra.gmra.mxu1 %vm441_vm1, %v2405_v27 }
 0x111   : > { %v6089_v21 = vadd.f32 %v1095_v30, %v1014_v6  ;;  %5107 = vmatprep.mubr.msk.bf16.mxu0 %vm5486_vm0, %v5485_v1  ;;  %v1016_v38 = vadd.f32 %v983_v31, %v6006_v42  ;;  %5128 = vmatpush3.bf16.msra.mxu1 %v5435_v28  ;;  %v5437_v42 = vld [vmem:[%s6834_s4 + $0x80] sm:$0xff]  }
 0x112   : > { %v4889_v39 = vpop.f32.mrf.mxu0  ;;  %5089 = vmatprep.mubr.msk.bf16.mxu1 %vm5486_vm0, %v5485_v1  ;;  %v4871_v33 = vpop.f32.mrf.mxu1  ;;  %5171 = vmatprep.subr.bf16.mxu1 %v5485_v1 }
 0x114   : > { %v1098_v46 = vpop.f32.mrf.mxu0  ;;  %v986_v47 = vpop.f32.mrf.mxu1 }
 0x115   : > { %v6101_v49 = vadd.f32 %v1098_v46, %v1015_v60  ;;  %v1017_v50 = vadd.f32 %v986_v47, %v6018_v53  ;;  %v2437_v60 = vshll.u32 %v5438_v12, 16  ;;  %v5441_v12 = vld [vmem:[%s6834_s4 + $0x88] sm:$0xff]  }
 0x116   : > { %v4890_v51 = vpop.f32.mrf.mxu0  ;;  %v4872_v29 = vpop.f32.mrf.mxu1 }
 0x117   : > { %v2439_v25 = vrot.slane %v2437_v60, 2 }
 0x118   : > { %v1103_v55 = vpop.f32.mrf.mxu0  ;;  %5108 = vmatmul.mubr.msk.bf16.vlgmr.msra.gmra.mxu0 %vm441_vm1, %v2553_v0  ;;  %v991_v57 = vpop.f32.mrf.mxu1  ;;  %5090 = vmatmul.mubr.msk.bf16.gmra.mxu1 %vm441_vm1, %v2414_v52  ;;  %v2666_v0 = vld [vmem:[%s5622_s22 + $0x4] sm:$0xe] }
 0x119   : > { %v6110_v58 = vadd.f32 %v1103_v55, %v1016_v38  ;;  %5150 = vmatpush3.bf16.msra.mxu0 %v5437_v42  ;;  %v1018_v59 = vadd.f32 %v991_v57, %v6027_v3  ;;  %5093 = vmatprep.mubr.msk.bf16.mxu1 %vm5486_vm0, %v5485_v1  ;;  %v2555_v3 = vsel %vm2550_vm5, %v2552_v37, %v2554_v40  ;;  %v6155_v42 = vld [vmem:[%s5622_s22 + $0x8] sm:$0xf]  ;;  %v6166_v55 = vld [vmem:[%s5622_s22 + $0xc] sm:$0xff]  }
 0x11a   : > { %v4893_v53 = vpop.f32.mrf.mxu0  ;;  %5111 = vmatprep.mubr.msk.bf16.mxu0 %vm5486_vm0, %v5485_v1  ;;  %v4875_v2 = vpop.f32.mrf.mxu1  ;;  %5193 = vmatprep.subr.bf16.mxu0 %v5485_v1  ;;  %v6163_v29 = vcombine.low %v2666_v0, %v6155_v42 }
 0x11b   : > { %v2706_v2 = vrot.slane %v6166_v55, 1 }
 0x11c   : > { %v1106_v4 = vpop.f32.mrf.mxu0  ;;  %v994_v8 = vpop.f32.mrf.mxu1  ;;  %v2705_v63 = vrot.slane %v6163_v29, 1 }
 0x11d   : > { %v6122_v34 = vadd.f32 %v1106_v4, %v1017_v50  ;;  %v1019_v56 = vadd.f32 %v994_v8, %v6041_v11  ;;  %v2556_v11 = vrot.slane %v5915_v13, 2  ;;  %v2432_v13 = vsel %vm2227_vm4, %v2422_v44, %v2431_v22 }
 0x11e   : > { %v4894_v6 = vpop.f32.mrf.mxu0  ;;  %v4876_v15 = vpop.f32.mrf.mxu1  ;;  %v2707_v10 = vsel %vm1028_vm3, %v2705_v63, %v2706_v2 }
 0x11f   : > { %v2557_v30 = vsel %vm2550_vm5, %v2554_v40, %v2556_v11  ;;  %v6195_v15 = vld [vmem:[%s5622_s22 + $0x14] sm:$0xff]  }
 0x120   : > { %v1111_v17 = vpop.f32.mrf.mxu0  ;;  %5112 = vmatmul.mubr.msk.bf16.gmra.mxu0 %vm441_vm1, %v2555_v3  ;;  %v999_v61 = vpop.f32.mrf.mxu1  ;;  %5094 = vmatmul.mubr.msk.bf16.gmra.mxu1 %vm441_vm1, %v2423_v7  ;;  %v6184_v7 = vld [vmem:[%s5633_s27 + $0x4] sm:$0xfe]   ;;  %v2708_v60 = vrot.slane %v6195_v15, 1 }
 0x121   : > { %v6129_v18 = vadd.f32 %v1111_v17, %v1018_v59  ;;  %5115 = vmatprep.mubr.msk.bf16.mxu0 %vm5486_vm0, %v5485_v1  ;;  %v1020_v20 = vadd.f32 %v999_v61, %v6050_v32  ;;  %5097 = vmatprep.mubr.msk.bf16.mxu1 %vm5486_vm0, %v5485_v1  ;;  %v2436_v32 = vrot.slane %v2434_v5, 1 }
 0x122   : > { %v4897_v16 = vpop.f32.mrf.mxu0  ;;  %v4879_v26 = vpop.f32.mrf.mxu1 }
 0x123   : > { %v2440_v46 = vor.u32 %v2439_v25, %v2436_v32  ;;  %v2709_v25 = vsel %vm1028_vm3, %v2706_v2, %v2708_v60 }
 0x124   : > { %v1114_v27 = vpop.f32.mrf.mxu0  ;;  %v1002_v28 = vpop.f32.mrf.mxu1 }
 0x125   : > { %v6138_v24 = vadd.f32 %v1114_v27, %v1019_v56  ;;  %v1021_v31 = vadd.f32 %v1002_v28, %v6062_v54  ;;  %v2558_v54 = vrot.slane %v5932_v23, 2 }
 0x126   : > { %v4898_v62 = vpop.f32.mrf.mxu0  ;;  %v4880_v37 = vpop.f32.mrf.mxu1 }
 0x127   : > { %v2559_v43 = vsel %vm2550_vm5, %v2556_v11, %v2558_v54  ;;  %v6217_v62 = vld [vmem:[%s5633_s27 + $0x14] sm:$0xff]   ;;  %v6222_v37 = vld [vmem:[%s5622_s22 + $0x1c] sm:$0xff]  }
 0x128   : > { %v1119_v38 = vpop.f32.mrf.mxu0  ;;  %5116 = vmatmul.mubr.msk.bf16.gmra.mxu0 %vm441_vm1, %v2557_v30  ;;  %v1007_v39 = vpop.f32.mrf.mxu1  ;;  %5098 = vmatmul.mubr.msk.bf16.gmra.mxu1 %vm441_vm1, %v2432_v13 }
 0x129   : > { %v6144_v36 = vadd.f32 %v1119_v38, %v1020_v20  ;;  %5119 = vmatprep.mubr.msk.bf16.mxu0 %vm5486_vm0, %v5485_v1  ;;  %v1022_v45 = vadd.f32 %v1007_v39, %v6068_v48  ;;  %5101 = vmatprep.mubr.msk.bf16.mxu1 %vm5486_vm0, %v5485_v1  ;;  %v2441_v48 = vsel %vm2227_vm4, %v2431_v22, %v2440_v46 }
 0x12a   : > { %v4901_v33 = vpop.f32.mrf.mxu0  ;;  %v4883_v47 = vpop.f32.mrf.mxu1 }
 0x12b   : > { %v2862_v33 = vrot.slane %v6217_v62, 1  ;;  %v2710_v47 = vrot.slane %v6222_v37, 1 }
 0x12c   : > { %v1122_v50 = vpop.f32.mrf.mxu0  ;;  %v1010_v51 = vpop.f32.mrf.mxu1 }
 0x12d   : > { %v6157_v52 = vadd.f32 %v1122_v50, %v1021_v31  ;;  %v1023_v23 = vadd.f32 %v1010_v51, %v6080_v19  ;;  %v2560_v19 = vrot.slane %v6039_v14, 2  ;;  %v6187_v14 = vld [vmem:[%s5633_s27 + $0xc] sm:$0xff]  }
 0x12e   : > { %v4902_v35 = vpop.f32.mrf.mxu0  ;;  %v4884_v57 = vpop.f32.mrf.mxu1  ;;  %v2860_v16 = vrot.slane %v6187_v14, 1 }
 0x12f   : > { %v2561_v6 = vsel %vm2550_vm5, %v2558_v54, %v2560_v19  ;;  %v6240_v35 = vld [vmem:[%s5633_s27 + $0x1c] sm:$0xff]   ;;  %v2711_v57 = vsel %vm1028_vm3, %v2708_v60, %v2710_v47  ;;  %v2982_v60 = vshll.u32 %v6163_v29, 16 }
 0x130   : > { %v1127_v40 = vpop.f32.mrf.mxu0  ;;  %5120 = vmatmul.mubr.msk.bf16.gmra.mxu0 %vm441_vm1, %v2559_v43  ;;  %v1234_v53 = vpop.f32.mrf.mxu1  ;;  %5102 = vmatmul.mubr.msk.bf16.gmra.mxu1 %vm441_vm1, %v2441_v48 }
 0x131   : > { %v6169_v59 = vadd.f32 %v1127_v40, %v1022_v45  ;;  %5123 = vmatprep.mubr.msk.bf16.mxu0 %vm5486_vm0, %v5485_v1  ;;  %v1273_v44 = vadd.f32 %v1234_v53, %v6089_v21  ;;  %5129 = vmatprep.mubr.msk.bf16.mxu1 %vm5486_vm0, %v5485_v1  ;;  %v6245_v40 = vld [vmem:[%s5622_s22 + $0x24] sm:$0xff]  }
 0x132   : > { %v4905_v41 = vpop.f32.mrf.mxu0  ;;  %v4911_v4 = vpop.f32.mrf.mxu1 }
 0x133   : > { %v2712_v4 = vrot.slane %v6245_v40, 1 }
 0x134   : > { %v1130_v8 = vpop.f32.mrf.mxu0  ;;  %v1237_v56 = vpop.f32.mrf.mxu1 }
 0x135   : > { %v6180_v3 = vadd.f32 %v1130_v8, %v1023_v23  ;;  %v1274_v21 = vadd.f32 %v1237_v56, %v6101_v49  ;;  %v2859_v49 = vrot.slane %v6184_v7, 1  ;;  %v2863_v23 = vsel %vm1028_vm3, %v2860_v16, %v2862_v33 }
 0x136   : > { %v4906_v9 = vpop.f32.mrf.mxu0  ;;  %v4912_v17 = vpop.f32.mrf.mxu1 }
 0x137   : > { %v2861_v31 = vsel %vm1028_vm3, %v2859_v49, %v2860_v16 }
 0x138   : > { %v1373_v61 = vpop.f32.mrf.mxu0  ;;  %5124 = vmatmul.mubr.msk.bf16.gmra.mxu0 %vm441_vm1, %v2561_v6  ;;  %v1242_v11 = vpop.f32.mrf.mxu1  ;;  %5130 = vmatmul.mubr.msk.bf16.vlgmr.msra.gmra.mxu1 %vm441_vm1, %v2707_v10  ;;  %v6262_v10 = vld [vmem:[%s5633_s27 + $0x24] sm:$0xff]  }
 0x139   : > { %v6198_v20 = vadd.f32 %v1373_v61, %v1273_v44  ;;  %5151 = vmatprep.mubr.msk.bf16.mxu0 %vm5486_vm0, %v5485_v1  ;;  %v1275_v22 = vadd.f32 %v1242_v11, %v6110_v58  ;;  %5172 = vmatpush3.bf16.msra.mxu1 %v5441_v12  ;;  %v5445_v58 = vld [vmem:[%s6834_s4 + $0x90] sm:$0xff]   ;;  %v5450_v61 = vld [vmem:[%s5622_s22 + $0x2c] ss:$0 sps:$4 sm:$0x11]  }
 0x13a   : > { %v4933_v5 = vpop.f32.mrf.mxu0  ;;  %5133 = vmatprep.mubr.msk.bf16.mxu1 %vm5486_vm0, %v5485_v1  ;;  %v4915_v26 = vpop.f32.mrf.mxu1  ;;  %5215 = vmatprep.subr.bf16.mxu1 %v5485_v1 }
 0x13b   : > { %v2866_v5 = vrot.slane %v6262_v10, 1 }
 0x13c   : > { %v1376_v27 = vpop.f32.mrf.mxu0  ;;  %v1245_v28 = vpop.f32.mrf.mxu1 }
 0x13d   : > { %v6210_v30 = vadd.f32 %v1376_v27, %v1274_v21  ;;  %v1276_v13 = vadd.f32 %v1245_v28, %v6122_v34  ;;  %v2714_v28 = vrot.slane %v5450_v61, 1 }
 0x13e   : > { %v4934_v32 = vpop.f32.mrf.mxu0  ;;  %v4916_v38 = vpop.f32.mrf.mxu1 }
 0x140   : > { %v1381_v39 = vpop.f32.mrf.mxu0  ;;  %5152 = vmatmul.mubr.msk.bf16.vlgmr.msra.gmra.mxu0 %vm441_vm1, %v2861_v31  ;;  %v1250_v54 = vpop.f32.mrf.mxu1  ;;  %5134 = vmatmul.mubr.msk.bf16.gmra.mxu1 %vm441_vm1, %v2709_v25  ;;  %v2987_v31 = vshrl.u32 %v6166_v55, 16  ;;  %v5452_v25 = vld [vmem:[%s5633_s27 + $0x2c] ss:$0 sps:$4 sm:$0x11]  }
 0x141   : > { %v6225_v45 = vadd.f32 %v1381_v39, %v1275_v22  ;;  %5194 = vmatpush3.bf16.msra.mxu0 %v5445_v58  ;;  %v1277_v34 = vadd.f32 %v1250_v54, %v6129_v18  ;;  %5137 = vmatprep.mubr.msk.bf16.mxu1 %vm5486_vm0, %v5485_v1  ;;  %v2990_v58 = vshll.u32 %v6166_v55, 16 }
 0x142   : > { %v4937_v46 = vpop.f32.mrf.mxu0  ;;  %5155 = vmatprep.mubr.msk.bf16.mxu0 %vm5486_vm0, %v5485_v1  ;;  %v4919_v0 = vpop.f32.mrf.mxu1  ;;  %5237 = vmatprep.subr.bf16.mxu0 %v5485_v1 }
 0x143   : > { %v2715_v46 = vsel %vm1028_vm3, %v2712_v4, %v2714_v28  ;;  %v2992_v0 = vrot.slane %v2990_v58, 2  ;;  %v3157_v58 = vshrl.u32 %v6217_v62, 16 }
 0x144   : > { %v1384_v50 = vpop.f32.mrf.mxu0  ;;  %v1253_v51 = vpop.f32.mrf.mxu1 }
 0x145   : > { %v6236_v43 = vadd.f32 %v1384_v50, %v1276_v13  ;;  %v1278_v18 = vadd.f32 %v1253_v51, %v6138_v24  ;;  %v2864_v24 = vrot.slane %v6240_v35, 1 }
 0x146   : > { %v4938_v48 = vpop.f32.mrf.mxu0  ;;  %v4920_v53 = vpop.f32.mrf.mxu1 }
 0x147   : > { %v2865_v9 = vsel %vm1028_vm3, %v2862_v33, %v2864_v24  ;;  %v2867_v54 = vsel %vm1028_vm3, %v2864_v24, %v2866_v5  ;;  %v2984_v33 = vrot.slane %v2982_v60, 2  ;;  %v3143_v48 = vshll.u32 %v6184_v7, 16 }
 0x148   : > { %v1389_v19 = vpop.f32.mrf.mxu0  ;;  %5156 = vmatmul.mubr.msk.bf16.gmra.mxu0 %vm441_vm1, %v2863_v23  ;;  %v1258_v44 = vpop.f32.mrf.mxu1  ;;  %5138 = vmatmul.mubr.msk.bf16.gmra.mxu1 %vm441_vm1, %v2711_v57  ;;  %v2868_v23 = vrot.slane %v5452_v25, 1 }
 0x149   : > { %v6248_v41 = vadd.f32 %v1389_v19, %v1277_v34  ;;  %5159 = vmatprep.mubr.msk.bf16.mxu0 %vm5486_vm0, %v5485_v1  ;;  %v1279_v63 = vadd.f32 %v1258_v44, %v6144_v36  ;;  %5141 = vmatprep.mubr.msk.bf16.mxu1 %vm5486_vm0, %v5485_v1  ;;  %v2713_v36 = vsel %vm1028_vm3, %v2710_v47, %v2712_v4  ;;  %v2989_v47 = vrot.slane %v2987_v31, 1 }
 0x14a   : > { %v4941_v2 = vpop.f32.mrf.mxu0  ;;  %v4923_v8 = vpop.f32.mrf.mxu1  ;;  %v3148_v19 = vshrl.u32 %v6187_v14, 16  ;;  %v3151_v44 = vshll.u32 %v6187_v14, 16  ;;  %v2999_v4 = vshll.u32 %v6195_v15, 16  ;;  %v2869_v14 = vsel %vm1028_vm3, %v2866_v5, %v2868_v23 }
 0x14b   : > { %v2996_v2 = vshrl.u32 %v6195_v15, 16 }
 0x14c   : > { %v1392_v56 = vpop.f32.mrf.mxu0  ;;  %v1261_v6 = vpop.f32.mrf.mxu1  ;;  %v3001_v60 = vrot.slane %v2999_v4, 2 }
 0x14d   : > { %v6258_v21 = vadd.f32 %v1392_v56, %v1278_v18  ;;  %v1280_v12 = vadd.f32 %v1261_v6, %v6157_v52  ;;  %v2979_v52 = vshrl.u32 %v6163_v29, 16  ;;  %v3140_v18 = vshrl.u32 %v6184_v7, 16 }
 0x14e   : > { %v4942_v17 = vpop.f32.mrf.mxu0  ;;  %v4924_v11 = vpop.f32.mrf.mxu1  ;;  %v2993_v7 = vor.u32 %v2992_v0, %v2989_v47  ;;  %v3159_v47 = vrot.slane %v3157_v58, 1 }
 0x14f   : > { %v2981_v29 = vrot.slane %v2979_v52, 1  ;;  %v3142_v6 = vrot.slane %v3140_v18, 1  ;;  %v2998_v52 = vrot.slane %v2996_v2, 1 }
 0x150   : > { %v1397_v49 = vpop.f32.mrf.mxu0  ;;  %5160 = vmatmul.mubr.msk.bf16.gmra.mxu0 %vm441_vm1, %v2865_v9  ;;  %v1266_v16 = vpop.f32.mrf.mxu1  ;;  %5142 = vmatmul.mubr.msk.bf16.gmra.mxu1 %vm441_vm1, %v2713_v36  ;;  %v3145_v9 = vrot.slane %v3143_v48, 2  ;;  %v3150_v36 = vrot.slane %v3148_v19, 1 }
 0x151   : > { %v6268_v22 = vadd.f32 %v1397_v49, %v1279_v63  ;;  %5163 = vmatprep.mubr.msk.bf16.mxu0 %vm5486_vm0, %v5485_v1  ;;  %v1281_v26 = vadd.f32 %v1266_v16, %v6169_v59  ;;  %5145 = vmatprep.mubr.msk.bf16.mxu1 %vm5486_vm0, %v5485_v1  ;;  %v5453_v16 = vld [vmem:[%s6834_s4 + $0x98] sm:$0xff]  }
 0x152   : > { %v4945_v27 = vpop.f32.mrf.mxu0  ;;  %v4927_v13 = vpop.f32.mrf.mxu1  ;;  %v3146_v28 = vor.u32 %v3145_v9, %v3142_v6 }
 0x153   : > { %v3160_v13 = vshll.u32 %v6217_v62, 16 }
 0x154   : > { %v1400_v32 = vpop.f32.mrf.mxu0  ;;  %v1269_v38 = vpop.f32.mrf.mxu1 }
 0x155   : > { %v6282_v39 = vadd.f32 %v1400_v32, %v1280_v12  ;;  %v1282_v59 = vadd.f32 %v1269_v38, %v6180_v3  ;;  %v2985_v3 = vor.u32 %v2984_v33, %v2981_v29  ;;  %v3002_v38 = vor.u32 %v3001_v60, %v2998_v52  ;;  %v6352_v52 = vld [vmem:[%s5622_s22 + $0x2c] ss:$0 sps:$4 sm:$0x33]  }
 0x156   : > { %v4946_v34 = vpop.f32.mrf.mxu0  ;;  %v4928_v50 = vpop.f32.mrf.mxu1  ;;  %v3008_v29 = vshll.u32 %v6222_v37, 16  ;;  %v3162_v0 = vrot.slane %v3160_v13, 2 }
 0x157   : > { %v2994_v49 = vsel %vm2227_vm4, %v2985_v3, %v2993_v7  ;;  %v3003_v23 = vsel %vm2227_vm4, %v2993_v7, %v3002_v38 }
 0x158   : > { %v1405_v51 = vpop.f32.mrf.mxu0  ;;  %5164 = vmatmul.mubr.msk.bf16.gmra.mxu0 %vm441_vm1, %v2867_v54  ;;  %v1560_v53 = vpop.f32.mrf.mxu1  ;;  %5146 = vmatmul.mubr.msk.bf16.gmra.mxu1 %vm441_vm1, %v2715_v46  ;;  %v3005_v54 = vshrl.u32 %v6222_v37, 16  ;;  %v3010_v48 = vrot.slane %v3008_v29, 2 }
 0x159   : > { %v6290_v57 = vadd.f32 %v1405_v51, %v1281_v26  ;;  %5167 = vmatprep.mubr.msk.bf16.mxu0 %vm5486_vm0, %v5485_v1  ;;  %v1599_v24 = vadd.f32 %v1560_v53, %v6198_v20  ;;  %5173 = vmatprep.mubr.msk.bf16.mxu1 %vm5486_vm0, %v5485_v1  ;;  %v3153_v20 = vrot.slane %v3151_v44, 2 }
 0x15a   : > { %v4949_v63 = vpop.f32.mrf.mxu0  ;;  %v4955_v8 = vpop.f32.mrf.mxu1  ;;  %v3007_v18 = vrot.slane %v3005_v54, 1 }
 0x15b   : > { %v3166_v63 = vshrl.u32 %v6240_v35, 16  ;;  %v3014_v8 = vshrl.u32 %v6245_v40, 16 }
 0x15c   : > { %v1408_v56 = vpop.f32.mrf.mxu0  ;;  %v1563_v17 = vpop.f32.mrf.mxu1  ;;  %v3011_v4 = vor.u32 %v3010_v48, %v3007_v18 }
 0x15d   : > { %v6302_v12 = vadd.f32 %v1408_v56, %v1282_v59  ;;  %v1600_v61 = vadd.f32 %v1563_v17, %v6210_v30  ;;  %v3154_v30 = vor.u32 %v3153_v20, %v3150_v36  ;;  %v3017_v56 = vshll.u32 %v6245_v40, 16 }
 0x15e   : > { %v4950_v11 = vpop.f32.mrf.mxu0  ;;  %v4956_v26 = vpop.f32.mrf.mxu1 }
 0x15f   : > { %v3155_v62 = vsel %vm2227_vm4, %v3146_v28, %v3154_v30  ;;  %v3012_v11 = vsel %vm2227_vm4, %v3002_v38, %v3011_v4  ;;  %v3026_v38 = vshll.u32 %v6352_v52, 16 }
 0x160   : > { %v1747_v27 = vpop.f32.mrf.mxu0  ;;  %5168 = vmatmul.mubr.msk.bf16.gmra.mxu0 %vm441_vm1, %v2869_v14  ;;  %v1568_v31 = vpop.f32.mrf.mxu1  ;;  %5174 = vmatmul.mubr.msk.bf16.vlgmr.msra.gmra.mxu1 %vm441_vm1, %v2994_v49  ;;  %v3168_v14 = vrot.slane %v3166_v63, 1  ;;  %v3016_v49 = vrot.slane %v3014_v8, 1 }
 0x161   : > { %v6311_v5 = vadd.f32 %v1747_v27, %v1599_v24  ;;  %5195 = vmatprep.mubr.msk.bf16.mxu0 %vm5486_vm0, %v5485_v1  ;;  %v1601_v32 = vadd.f32 %v1568_v31, %v6225_v45  ;;  %5216 = vmatpush3.bf16.msra.mxu1 %v5453_v16  ;;  %v5454_v45 = vld [vmem:[%s6834_s4 + $0xa0] sm:$0xff]   ;;  %v3163_v24 = vor.u32 %v3162_v0, %v3159_v47  ;;  %v3019_v16 = vrot.slane %v3017_v56, 2 }
 0x162   : > { %v4977_v25 = vpop.f32.mrf.mxu0  ;;  %5177 = vmatprep.mubr.msk.bf16.mxu1 %vm5486_vm0, %v5485_v1  ;;  %v4959_v33 = vpop.f32.mrf.mxu1  ;;  %5259 = vmatprep.subr.bf16.mxu1 %v5485_v1  ;;  %v3175_v31 = vshrl.u32 %v6262_v10, 16 }
 0x163   : > { %v3023_v25 = vshrl.u32 %v6352_v52, 16 }
 0x164   : > { %v1750_v59 = vpop.f32.mrf.mxu0  ;;  %v1571_v34 = vpop.f32.mrf.mxu1 }
 0x165   : > { %v6324_v46 = vadd.f32 %v1750_v59, %v1600_v61  ;;  %v1602_v50 = vadd.f32 %v1571_v34, %v6236_v43  ;;  %v3169_v43 = vshll.u32 %v6240_v35, 16 }
 0x166   : > { %v4978_v51 = vpop.f32.mrf.mxu0  ;;  %v4960_v53 = vpop.f32.mrf.mxu1 }
 0x167   : > { %v3171_v36 = vrot.slane %v3169_v43, 2  ;;  %v3028_v51 = vrot.slane %v3026_v38, 2 }
 0x168   : > { %v1755_v3 = vpop.f32.mrf.mxu0  ;;  %5196 = vmatmul.mubr.msk.bf16.vlgmr.msra.gmra.mxu0 %vm441_vm1, %v3155_v62  ;;  %v1576_v19 = vpop.f32.mrf.mxu1  ;;  %5178 = vmatmul.mubr.msk.bf16.gmra.mxu1 %vm441_vm1, %v3003_v23  ;;  %v3177_v62 = vrot.slane %v3175_v31, 1 }
 0x169   : > { %v6333_v44 = vadd.f32 %v1755_v3, %v1601_v32  ;;  %5238 = vmatpush3.bf16.msra.mxu0 %v5454_v45  ;;  %v1603_v2 = vadd.f32 %v1576_v19, %v6248_v41  ;;  %5181 = vmatprep.mubr.msk.bf16.mxu1 %vm5486_vm0, %v5485_v1  ;;  %v3164_v41 = vsel %vm2227_vm4, %v3154_v30, %v3163_v24  ;;  %v3178_v30 = vshll.u32 %v6262_v10, 16  ;;  %v5456_v45 = vld [vmem:[%s5633_s27 + $0x2c] ss:$0 sps:$4 sm:$0x33]  }
 0x16a   : > { %v4981_v7 = vpop.f32.mrf.mxu0  ;;  %5199 = vmatprep.mubr.msk.bf16.mxu0 %vm5486_vm0, %v5485_v1  ;;  %v4963_v6 = vpop.f32.mrf.mxu1  ;;  %5281 = vmatprep.subr.bf16.mxu0 %v5485_v1  ;;  %v3020_v32 = vor.u32 %v3019_v16, %v3016_v49  ;;  %v3187_v19 = vshll.u32 %v5456_v45, 16 }
 0x16b   : > { %v3180_v10 = vrot.slane %v3178_v30, 2  ;;  %v3296_v7 = vld [vmem:[%s5622_s22 + $0x4] sm:$0xc] }
 0x16c   : > { %v1758_v9 = vpop.f32.mrf.mxu0  ;;  %v1579_v35 = vpop.f32.mrf.mxu1  ;;  %v3021_v0 = vsel %vm2227_vm4, %v3011_v4, %v3020_v32 }
 0x16d   : > { %v6346_v17 = vadd.f32 %v1758_v9, %v1602_v50  ;;  %v1604_v20 = vadd.f32 %v1579_v35, %v6258_v21  ;;  %v3172_v21 = vor.u32 %v3171_v36, %v3168_v14  ;;  %v3025_v50 = vrot.slane %v3023_v25, 1 }
 0x16e   : > { %v4982_v61 = vpop.f32.mrf.mxu0  ;;  %v4964_v60 = vpop.f32.mrf.mxu1  ;;  %v3181_v3 = vor.u32 %v3180_v10, %v3177_v62  ;;  %v3189_v35 = vrot.slane %v3187_v19, 2  ;;  %v4571_v36 = vcombine.low %v3296_v7, %v6155_v42 }
 0x16f   : > { %v3173_v34 = vsel %vm2227_vm4, %v3163_v24, %v3172_v21  ;;  %v3029_v43 = vor.u32 %v3028_v51, %v3025_v50 }
 0x170   : > { %v1763_v26 = vpop.f32.mrf.mxu0  ;;  %5200 = vmatmul.mubr.msk.bf16.gmra.mxu0 %vm441_vm1, %v3164_v41  ;;  %v1584_v27 = vpop.f32.mrf.mxu1  ;;  %5182 = vmatmul.mubr.msk.bf16.gmra.mxu1 %vm441_vm1, %v3012_v11  ;;  %v3182_v6 = vsel %vm2227_vm4, %v3172_v21, %v3181_v3  ;;  %v3300_v42 = vrot.slane %v4571_v36, 2  ;;  %v6401_v21 = vld [vmem:[%s5571_s15 + $0xc] sm:$0xf] }
 0x171   : > { %v6355_v28 = vadd.f32 %v1763_v26, %v1603_v2  ;;  %5203 = vmatprep.mubr.msk.bf16.mxu0 %vm5486_vm0, %v5485_v1  ;;  %v1605_v58 = vadd.f32 %v1584_v27, %v6268_v22  ;;  %5185 = vmatprep.mubr.msk.bf16.mxu1 %vm5486_vm0, %v5485_v1  ;;  %v3301_v26 = vrot.slane %v6166_v55, 2  ;;  %v3415_v27 = vld [vmem:[%s5571_s15 + $0x8] sm:$0xc] }
 0x172   : > { %v4985_v13 = vpop.f32.mrf.mxu0  ;;  %v4967_v54 = vpop.f32.mrf.mxu1  ;;  %v6407_v25 = vcombine.low %v3415_v27, %v6401_v21 }
 0x173   : > { %v3302_v55 = vsel %vm2550_vm5, %v3300_v42, %v3301_v26  ;;  %v3307_v42 = vrot.slane %v6245_v40, 2 }
 0x174   : > { %v1766_v29 = vpop.f32.mrf.mxu0  ;;  %v1587_v33 = vpop.f32.mrf.mxu1 }
 0x175   : > { %v6367_v59 = vadd.f32 %v1766_v29, %v1604_v20  ;;  %v1606_v22 = vadd.f32 %v1587_v33, %v6282_v39  ;;  %v3184_v39 = vshrl.u32 %v5456_v45, 16  ;;  %v5458_v29 = vld [vmem:[%s6834_s4 + $0xa8] sm:$0xff]  }
 0x176   : > { %v4986_v47 = vpop.f32.mrf.mxu0  ;;  %v4968_v23 = vpop.f32.mrf.mxu1 }
 0x177   : > { %v3186_v9 = vrot.slane %v3184_v39, 1 }
 0x178   : > { %v1771_v18 = vpop.f32.mrf.mxu0  ;;  %5204 = vmatmul.mubr.msk.bf16.gmra.mxu0 %vm441_vm1, %v3173_v34  ;;  %v1592_v48 = vpop.f32.mrf.mxu1  ;;  %5186 = vmatmul.mubr.msk.bf16.gmra.mxu1 %vm441_vm1, %v3021_v0  ;;  %v3303_v0 = vrot.slane %v6195_v15, 2 }
 0x179   : > { %v6374_v53 = vadd.f32 %v1771_v18, %v1605_v58  ;;  %5207 = vmatprep.mubr.msk.bf16.mxu0 %vm5486_vm0, %v5485_v1  ;;  %v1607_v24 = vadd.f32 %v1592_v48, %v6290_v57  ;;  %5189 = vmatprep.mubr.msk.bf16.mxu1 %vm5486_vm0, %v5485_v1  ;;  %v3030_v57 = vsel %vm2227_vm4, %v3020_v32, %v3029_v43 }
 0x17a   : > { %v4989_v63 = vpop.f32.mrf.mxu0  ;;  %v4971_v2 = vpop.f32.mrf.mxu1  ;;  %v3304_v15 = vsel %vm2550_vm5, %v3301_v26, %v3303_v0 }
 0x17c   : > { %v1774_v4 = vpop.f32.mrf.mxu0  ;;  %v1595_v8 = vpop.f32.mrf.mxu1 }
 0x17d   : > { %v6383_v56 = vadd.f32 %v1774_v4, %v1606_v22  ;;  %v1608_v41 = vadd.f32 %v1595_v8, %v6302_v12  ;;  %v3190_v12 = vor.u32 %v3189_v35, %v3186_v9 }
 0x17e   : > { %v4990_v14 = vpop.f32.mrf.mxu0  ;;  %v4972_v20 = vpop.f32.mrf.mxu1 }
 0x17f   : > { %v3191_v32 = vsel %vm2227_vm4, %v3181_v3, %v3190_v12  ;;  %v6437_v3 = vld [vmem:[%s5571_s15 + $0x18] sm:$0xff]  }
 0x180   : > { %v1779_v61 = vpop.f32.mrf.mxu0  ;;  %5208 = vmatmul.mubr.msk.bf16.gmra.mxu0 %vm441_vm1, %v3182_v6  ;;  %v1866_v49 = vpop.f32.mrf.mxu1  ;;  %5190 = vmatmul.mubr.msk.bf16.gmra.mxu1 %vm441_vm1, %v3030_v57  ;;  %v3457_v7 = vrot.slane %v6437_v3, 2  ;;  %v6457_v57 = vld [vmem:[%s5571_s15 + $0x20] sm:$0xff]  }
 0x181   : > { %v6390_v11 = vadd.f32 %v1779_v61, %v1607_v24  ;;  %5211 = vmatprep.mubr.msk.bf16.mxu0 %vm5486_vm0, %v5485_v1  ;;  %v1905_v16 = vadd.f32 %v1866_v49, %v6311_v5  ;;  %5217 = vmatprep.mubr.msk.bf16.mxu1 %vm5486_vm0, %v5485_v1  ;;  %v6410_v5 = vld [vmem:[%s5571_s15 + $0x10] sm:$0xff]  }
 0x182   : > { %v4993_v60 = vpop.f32.mrf.mxu0  ;;  %v4999_v31 = vpop.f32.mrf.mxu1  ;;  %v3455_v45 = vrot.slane %v6410_v5, 2 }
 0x184   : > { %v1782_v30 = vpop.f32.mrf.mxu0  ;;  %v1869_v13 = vpop.f32.mrf.mxu1  ;;  %v3458_v14 = vsel %vm2550_vm5, %v3455_v45, %v3457_v7 }
 0x185   : > { %v6403_v58 = vadd.f32 %v1782_v30, %v1608_v41  ;;  %v1906_v38 = vadd.f32 %v1869_v13, %v6324_v46  ;;  %v3454_v46 = vrot.slane %v6407_v25, 2 }
 0x186   : > { %v4994_v54 = vpop.f32.mrf.mxu0  ;;  %v5000_v33 = vpop.f32.mrf.mxu1 }
 0x187   : > { %v3456_v48 = vsel %vm2550_vm5, %v3454_v46, %v3455_v45  ;;  %v3309_v46 = vrot.slane %v6352_v52, 2  ;;  %v3729_v52 = vshrl.u32 %v6407_v25, 16 }
 0x188   : > { %v2020_v34 = vpop.f32.mrf.mxu0  ;;  %5212 = vmatmul.mubr.msk.bf16.gmra.mxu0 %vm441_vm1, %v3191_v32  ;;  %v1874_v62 = vpop.f32.mrf.mxu1  ;;  %5218 = vmatmul.mubr.msk.bf16.vlgmr.msra.gmra.mxu1 %vm441_vm1, %v3302_v55  ;;  %v6476_v32 = vld [vmem:[%s5571_s15 + $0x28] sm:$0xff]  }
 0x189   : > { %v6418_v10 = vadd.f32 %v2020_v34, %v1905_v16  ;;  %5239 = vmatprep.mubr.msk.bf16.mxu0 %vm5486_vm0, %v5485_v1  ;;  %v1907_v22 = vadd.f32 %v1874_v62, %v6333_v44  ;;  %5260 = vmatpush3.bf16.msra.mxu1 %v5458_v29  ;;  %v5461_v44 = vld [vmem:[%s6834_s4 + $0xb0] sm:$0xff]   ;;  %v3459_v16 = vrot.slane %v6457_v57, 2 }
 0x18a   : > { %v5021_v47 = vpop.f32.mrf.mxu0  ;;  %5221 = vmatprep.mubr.msk.bf16.mxu1 %vm5486_vm0, %v5485_v1  ;;  %v5003_v50 = vpop.f32.mrf.mxu1  ;;  %5303 = vmatprep.subr.bf16.mxu1 %v5485_v1 }
 0x18b   : > { %v3460_v13 = vsel %vm2550_vm5, %v3457_v7, %v3459_v16  ;;  %v3737_v7 = vshrl.u32 %v6410_v5, 16 }
 0x18c   : > { %v2023_v51 = vpop.f32.mrf.mxu0  ;;  %v1877_v23 = vpop.f32.mrf.mxu1 }
 0x18d   : > { %v6430_v18 = vadd.f32 %v2023_v51, %v1906_v38  ;;  %v1908_v39 = vadd.f32 %v1877_v23, %v6346_v17  ;;  %v3305_v17 = vrot.slane %v6222_v37, 2  ;;  %v5465_v51 = vld [vmem:[%s5571_s15 + $0x30] ss:$0 sps:$4 sm:$0x33]  }
 0x18e   : > { %v5022_v19 = vpop.f32.mrf.mxu0  ;;  %v5004_v24 = vpop.f32.mrf.mxu1 }
 0x18f   : > { %v3306_v20 = vsel %vm2550_vm5, %v3303_v0, %v3305_v17  ;;  %v3732_v24 = vshll.u32 %v6407_v25, 16 }
 0x190   : > { %v2028_v63 = vpop.f32.mrf.mxu0  ;;  %5240 = vmatmul.mubr.msk.bf16.vlgmr.msra.gmra.mxu0 %vm441_vm1, %v3456_v48  ;;  %v1882_v43 = vpop.f32.mrf.mxu1  ;;  %5222 = vmatmul.mubr.msk.bf16.gmra.mxu1 %vm441_vm1, %v3304_v15 }
 0x191   : > { %v6442_v2 = vadd.f32 %v2028_v63, %v1907_v22  ;;  %5282 = vmatpush3.bf16.msra.mxu0 %v5461_v44  ;;  %v1909_v4 = vadd.f32 %v1882_v43, %v6355_v28  ;;  %5225 = vmatprep.mubr.msk.bf16.mxu1 %vm5486_vm0, %v5485_v1  ;;  %v3310_v44 = vsel %vm2550_vm5, %v3307_v42, %v3309_v46 }
 0x192   : > { %v5025_v8 = vpop.f32.mrf.mxu0  ;;  %5243 = vmatprep.mubr.msk.bf16.mxu0 %vm5486_vm0, %v5485_v1  ;;  %v5007_v6 = vpop.f32.mrf.mxu1  ;;  %5325 = vmatprep.subr.bf16.mxu0 %v5485_v1 }
 0x194   : > { %v2031_v9 = vpop.f32.mrf.mxu0  ;;  %v1885_v35 = vpop.f32.mrf.mxu1 }
 0x195   : > { %v6453_v41 = vadd.f32 %v2031_v9, %v1908_v39  ;;  %v1910_v28 = vadd.f32 %v1885_v35, %v6367_v59  ;;  %v6501_v39 = vld [vmem:[%s5561_s12 + $0x10] sm:$0xff]  }
 0x196   : > { %v5026_v36 = vpop.f32.mrf.mxu0  ;;  %v5008_v61 = vpop.f32.mrf.mxu1  ;;  %v3609_v6 = vrot.slane %v6501_v39, 2 }
 0x198   : > { %v2036_v49 = vpop.f32.mrf.mxu0  ;;  %5244 = vmatmul.mubr.msk.bf16.gmra.mxu0 %vm441_vm1, %v3458_v14  ;;  %v1890_v37 = vpop.f32.mrf.mxu1  ;;  %5226 = vmatmul.mubr.msk.bf16.gmra.mxu1 %vm441_vm1, %v3306_v20  ;;  %v3731_v14 = vrot.slane %v3729_v52, 2 }
 0x199   : > { %v6462_v12 = vadd.f32 %v2036_v49, %v1909_v4  ;;  %5247 = vmatprep.mubr.msk.bf16.mxu0 %vm5486_vm0, %v5485_v1  ;;  %v1911_v59 = vadd.f32 %v1890_v37, %v6374_v53  ;;  %5229 = vmatprep.mubr.msk.bf16.mxu1 %vm5486_vm0, %v5485_v1  ;;  %v3308_v53 = vsel %vm2550_vm5, %v3305_v17, %v3307_v42  ;;  %v3740_v4 = vshll.u32 %v6410_v5, 16  ;;  %v6527_v42 = vld [vmem:[%s5561_s12 + $0x18] sm:$0xff]  }
 0x19a   : > { %v5029_v60 = vpop.f32.mrf.mxu0  ;;  %v5011_v26 = vpop.f32.mrf.mxu1  ;;  %v3739_v49 = vrot.slane %v3737_v7, 2 }
 0x19b   : > { %v5468_v60 = vld [vmem:[%s6834_s4 + $0xb8] sm:$0xff]  }
 0x19c   : > { %v2039_v27 = vpop.f32.mrf.mxu0  ;;  %v1893_v31 = vpop.f32.mrf.mxu1 }
 0x19d   : > { %v6472_v30 = vadd.f32 %v2039_v27, %v1910_v28  ;;  %v1912_v38 = vadd.f32 %v1893_v31, %v6383_v56  ;;  %v3461_v56 = vrot.slane %v6476_v32, 2  ;;  %v3734_v28 = vrot.slane %v3732_v24, 3 }
 0x19e   : > { %v5030_v54 = vpop.f32.mrf.mxu0  ;;  %v5012_v55 = vpop.f32.mrf.mxu1 }
 0x19f   : > { %v3462_v50 = vsel %vm2550_vm5, %v3459_v16, %v3461_v56  ;;  %v3735_v31 = vor.u32 %v3734_v28, %v3731_v14  ;;  %v3746_v54 = vshrl.u32 %v6437_v3, 16 }
 0x1a0   : > { %v2044_v29 = vpop.f32.mrf.mxu0  ;;  %5248 = vmatmul.mubr.msk.bf16.gmra.mxu0 %vm441_vm1, %v3460_v13  ;;  %v1898_v40 = vpop.f32.mrf.mxu1  ;;  %5230 = vmatmul.mubr.msk.bf16.gmra.mxu1 %vm441_vm1, %v3308_v53  ;;  %v3749_v53 = vshll.u32 %v6437_v3, 16 }
 0x1a1   : > { %v6481_v33 = vadd.f32 %v2044_v29, %v1911_v59  ;;  %5251 = vmatprep.mubr.msk.bf16.mxu0 %vm5486_vm0, %v5485_v1  ;;  %v1913_v34 = vadd.f32 %v1898_v40, %v6390_v11  ;;  %5233 = vmatprep.mubr.msk.bf16.mxu1 %vm5486_vm0, %v5485_v1  ;;  %v6498_v11 = vld [vmem:[%s5561_s12 + $0x8] sm:$0xfc]   ;;  %v3611_v40 = vrot.slane %v6527_v42, 2 }
 0x1a2   : > { %v5033_v62 = vpop.f32.mrf.mxu0  ;;  %v5015_v45 = vpop.f32.mrf.mxu1  ;;  %v3608_v25 = vrot.slane %v6498_v11, 2 }
 0x1a4   : > { %v2047_v22 = vpop.f32.mrf.mxu0  ;;  %v1901_v47 = vpop.f32.mrf.mxu1  ;;  %v3610_v59 = vsel %vm2550_vm5, %v3608_v25, %v3609_v6 }
 0x1a5   : > { %v6491_v0 = vadd.f32 %v2047_v22, %v1912_v38  ;;  %v1914_v23 = vadd.f32 %v1901_v47, %v6403_v58  ;;  %v3463_v58 = vrot.slane %v5465_v51, 2  ;;  %v3748_v22 = vrot.slane %v3746_v54, 2  ;;  %v6585_v54 = vld [vmem:[%s5571_s15 + $0x30] ss:$0 sps:$4 sm:$0x77]  }
 0x1a6   : > { %v5034_v48 = vpop.f32.mrf.mxu0  ;;  %v5016_v19 = vpop.f32.mrf.mxu1  ;;  %v3751_v47 = vrot.slane %v3749_v53, 3 }
 0x1a7   : > { %v3464_v61 = vsel %vm2550_vm5, %v3461_v56, %v3463_v58  ;;  %v6550_v48 = vld [vmem:[%s5561_s12 + $0x20] sm:$0xff]  }
 0x1a8   : > { %v2052_v15 = vpop.f32.mrf.mxu0  ;;  %5252 = vmatmul.mubr.msk.bf16.gmra.mxu0 %vm441_vm1, %v3462_v50  ;;  %v2174_v43 = vpop.f32.mrf.mxu1  ;;  %5234 = vmatmul.mubr.msk.bf16.gmra.mxu1 %vm441_vm1, %v3310_v44  ;;  %v3752_v24 = vor.u32 %v3751_v47, %v3748_v22  ;;  %v3773_v47 = vshrl.u32 %v6585_v54, 16 }
 0x1a9   : > { %v6506_v63 = vadd.f32 %v2052_v15, %v1913_v34  ;;  %5255 = vmatprep.mubr.msk.bf16.mxu0 %vm5486_vm0, %v5485_v1  ;;  %v2213_v8 = vadd.f32 %v2174_v43, %v6418_v10  ;;  %5261 = vmatprep.mubr.msk.bf16.mxu1 %vm5486_vm0, %v5485_v1  ;;  %v3742_v10 = vrot.slane %v3740_v4, 3  ;;  %v3755_v43 = vshrl.u32 %v6457_v57, 16 }
 0x1aa   : > { %v5037_v17 = vpop.f32.mrf.mxu0  ;;  %v5043_v9 = vpop.f32.mrf.mxu1  ;;  %v3613_v4 = vrot.slane %v6550_v48, 2 }
 0x1ac   : > { %v2055_v35 = vpop.f32.mrf.mxu0  ;;  %v2177_v20 = vpop.f32.mrf.mxu1 }
 0x1ad   : > { %v6518_v36 = vadd.f32 %v2055_v35, %v1914_v23  ;;  %v2214_v37 = vadd.f32 %v2177_v20, %v6430_v18  ;;  %v3743_v18 = vor.u32 %v3742_v10, %v3739_v49  ;;  %v3612_v23 = vsel %vm2550_vm5, %v3609_v6, %v3611_v40 }
 0x1ae   : > { %v5038_v16 = vpop.f32.mrf.mxu0  ;;  %v5044_v26 = vpop.f32.mrf.mxu1  ;;  %v3757_v35 = vrot.slane %v3755_v43, 2  ;;  %v3614_v20 = vsel %vm2550_vm5, %v3611_v40, %v3613_v4  ;;  %v5473_v40 = vld [vmem:[%s5561_s12 + $0x30] ss:$0 sps:$4 sm:$0x33]   ;;  %v3893_v43 = vshll.u32 %v6498_v11, 16 }
 0x1af   : > { %v3744_v45 = vsel %vm3727_vm6, %v3735_v31, %v3743_v18  ;;  %v3753_v9 = vsel %vm3727_vm6, %v3743_v18, %v3752_v24 }
 0x1b0   : > { %v2336_v27 = vpop.f32.mrf.mxu0  ;;  %5256 = vmatmul.mubr.msk.bf16.gmra.mxu0 %vm441_vm1, %v3464_v61  ;;  %v2182_v13 = vpop.f32.mrf.mxu1  ;;  %5262 = vmatmul.mubr.msk.bf16.vlgmr.msra.gmra.mxu1 %vm441_vm1, %v3610_v59  ;;  %v6570_v61 = vld [vmem:[%s5561_s12 + $0x28] sm:$0xff]   ;;  %v3764_v59 = vshrl.u32 %v6476_v32, 16 }
 0x1b1   : > { %v6530_v38 = vadd.f32 %v2336_v27, %v2213_v8  ;;  %5283 = vmatprep.mubr.msk.bf16.mxu0 %vm5486_vm0, %v5485_v1  ;;  %v2215_v55 = vadd.f32 %v2182_v13, %v6442_v2  ;;  %5304 = vmatpush3.bf16.msra.mxu1 %v5468_v60  ;;  %v5470_v2 = vld [vmem:[%s6834_s4 + $0xc0] sm:$0xff]   ;;  %v3767_v60 = vshll.u32 %v6476_v32, 16  ;;  %v3615_v31 = vrot.slane %v6570_v61, 2 }
 0x1b2   : > { %v5065_v29 = vpop.f32.mrf.mxu0  ;;  %5265 = vmatprep.mubr.msk.bf16.mxu1 %vm5486_vm0, %v5485_v1  ;;  %v5047_v56 = vpop.f32.mrf.mxu1 }
 0x1b3   : > { %v3766_v56 = vrot.slane %v3764_v59, 2 }
 0x1b4   : > { %v2339_v34 = vpop.f32.mrf.mxu0  ;;  %v2185_v62 = vpop.f32.mrf.mxu1 }
 0x1b5   : > { %v6541_v46 = vadd.f32 %v2339_v34, %v2214_v37  ;;  %v2216_v50 = vadd.f32 %v2185_v62, %v6453_v41  ;;  %v3758_v41 = vshll.u32 %v6457_v57, 16  ;;  %v3769_v34 = vrot.slane %v3767_v60, 3 }
 0x1b6   : > { %v5066_v51 = vpop.f32.mrf.mxu0  ;;  %v5048_v44 = vpop.f32.mrf.mxu1 }
 0x1b7   : > { %v3760_v14 = vrot.slane %v3758_v41, 3  ;;  %v3770_v44 = vor.u32 %v3769_v34, %v3766_v56  ;;  %v3898_v41 = vshrl.u32 %v6501_v39, 16 }
 0x1b8   : > { %v2344_v19 = vpop.f32.mrf.mxu0  ;;  %5284 = vmatmul.mubr.msk.bf16.vlgmr.msra.gmra.mxu0 %vm441_vm1, %v3744_v45  ;;  %v2190_v15 = vpop.f32.mrf.mxu1  ;;  %5266 = vmatmul.mubr.msk.bf16.gmra.mxu1 %vm441_vm1, %v3612_v23  ;;  %v3616_v45 = vsel %vm2550_vm5, %v3613_v4, %v3615_v31 }
 0x1b9   : > { %v6553_v52 = vadd.f32 %v2344_v19, %v2215_v55  ;;  %5326 = vmatpush3.bf16.msra.mxu0 %v5470_v2  ;;  %v2217_v58 = vadd.f32 %v2190_v15, %v6462_v12  ;;  %5269 = vmatprep.mubr.msk.bf16.mxu1 %vm5486_vm0, %v5485_v1  ;;  %v3890_v19 = vshrl.u32 %v6498_v11, 16  ;;  %v3895_v11 = vrot.slane %v3893_v43, 3 }
 0x1ba   : > { %v5069_v7 = vpop.f32.mrf.mxu0  ;;  %5287 = vmatprep.mubr.msk.bf16.mxu0 %vm5486_vm0, %v5485_v1  ;;  %v5051_v8 = vpop.f32.mrf.mxu1 }
 0x1bb   : > { %v3775_v8 = vrot.slane %v3773_v47, 2 }
 0x1bc   : > { %v2347_v17 = vpop.f32.mrf.mxu0  ;;  %v2193_v25 = vpop.f32.mrf.mxu1 }
 0x1bd   : > { %v6564_v6 = vadd.f32 %v2347_v17, %v2216_v50  ;;  %v2218_v12 = vadd.f32 %v2193_v25, %v6472_v30  ;;  %v3761_v30 = vor.u32 %v3760_v14, %v3757_v35  ;;  %v3776_v50 = vshll.u32 %v6585_v54, 16 }
 0x1be   : > { %v5070_v28 = vpop.f32.mrf.mxu0  ;;  %v5052_v49 = vpop.f32.mrf.mxu1  ;;  %v3892_v14 = vrot.slane %v3890_v19, 2 }
 0x1bf   : > { %v3762_v29 = vsel %vm3727_vm6, %v3752_v24, %v3761_v30  ;;  %v3778_v17 = vrot.slane %v3776_v50, 3 }
 0x1c0   : > { %v2352_v10 = vpop.f32.mrf.mxu0  ;;  %5288 = vmatmul.mubr.msk.bf16.gmra.mxu0 %vm441_vm1, %v3753_v9  ;;  %v2198_v37 = vpop.f32.mrf.mxu1  ;;  %5270 = vmatmul.mubr.msk.bf16.gmra.mxu1 %vm441_vm1, %v3614_v20  ;;  %v3900_v20 = vrot.slane %v3898_v41, 2 }
 0x1c1   : > { %v6573_v16 = vadd.f32 %v2352_v10, %v2217_v58  ;;  %5291 = vmatprep.mubr.msk.bf16.mxu0 %vm5486_vm0, %v5485_v1  ;;  %v2219_v26 = vadd.f32 %v2198_v37, %v6481_v33  ;;  %5273 = vmatprep.mubr.msk.bf16.mxu1 %vm5486_vm0, %v5485_v1  ;;  %v3901_v58 = vshll.u32 %v6501_v39, 16  ;;  %v3779_v37 = vor.u32 %v3778_v17, %v3775_v8 }
 0x1c2   : > { %v5073_v27 = vpop.f32.mrf.mxu0  ;;  %v5055_v13 = vpop.f32.mrf.mxu1 }
 0x1c3   : > { %v3903_v49 = vrot.slane %v3901_v58, 3 }
 0x1c4   : > { %v2355_v18 = vpop.f32.mrf.mxu0  ;;  %v2201_v53 = vpop.f32.mrf.mxu1 }
 0x1c5   : > { %v6587_v55 = vadd.f32 %v2355_v18, %v2218_v12  ;;  %v2220_v33 = vadd.f32 %v2201_v53, %v6491_v0  ;;  %v3617_v0 = vrot.slane %v5473_v40, 2  ;;  %v3904_v13 = vor.u32 %v3903_v49, %v3900_v20  ;;  %v4046_v18 = vld [vmem:[%s5571_s15 + $0x8] sm:$0x8] }
 0x1c6   : > { %v5074_v62 = vpop.f32.mrf.mxu0  ;;  %v5056_v2 = vpop.f32.mrf.mxu1  ;;  %v3780_v40 = vsel %vm3727_vm6, %v3770_v44, %v3779_v37  ;;  %v3925_v20 = vshrl.u32 %v6570_v61, 16  ;;  %v3928_v49 = vshll.u32 %v6570_v61, 16 }
 0x1c7   : > { %v3618_v35 = vsel %vm2550_vm5, %v3615_v31, %v3617_v0  ;;  %v3896_v31 = vor.u32 %v3895_v11, %v3892_v14 }
 0x1c8   : > { %v2360_v22 = vpop.f32.mrf.mxu0  ;;  %5292 = vmatmul.mubr.msk.bf16.gmra.mxu0 %vm441_vm1, %v3762_v29  ;;  %v2206_v51 = vpop.f32.mrf.mxu1  ;;  %5274 = vmatmul.mubr.msk.bf16.gmra.mxu1 %vm441_vm1, %v3616_v45 }
 0x1c9   : > { %v6596_v23 = vadd.f32 %v2360_v22, %v2219_v26  ;;  %5295 = vmatprep.mubr.msk.bf16.mxu0 %vm5486_vm0, %v5485_v1  ;;  %v2221_v15 = vadd.f32 %v2206_v51, %v6506_v63  ;;  %5277 = vmatprep.mubr.msk.bf16.mxu1 %vm5486_vm0, %v5485_v1  ;;  %v3771_v63 = vsel %vm3727_vm6, %v3761_v30, %v3770_v44  ;;  %v3910_v30 = vshll.u32 %v6527_v42, 16 }
 0x1ca   : > { %v5077_v24 = vpop.f32.mrf.mxu0  ;;  %v5059_v7 = vpop.f32.mrf.mxu1  ;;  %v3905_v2 = vsel %vm3727_vm6, %v3896_v31, %v3904_v13  ;;  %v5476_v31 = vld [vmem:[%s5561_s12 + $0x30] ss:$0 sps:$4 sm:$0x77]  }
 0x1cb   : > { %v3912_v62 = vrot.slane %v3910_v30, 3  ;;  %v3919_v24 = vshll.u32 %v6550_v48, 16 }
 0x1cc   : > { %v2363_v4 = vpop.f32.mrf.mxu0  ;;  %v2209_v25 = vpop.f32.mrf.mxu1 }
 0x1cd   : > { %v6608_v9 = vadd.f32 %v2363_v4, %v2220_v33  ;;  %v2222_v12 = vadd.f32 %v2209_v25, %v6518_v36  ;;  %v3907_v36 = vshrl.u32 %v6527_v42, 16  ;;  %v4616_v42 = vcombine.low %v4046_v18, %v6401_v21 }
 0x1ce   : > { %v5078_v28 = vpop.f32.mrf.mxu0  ;;  %v5060_v39 = vpop.f32.mrf.mxu1  ;;  %v4052_v21 = vrot.slane %v6410_v5, 3  ;;  %v3921_v25 = vrot.slane %v3919_v24, 3 }
 0x1cf   : > { %v3909_v33 = vrot.slane %v3907_v36, 2  ;;  %v4051_v44 = vrot.slane %v4616_v42, 3 }
 0x1d0   : > { %v2368_v10 = vpop.f32.mrf.mxu0  ;;  %5296 = vmatmul.mubr.msk.bf16.gmra.mxu0 %vm441_vm1, %v3771_v63  ;;  %v2497_v60 = vpop.f32.mrf.mxu1  ;;  %5278 = vmatmul.mubr.msk.bf16.gmra.mxu1 %vm441_vm1, %v3618_v35 }
 0x1d1   : > { %v6614_v59 = vadd.f32 %v2368_v10, %v2221_v15  ;;  %5299 = vmatprep.mubr.msk.bf16.mxu0 %vm5486_vm0, %v5485_v1  ;;  %v2536_v26 = vadd.f32 %v2497_v60, %v6530_v38  ;;  %5305 = vmatprep.mubr.msk.bf16.mxu1 %vm5486_vm0, %v5485_v1  ;;  %v3913_v0 = vor.u32 %v3912_v62, %v3909_v33  ;;  %v3916_v15 = vshrl.u32 %v6550_v48, 16 }
 0x1d2   : > { %v5081_v27 = vpop.f32.mrf.mxu0  ;;  %v5087_v53 = vpop.f32.mrf.mxu1  ;;  %v4053_v4 = vsel %vm4050_vm7, %v4051_v44, %v4052_v21  ;;  %v3934_v33 = vshrl.u32 %v5476_v31, 16  ;;  %v3937_v62 = vshll.u32 %v5476_v31, 16 }
 0x1d3   : > { %v3918_v17 = vrot.slane %v3916_v15, 2  ;;  %v3930_v27 = vrot.slane %v3928_v49, 3  ;;  %v4058_v15 = vrot.slane %v6476_v32, 3 }
 0x1d4   : > { %v2371_v29 = vpop.f32.mrf.mxu0  ;;  %v2500_v34 = vpop.f32.mrf.mxu1 }
 0x1d5   : > { %v6626_v56 = vadd.f32 %v2371_v29, %v2222_v12  ;;  %v2537_v38 = vadd.f32 %v2500_v34, %v6541_v46  ;;  %v4054_v12 = vrot.slane %v6437_v3, 3  ;;  %v3922_v11 = vor.u32 %v3921_v25, %v3918_v17 }
 0x1d6   : > { %v5082_v45 = vpop.f32.mrf.mxu0  ;;  %v5088_v22 = vpop.f32.mrf.mxu1 }
 0x1d7   : > { %v4055_v36 = vsel %vm4050_vm7, %v4052_v21, %v4054_v12  ;;  %v3923_v30 = vsel %vm3727_vm6, %v3913_v0, %v3922_v11 }
 0x1d8   : > { %v2617_v47 = vpop.f32.mrf.mxu0  ;;  %5300 = vmatmul.mubr.msk.bf16.gmra.mxu0 %vm441_vm1, %v3780_v40  ;;  %v2505_v50 = vpop.f32.mrf.mxu1  ;;  %5306 = vmatmul.mubr.msk.bf16.vlgmr.msra.gmra.mxu1 %vm441_vm1, %v3905_v2 }
 0x1d9   : > { %v6632_v51 = vadd.f32 %v2617_v47, %v2536_v26  ;;  %5327 = vmatprep.mubr.msk.bf16.mxu0 %vm5486_vm0, %v5485_v1  ;;  %v2538_v46 = vadd.f32 %v2505_v50, %v6553_v52  ;;  %5309 = vmatprep.mubr.msk.bf16.mxu1 %vm5486_vm0, %v5485_v1  ;;  %v3914_v52 = vsel %vm3727_vm6, %v3904_v13, %v3913_v0  ;;  %v3927_v26 = vrot.slane %v3925_v20, 2 }
 0x1da   : > { %v5109_v19 = vpop.f32.mrf.mxu0  ;;  %v5091_v43 = vpop.f32.mrf.mxu1  ;;  %v3939_v0 = vrot.slane %v3937_v62, 3 }
 0x1db   : > { %v3931_v34 = vor.u32 %v3930_v27, %v3927_v26 }
 0x1dc   : > { %v2620_v41 = vpop.f32.mrf.mxu0  ;;  %v2508_v58 = vpop.f32.mrf.mxu1 }
 0x1dd   : > { %v6643_v7 = vadd.f32 %v2620_v41, %v2537_v38  ;;  %v2539_v5 = vadd.f32 %v2508_v58, %v6564_v6 }
 0x1de   : > { %v5110_v8 = vpop.f32.mrf.mxu0  ;;  %v5092_v35 = vpop.f32.mrf.mxu1 }
 0x1e0   : > { %v2625_v63 = vpop.f32.mrf.mxu0  ;;  %5328 = vmatmul.mubr.msk.bf16.vlgmr.msra.gmra.mxu0 %vm441_vm1, %v4053_v4  ;;  %v2513_v14 = vpop.f32.mrf.mxu1  ;;  %5310 = vmatmul.mubr.msk.bf16.gmra.mxu1 %vm441_vm1, %v3914_v52 }
 0x1e1   : > { %v6649_v48 = vadd.f32 %v2625_v63, %v2538_v46  ;;  %5331 = vmatprep.mubr.msk.bf16.mxu0 %vm5486_vm0, %v5485_v1  ;;  %v2540_v6 = vadd.f32 %v2513_v14, %v6573_v16  ;;  %5313 = vmatprep.mubr.msk.bf16.mxu1 %vm5486_vm0, %v5485_v1  ;;  %v4060_v14 = vrot.slane %v6585_v54, 3 }
 0x1e2   : > { %v5113_v28 = vpop.f32.mrf.mxu0  ;;  %v5095_v39 = vpop.f32.mrf.mxu1 }
 0x1e3   : > { %v4061_v49 = vsel %vm4050_vm7, %v4058_v15, %v4060_v14 }
 0x1e4   : > { %v2628_v10 = vpop.f32.mrf.mxu0  ;;  %v2516_v37 = vpop.f32.mrf.mxu1 }
 0x1e5   : > { %v6660_v60 = vadd.f32 %v2628_v10, %v2539_v5  ;;  %v2541_v3 = vadd.f32 %v2516_v37, %v6587_v55  ;;  %v4056_v55 = vrot.slane %v6457_v57, 3  ;;  %v3932_v57 = vsel %vm3727_vm6, %v3922_v11, %v3931_v34 }
 0x1e6   : > { %v5114_v16 = vpop.f32.mrf.mxu0  ;;  %v5096_v13 = vpop.f32.mrf.mxu1 }
 0x1e7   : > { %v4057_v22 = vsel %vm4050_vm7, %v4054_v12, %v4056_v55  ;;  %v4059_v8 = vsel %vm4050_vm7, %v4056_v55, %v4058_v15 }
 0x1e8   : > { %v2633_v18 = vpop.f32.mrf.mxu0  ;;  %5332 = vmatmul.mubr.msk.bf16.gmra.mxu0 %vm441_vm1, %v4055_v36  ;;  %v2521_v61 = vpop.f32.mrf.mxu1  ;;  %5314 = vmatmul.mubr.msk.bf16.gmra.mxu1 %vm441_vm1, %v3923_v30 }
 0x1e9   : > { %v6667_v53 = vadd.f32 %v2633_v18, %v2540_v6  ;;  %5335 = vmatprep.mubr.msk.bf16.mxu0 %vm5486_vm0, %v5485_v1  ;;  %v2542_v29 = vadd.f32 %v2521_v61, %v6596_v23  ;;  %5317 = vmatprep.mubr.msk.bf16.mxu1 %vm5486_vm0, %v5485_v1  ;;  %v3936_v23 = vrot.slane %v3934_v33, 2 }
 0x1ea   : > { %v5117_v40 = vpop.f32.mrf.mxu0  ;;  %v5099_v42 = vpop.f32.mrf.mxu1 }
 0x1eb   : > { %v3940_v43 = vor.u32 %v3939_v0, %v3936_v23 }
 0x1ec   : > { %v2636_v38 = vpop.f32.mrf.mxu0  ;;  %v2524_v45 = vpop.f32.mrf.mxu1 }
 0x1ed   : > { %v6676_v2 = vadd.f32 %v2636_v38, %v2541_v3  ;;  %v2543_v47 = vadd.f32 %v2524_v45, %v6608_v9  ;;  %v3941_v25 = vsel %vm3727_vm6, %v3931_v34, %v3940_v43 }
 0x1ee   : > { %v5118_v50 = vpop.f32.mrf.mxu0  ;;  %v5100_v44 = vpop.f32.mrf.mxu1 }
 0x1f0   : > { %v2641_v21 = vpop.f32.mrf.mxu0  ;;  %5336 = vmatmul.mubr.msk.bf16.gmra.mxu0 %vm441_vm1, %v4057_v22  ;;  %v2529_v46 = vpop.f32.mrf.mxu1  ;;  %5318 = vmatmul.mubr.msk.bf16.gmra.mxu1 %vm441_vm1, %v3932_v57 }
 0x1f1   : > { %v2662_v19 = vadd.f32 %v2641_v21, %v2542_v29  ;;  %5339 = vmatprep.mubr.msk.bf16.mxu0 %vm5486_vm0, %v5485_v1  ;;  %v2544_v9 = vadd.f32 %v2529_v46, %v6614_v59  ;;  %5321 = vmatprep.mubr.msk.bf16.mxu1 %vm5486_vm0, %v5485_v1 }
 0x1f2   : > { %v5121_v24 = vpop.f32.mrf.mxu0  ;;  %v5103_v41 = vpop.f32.mrf.mxu1 }
 0x1f4   : > { %v2644_v58 = vpop.f32.mrf.mxu0  ;;  %v2532_v4 = vpop.f32.mrf.mxu1 }
 0x1f5   : > { %v2663_v5 = vadd.f32 %v2644_v58, %v2543_v47  ;;  %v2545_v52 = vadd.f32 %v2532_v4, %v6626_v56 }
 0x1f6   : > { %v5122_v17 = vpop.f32.mrf.mxu0  ;;  %v5104_v35 = vpop.f32.mrf.mxu1 }
 0x1f8   : > { %v2649_v32 = vpop.f32.mrf.mxu0  ;;  %5340 = vmatmul.mubr.msk.bf16.gmra.mxu0 %vm441_vm1, %v4059_v8  ;;  %v2771_v63 = vpop.f32.mrf.mxu1  ;;  %5322 = vmatmul.mubr.msk.bf16.gmra.mxu1 %vm441_vm1, %v3941_v25 }
 0x1f9   : > { %v2664_v59 = vadd.f32 %v2649_v32, %v2544_v9  ;;  %5343 = vmatprep.mubr.msk.bf16.mxu0 %vm5486_vm0, %v5485_v1  ;;  %v2810_v12 = vadd.f32 %v2771_v63, %v6632_v51 }
 0x1fa   : > { %v5125_v6 = vpop.f32.mrf.mxu0  ;;  %v5131_v56 = vpop.f32.mrf.mxu1 }
 0x1fc   : > { %v2652_v28 = vpop.f32.mrf.mxu0  ;;  %v2774_v20 = vpop.f32.mrf.mxu1 }
 0x1fd   : > { %v2665_v11 = vadd.f32 %v2652_v28, %v2545_v52  ;;  %v2811_v39 = vadd.f32 %v2774_v20, %v6643_v7 }
 0x1fe   : > { %v5126_v10 = vpop.f32.mrf.mxu0  ;;  %v5132_v37 = vpop.f32.mrf.mxu1 }
 0x200   : > { %v2925_v36 = vpop.f32.mrf.mxu0  ;;  %5344 = vmatmul.mubr.msk.bf16.gmra.mxu0 %vm441_vm1, %v4061_v49  ;;  %v2779_v3 = vpop.f32.mrf.mxu1 }
 0x201   : > { %v2964_v1 = vadd.f32 %v2925_v36, %v2810_v12  ;;  %v2812_v54 = vadd.f32 %v2779_v3, %v6649_v48 }
 0x202   : > { %v5153_v16 = vpop.f32.mrf.mxu0  ;;  %v5135_v51 = vpop.f32.mrf.mxu1 }
 0x204   : > { %v2928_v30 = vpop.f32.mrf.mxu0  ;;  %v2782_v26 = vpop.f32.mrf.mxu1 }
 0x205   : > { %v2965_v27 = vadd.f32 %v2928_v30, %v2811_v39  ;;  %v2813_v31 = vadd.f32 %v2782_v26, %v6660_v60 }
 0x206   : > { %v5154_v13 = vpop.f32.mrf.mxu0  ;;  %v5136_v18 = vpop.f32.mrf.mxu1 }
 0x208   : > { %v2933_v61 = vpop.f32.mrf.mxu0  ;;  %v2787_v7 = vpop.f32.mrf.mxu1 }
 0x209   : > { %v2966_v55 = vadd.f32 %v2933_v61, %v2812_v54  ;;  %v2814_v29 = vadd.f32 %v2787_v7, %v6667_v53 }
 0x20a   : > { %v5157_v40 = vpop.f32.mrf.mxu0  ;;  %v5139_v34 = vpop.f32.mrf.mxu1 }
 0x20c   : > { %v2936_v33 = vpop.f32.mrf.mxu0  ;;  %v2790_v62 = vpop.f32.mrf.mxu1 }
 0x20d   : > { %v2967_v42 = vadd.f32 %v2936_v33, %v2813_v31  ;;  %v2815_v48 = vadd.f32 %v2790_v62, %v6676_v2 }
 0x20e   : > { %v5158_v38 = vpop.f32.mrf.mxu0  ;;  %v5140_v45 = vpop.f32.mrf.mxu1 }
 0x210   : > { %v2941_v22 = vpop.f32.mrf.mxu0  ;;  %v2795_v47 = vpop.f32.mrf.mxu1 }
 0x211   : > { %v2968_v50 = vadd.f32 %v2941_v22, %v2814_v29  ;;  %v2816_v60 = vadd.f32 %v2795_v47, %v2662_v19 }
 0x212   : > { %v5161_v57 = vpop.f32.mrf.mxu0  ;;  %v5143_v23 = vpop.f32.mrf.mxu1 }
 0x214   : > { %v2944_v0 = vpop.f32.mrf.mxu0  ;;  %v2798_v44 = vpop.f32.mrf.mxu1 }
 0x215   : > { %v2969_v21 = vadd.f32 %v2944_v0, %v2815_v48  ;;  %v2817_v46 = vadd.f32 %v2798_v44, %v2663_v5 }
 0x216   : > { %v5162_v53 = vpop.f32.mrf.mxu0  ;;  %v5144_v15 = vpop.f32.mrf.mxu1 }
 0x218   : > { %v2949_v9 = vpop.f32.mrf.mxu0  ;;  %v2803_v24 = vpop.f32.mrf.mxu1 }
 0x219   : > { %v2970_v43 = vadd.f32 %v2949_v9, %v2816_v60  ;;  %v2818_v41 = vadd.f32 %v2803_v24, %v2664_v59 }
 0x21a   : > { %v5165_v58 = vpop.f32.mrf.mxu0  ;;  %v5147_v2 = vpop.f32.mrf.mxu1 }
 0x21c   : > { %v2952_v4 = vpop.f32.mrf.mxu0  ;;  %v2806_v8 = vpop.f32.mrf.mxu1 }
 0x21d   : > { %v2971_v52 = vadd.f32 %v2952_v4, %v2817_v46  ;;  %v2819_v17 = vadd.f32 %v2806_v8, %v2665_v11 }
 0x21e   : > { %v5166_v25 = vpop.f32.mrf.mxu0  ;;  %v5148_v19 = vpop.f32.mrf.mxu1 }
 0x220   : > { %v2957_v35 = vpop.f32.mrf.mxu0  ;;  %v3086_v63 = vpop.f32.mrf.mxu1 }
 0x221   : > { %v2972_v32 = vadd.f32 %v2957_v35, %v2818_v41  ;;  %v3125_v14 = vadd.f32 %v3086_v63, %v2964_v1 }
 0x222   : > { %v5169_v12 = vpop.f32.mrf.mxu0  ;;  %v5175_v5 = vpop.f32.mrf.mxu1 }
 0x224   : > { %v2960_v6 = vpop.f32.mrf.mxu0  ;;  %v3089_v28 = vpop.f32.mrf.mxu1 }
 0x225   : > { %v2973_v56 = vadd.f32 %v2960_v6, %v2819_v17  ;;  %v3126_v20 = vadd.f32 %v3089_v28, %v2965_v27 }
 0x226   : > { %v5170_v49 = vpop.f32.mrf.mxu0  ;;  %v5176_v59 = vpop.f32.mrf.mxu1 }
 0x228   : > { %v3247_v39 = vpop.f32.mrf.mxu0  ;;  %v3094_v10 = vpop.f32.mrf.mxu1 }
 0x229   : > { %v3286_v37 = vadd.f32 %v3247_v39, %v3125_v14  ;;  %v3127_v36 = vadd.f32 %v3094_v10, %v2966_v55 }
 0x22a   : > { %v5197_v3 = vpop.f32.mrf.mxu0  ;;  %v5179_v11 = vpop.f32.mrf.mxu1 }
 0x22c   : > { %v3250_v54 = vpop.f32.mrf.mxu0  ;;  %v3097_v16 = vpop.f32.mrf.mxu1 }
 0x22d   : > { %v3287_v51 = vadd.f32 %v3250_v54, %v3126_v20  ;;  %v3128_v30 = vadd.f32 %v3097_v16, %v2967_v42 }
 0x22e   : > { %v5198_v26 = vpop.f32.mrf.mxu0  ;;  %v5180_v1 = vpop.f32.mrf.mxu1 }
 0x230   : > { %v3255_v31 = vpop.f32.mrf.mxu0  ;;  %v3102_v13 = vpop.f32.mrf.mxu1 }
 0x231   : > { %v3288_v18 = vadd.f32 %v3255_v31, %v3127_v36  ;;  %v3129_v61 = vadd.f32 %v3102_v13, %v2968_v50 }
 0x232   : > { %v5201_v7 = vpop.f32.mrf.mxu0  ;;  %v5183_v27 = vpop.f32.mrf.mxu1 }
 0x234   : > { %v3258_v29 = vpop.f32.mrf.mxu0  ;;  %v3105_v40 = vpop.f32.mrf.mxu1 }
 0x235   : > { %v3289_v34 = vadd.f32 %v3258_v29, %v3128_v30  ;;  %v3130_v33 = vadd.f32 %v3105_v40, %v2969_v21 }
 0x236   : > { %v5202_v62 = vpop.f32.mrf.mxu0  ;;  %v5184_v55 = vpop.f32.mrf.mxu1 }
 0x238   : > { %v3263_v48 = vpop.f32.mrf.mxu0  ;;  %v3110_v38 = vpop.f32.mrf.mxu1 }
 0x239   : > { %v3290_v45 = vadd.f32 %v3263_v48, %v3129_v61  ;;  %v3131_v22 = vadd.f32 %v3110_v38, %v2970_v43 }
 0x23a   : > { %v5205_v47 = vpop.f32.mrf.mxu0  ;;  %v5187_v42 = vpop.f32.mrf.mxu1 }
 0x23c   : > { %v3266_v60 = vpop.f32.mrf.mxu0  ;;  %v3113_v57 = vpop.f32.mrf.mxu1 }
 0x23d   : > { %v3291_v23 = vadd.f32 %v3266_v60, %v3130_v33  ;;  %v3132_v0 = vadd.f32 %v3113_v57, %v2971_v52 }
 0x23e   : > { %v5206_v44 = vpop.f32.mrf.mxu0  ;;  %v5188_v50 = vpop.f32.mrf.mxu1 }
 0x240   : > { %v3271_v46 = vpop.f32.mrf.mxu0  ;;  %v3118_v53 = vpop.f32.mrf.mxu1 }
 0x241   : > { %v3292_v15 = vadd.f32 %v3271_v46, %v3131_v22  ;;  %v3133_v9 = vadd.f32 %v3118_v53, %v2972_v32 }
 0x242   : > { %v5209_v24 = vpop.f32.mrf.mxu0  ;;  %v5191_v21 = vpop.f32.mrf.mxu1 }
 0x244   : > { %v3274_v41 = vpop.f32.mrf.mxu0  ;;  %v3121_v58 = vpop.f32.mrf.mxu1 }
 0x245   : > { %v3293_v2 = vadd.f32 %v3274_v41, %v3132_v0  ;;  %v3134_v4 = vadd.f32 %v3121_v58, %v2973_v56 }
 0x246   : > { %v5210_v8 = vpop.f32.mrf.mxu0  ;;  %v5192_v43 = vpop.f32.mrf.mxu1 }
 0x248   : > { %v3279_v17 = vpop.f32.mrf.mxu0  ;;  %v3366_v19 = vpop.f32.mrf.mxu1 }
 0x249   : > { %v3294_v25 = vadd.f32 %v3279_v17, %v3133_v9  ;;  %v3405_v35 = vadd.f32 %v3366_v19, %v3286_v37 }
 0x24a   : > { %v5213_v63 = vpop.f32.mrf.mxu0  ;;  %v5219_v52 = vpop.f32.mrf.mxu1 }
 0x24c   : > { %v3282_v14 = vpop.f32.mrf.mxu0  ;;  %v3369_v5 = vpop.f32.mrf.mxu1 }
 0x24d   : > { %v3295_v12 = vadd.f32 %v3282_v14, %v3134_v4  ;;  %v3406_v6 = vadd.f32 %v3369_v5, %v3287_v51 }
 0x24e   : > { %v5214_v28 = vpop.f32.mrf.mxu0  ;;  %v5220_v32 = vpop.f32.mrf.mxu1 }
 0x250   : > { %v3520_v20 = vpop.f32.mrf.mxu0  ;;  %v3374_v49 = vpop.f32.mrf.mxu1 }
 0x251   : > { %v6705_v59 = vadd.f32 %v3520_v20, %v3405_v35  ;;  %v3407_v39 = vadd.f32 %v3374_v49, %v3288_v18 }
 0x252   : > { %v5241_v56 = vpop.f32.mrf.mxu0  ;;  %v5223_v10 = vpop.f32.mrf.mxu1 }
 0x254   : > { %v3523_v36 = vpop.f32.mrf.mxu0  ;;  %v3377_v3 = vpop.f32.mrf.mxu1 }
 0x255   : > { %v6707_v11 = vadd.f32 %v3523_v36, %v3406_v6  ;;  %v3408_v37 = vadd.f32 %v3377_v3, %v3289_v34 }
 0x256   : > { %v5242_v54 = vpop.f32.mrf.mxu0  ;;  %v5224_v16 = vpop.f32.mrf.mxu1 }
 0x258   : > { %v3528_v30 = vpop.f32.mrf.mxu0  ;;  %v3382_v26 = vpop.f32.mrf.mxu1 }
 0x259   : > { %v6709_v1 = vadd.f32 %v3528_v30, %v3407_v39  ;;  %v3409_v51 = vadd.f32 %v3382_v26, %v3290_v45 }
 0x25a   : > { %v5245_v31 = vpop.f32.mrf.mxu0  ;;  %v5227_v13 = vpop.f32.mrf.mxu1 }
 0x25c   : > { %v3531_v61 = vpop.f32.mrf.mxu0  ;;  %v3385_v7 = vpop.f32.mrf.mxu1 }
 0x25d   : > { %v6711_v27 = vadd.f32 %v3531_v61, %v3408_v37  ;;  %v3410_v18 = vadd.f32 %v3385_v7, %v3291_v23 }
 0x25e   : > { %v5246_v29 = vpop.f32.mrf.mxu0  ;;  %v5228_v40 = vpop.f32.mrf.mxu1 }
 0x260   : > { %v3536_v33 = vpop.f32.mrf.mxu0  ;;  %v3390_v62 = vpop.f32.mrf.mxu1 }
 0x261   : > { %v6713_v55 = vadd.f32 %v3536_v33, %v3409_v51  ;;  %v3411_v34 = vadd.f32 %v3390_v62, %v3292_v15 }
 0x262   : > { %v5249_v48 = vpop.f32.mrf.mxu0  ;;  %v5231_v38 = vpop.f32.mrf.mxu1 }
 0x264   : > { %v3539_v22 = vpop.f32.mrf.mxu0  ;;  %v3393_v47 = vpop.f32.mrf.mxu1 }
 0x265   : > { %v6715_v42 = vadd.f32 %v3539_v22, %v3410_v18  ;;  %v3412_v45 = vadd.f32 %v3393_v47, %v3293_v2 }
 0x266   : > { %v5250_v60 = vpop.f32.mrf.mxu0  ;;  %v5232_v57 = vpop.f32.mrf.mxu1 }
 0x268   : > { %v3544_v0 = vpop.f32.mrf.mxu0  ;;  %v3398_v44 = vpop.f32.mrf.mxu1 }
 0x269   : > { %v6717_v50 = vadd.f32 %v3544_v0, %v3411_v34  ;;  %v3413_v23 = vadd.f32 %v3398_v44, %v3294_v25 }
 0x26a   : > { %v5253_v46 = vpop.f32.mrf.mxu0  ;;  %v5235_v53 = vpop.f32.mrf.mxu1 }
 0x26c   : > { %v3547_v9 = vpop.f32.mrf.mxu0  ;;  %v3401_v24 = vpop.f32.mrf.mxu1 }
 0x26d   : > { %v6719_v21 = vadd.f32 %v3547_v9, %v3412_v45  ;;  %v3414_v15 = vadd.f32 %v3401_v24, %v3295_v12 }
 0x26e   : > { %v5254_v41 = vpop.f32.mrf.mxu0  ;;  %v5236_v58 = vpop.f32.mrf.mxu1 }
 0x26f   : > { %v6754_v58 = vld [vmem:[%s6835_s5] ss:$0 sm:$0xff] }
 0x270   : > { %v3552_v4 = vpop.f32.mrf.mxu0  ;;  %v3674_v2 = vpop.f32.mrf.mxu1 }
 0x271   : > { %v6721_v8 = vadd.f32 %v3552_v4, %v3413_v23  ;;  %v3713_v57 = vadd.f32 %v3674_v2, %v6705_v59  ;;  %v6759_v2 = vld [vmem:[%s6836_s6] ss:$0 sm:$0xff] }
 0x272   : > { %v5257_v43 = vpop.f32.mrf.mxu0  ;;  %v5263_v17 = vpop.f32.mrf.mxu1 }
 0x274   : > { %v3555_v19 = vpop.f32.mrf.mxu0  ;;  %v3677_v63 = vpop.f32.mrf.mxu1 }
 0x275   : > { %v6723_v35 = vadd.f32 %v3555_v19, %v3414_v15  ;;  %v3714_v9 = vadd.f32 %v3677_v63, %v6707_v11 }
 0x276   : > { %v5258_v25 = vpop.f32.mrf.mxu0  ;;  %v5264_v52 = vpop.f32.mrf.mxu1 }
 0x278   : > { %v3836_v14 = vpop.f32.mrf.mxu0  ;;  %v3682_v5 = vpop.f32.mrf.mxu1 }
 0x279   : > { %v3875_v23 = vadd.f32 %v3836_v14, %v3713_v57  ;;  %v3715_v11 = vadd.f32 %v3682_v5, %v6709_v1 }
 0x27a   : > { %v5285_v6 = vpop.f32.mrf.mxu0  ;;  %v5267_v28 = vpop.f32.mrf.mxu1 }
 0x27c   : > { %v3839_v32 = vpop.f32.mrf.mxu0  ;;  %v3685_v12 = vpop.f32.mrf.mxu1 }
 0x27d   : > { %v3876_v4 = vadd.f32 %v3839_v32, %v3714_v9 }
 0x27e   : > { %v5286_v20 = vpop.f32.mrf.mxu0  ;;  %v5268_v49 = vpop.f32.mrf.mxu1 }
 0x27f   : > { %v3716_v20 = vadd.f32 %v3685_v12, %v6711_v27 }
 0x280   : > { %v3844_v39 = vpop.f32.mrf.mxu0  ;;  %v6725_v56 = vpop.f32.mrf.mxu1 }
 0x281   : > { %v3877_v14 = vadd.f32 %v3844_v39, %v3715_v11 }
 0x282   : > { %v5289_v10 = vpop.f32.mrf.mxu0  ;;  %v5271_v36 = vpop.f32.mrf.mxu1 }
 0x284   : > { %v3847_v3 = vpop.f32.mrf.mxu0  ;;  %v6727_v37 = vpop.f32.mrf.mxu1 }
 0x286   : > { %v5290_v54 = vpop.f32.mrf.mxu0  ;;  %v5272_v16 = vpop.f32.mrf.mxu1 }
 0x287   : > { %v3878_v16 = vadd.f32 %v3847_v3, %v3716_v20 }
 0x288   : > { %v6729_v30 = vpop.f32.mrf.mxu0  ;;  %v6731_v26 = vpop.f32.mrf.mxu1 }
 0x28a   : > { %v5293_v51 = vpop.f32.mrf.mxu0  ;;  %v5275_v31 = vpop.f32.mrf.mxu1 }
 0x28b   : > { %v3717_v31 = vadd.f32 %v6725_v56, %v6713_v55  ;;  %v3718_v55 = vadd.f32 %v6727_v37, %v6715_v42  ;;  %v3719_v42 = vadd.f32 %v6731_v26, %v6717_v50 }
 0x28c   : > { %v6733_v13 = vpop.f32.mrf.mxu0  ;;  %v6735_v61 = vpop.f32.mrf.mxu1 }
 0x28d   : > { %v3720_v50 = vadd.f32 %v6735_v61, %v6719_v21 }
 0x28e   : > { %v5294_v7 = vpop.f32.mrf.mxu0  ;;  %v5276_v18 = vpop.f32.mrf.mxu1 }
 0x290   : > { %v6737_v29 = vpop.f32.mrf.mxu0  ;;  %v6739_v40 = vpop.f32.mrf.mxu1 }
 0x291   : > { %v3721_v21 = vadd.f32 %v6739_v40, %v6721_v8 }
 0x292   : > { %v5297_v33 = vpop.f32.mrf.mxu0  ;;  %v5279_v62 = vpop.f32.mrf.mxu1 }
 0x294   : > { %v6741_v34 = vpop.f32.mrf.mxu0  ;;  %v6743_v48 = vpop.f32.mrf.mxu1 }
 0x295   : > { %v3722_v8 = vadd.f32 %v6743_v48, %v6723_v35 }
 0x296   : > { %v5298_v38 = vpop.f32.mrf.mxu0  ;;  %v5280_v22 = vpop.f32.mrf.mxu1 }
 0x298   : > { %v6745_v47 = vpop.f32.mrf.mxu0  ;;  %v3997_v45 = vpop.f32.mrf.mxu1 }
 0x299   : > { %v4036_v24 = vadd.f32 %v3997_v45, %v3875_v23  ;;  %v3879_v45 = vadd.f32 %v6729_v30, %v3717_v31 }
 0x29a   : > { %v5301_v60 = vpop.f32.mrf.mxu0  ;;  %v5307_v0 = vpop.f32.mrf.mxu1 }
 0x29c   : > { %v6748_v44 = vpop.f32.mrf.mxu0  ;;  %v4000_v46 = vpop.f32.mrf.mxu1 }
 0x29d   : > { %v4037_v19 = vadd.f32 %v4000_v46, %v3876_v4 }
 0x29e   : > { %v5302_v53 = vpop.f32.mrf.mxu0  ;;  %v5308_v15 = vpop.f32.mrf.mxu1 }
 0x2a0   : > { %v4117_v41 = vpop.f32.mrf.mxu0  ;;  %v4005_v43 = vpop.f32.mrf.mxu1 }
 0x2a1   : > { %v4156_v59 = vadd.f32 %v4117_v41, %v4036_v24  ;;  %v4038_v10 = vadd.f32 %v4005_v43, %v3877_v14  ;;  %v3880_v41 = vadd.f32 %v6733_v13, %v3718_v55  ;;  %v3881_v14 = vadd.f32 %v6737_v29, %v3719_v42 }
 0x2a2   : > { %v5329_v17 = vpop.f32.mrf.mxu0  ;;  %v5311_v25 = vpop.f32.mrf.mxu1 }
 0x2a3   : > { %v4173_v63 = vmul.f32 %v6754_v58, %v4156_v59 }
 0x2a4   : > { %v4120_v52 = vpop.f32.mrf.mxu0  ;;  %v4008_v28 = vpop.f32.mrf.mxu1 }
 0x2a5   : > { %v4190_v6 = vadd.f32 %v6759_v2, %v4173_v63  ;;  %v4157_v32 = vadd.f32 %v4120_v52, %v4037_v19  ;;  %v4039_v33 = vadd.f32 %v4008_v28, %v3878_v16 }
 0x2a6   : > { %v5330_v49 = vpop.f32.mrf.mxu0  ;;  %v5312_v1 = vpop.f32.mrf.mxu1 }
 0x2a7   : > { %vm4200_vm8 = vcmp.ge.f32.partialorder %v4190_v6, 0.0  ;;  %v4210_v36 = vmul.f32 0.2, %v4190_v6  ;;  %v4174_v54 = vmul.f32 %v6754_v58, %v4157_v32 }
 0x2a8   : > { %v4125_v5 = vpop.f32.mrf.mxu0  ;;  %v4013_v27 = vpop.f32.mrf.mxu1 }
 0x2a9   : > { %v4220_v39 = vsel %vm4200_vm8, %v4190_v6, %v4210_v36  ;;  %v4191_v51 = vadd.f32 %v6759_v2, %v4174_v54  ;;  %v4158_v12 = vadd.f32 %v4125_v5, %v4038_v10  ;;  %v4040_v53 = vadd.f32 %v4013_v27, %v3879_v45 }
 0x2aa   : > { %v4637_v7 = vpack.c.bf16 %v4220_v39, %v4220_v39  ;;  %v5333_v18 = vpop.f32.mrf.mxu0  ;;  %v5315_v38 = vpop.f32.mrf.mxu1  ;;  %v3882_v5 = vadd.f32 %v6741_v34, %v3720_v50 }
 0x2ab   : > { %vm4201_vm10 = vcmp.ge.f32.partialorder %v4191_v51, 0.0  ;;  %v4211_v62 = vmul.f32 0.2, %v4191_v51  ;;  %v4175_v3 = vmul.f32 %v6754_v58, %v4158_v12 }
 0x2ac   : > { %4271 = vst.msk [vmem:[%s6770_s25] sm:$0xf] %vm4270_vm9, %v4637_v7  ;;  %v4128_v22 = vpop.f32.mrf.mxu0  ;;  %v4016_v0 = vpop.f32.mrf.mxu1 }
 0x2ad   : > { %v4221_v60 = vsel %vm4201_vm10, %v4191_v51, %v4211_v62  ;;  %v4192_v57 = vadd.f32 %v6759_v2, %v4175_v3  ;;  %v4159_v23 = vadd.f32 %v4128_v22, %v4039_v33  ;;  %v4041_v19 = vadd.f32 %v4016_v0, %v3880_v41 }
 0x2ae   : > { %v4638_v56 = vpack.c.bf16 %v4221_v60, %v4221_v60  ;;  %v5334_v46 = vpop.f32.mrf.mxu0  ;;  %v5316_v15 = vpop.f32.mrf.mxu1  ;;  %v3883_v62 = vadd.f32 %v6745_v47, %v3721_v21 }
 0x2af   : > { %vm4202_vm11 = vcmp.ge.f32.partialorder %v4192_v57, 0.0  ;;  %v4212_v9 = vmul.f32 0.2, %v4192_v57  ;;  %v4176_v24 = vmul.f32 %v6754_v58, %v4159_v23 }
 0x2b0   : > { %4272 = vst.msk [vmem:[%s6770_s25 + $0x4] sm:$0xf] %vm4270_vm9, %v4638_v56  ;;  %v4133_v30 = vpop.f32.mrf.mxu0  ;;  %v4021_v59 = vpop.f32.mrf.mxu1  ;;  %v3884_v56 = vadd.f32 %v6748_v44, %v3722_v8 }
 0x2b1   : > { %v4222_v4 = vsel %vm4202_vm11, %v4192_v57, %v4212_v9  ;;  %v4193_v43 = vadd.f32 %v6759_v2, %v4176_v24  ;;  %v4160_v17 = vadd.f32 %v4133_v30, %v4040_v53  ;;  %v4042_v10 = vadd.f32 %v4021_v59, %v3881_v14 }
 0x2b2   : > { %v4639_v37 = vpack.c.bf16 %v4222_v4, %v4222_v4  ;;  %v5337_v11 = vpop.f32.mrf.mxu0  ;;  %v5319_v52 = vpop.f32.mrf.mxu1 }
 0x2b3   : > { %vm4203_vm12 = vcmp.ge.f32.partialorder %v4193_v43, 0.0  ;;  %v4213_v63 = vmul.f32 0.2, %v4193_v43  ;;  %v4177_v25 = vmul.f32 %v6754_v58, %v4160_v17 }
 0x2b4   : > { %4273 = vst.msk [vmem:[%s6770_s25 + $0x8] sm:$0xf] %vm4270_vm9, %v4639_v37  ;;  %v4136_v13 = vpop.f32.mrf.mxu0  ;;  %v4024_v32 = vpop.f32.mrf.mxu1 }
 0x2b5   : > { %v4223_v6 = vsel %vm4203_vm12, %v4193_v43, %v4213_v63  ;;  %v4194_v28 = vadd.f32 %v6759_v2, %v4177_v25  ;;  %v4161_v20 = vadd.f32 %v4136_v13, %v4041_v19  ;;  %v4043_v31 = vadd.f32 %v4024_v32, %v3882_v5 }
 0x2b6   : > { %v4640_v26 = vpack.c.bf16 %v4223_v6, %v4223_v6  ;;  %v5338_v49 = vpop.f32.mrf.mxu0  ;;  %v5320_v1 = vpop.f32.mrf.mxu1 }
 0x2b7   : > { %vm4204_vm13 = vcmp.ge.f32.partialorder %v4194_v28, 0.0  ;;  %v4214_v36 = vmul.f32 0.2, %v4194_v28  ;;  %v4178_v54 = vmul.f32 %v6754_v58, %v4161_v20 }
 0x2b8   : > { %4274 = vst.msk [vmem:[%s6770_s25 + $0xc] sm:$0xf] %vm4270_vm9, %v4640_v26  ;;  %v4141_v29 = vpop.f32.mrf.mxu0  ;;  %v4029_v51 = vpop.f32.mrf.mxu1 }
 0x2b9   : > { %v4224_v16 = vsel %vm4204_vm13, %v4194_v28, %v4214_v36  ;;  %v4195_v39 = vadd.f32 %v6759_v2, %v4178_v54  ;;  %v4162_v27 = vadd.f32 %v4141_v29, %v4042_v10  ;;  %v4044_v57 = vadd.f32 %v4029_v51, %v3883_v62 }
 0x2ba   : > { %v4641_v61 = vpack.c.bf16 %v4224_v16, %v4224_v16  ;;  %v5341_v12 = vpop.f32.mrf.mxu0  ;;  %v5323_v33 = vpop.f32.mrf.mxu1 }
 0x2bb   : > { %vm4205_vm14 = vcmp.ge.f32.partialorder %v4195_v39, 0.0  ;;  %v4215_v7 = vmul.f32 0.2, %v4195_v39  ;;  %v4179_v18 = vmul.f32 %v6754_v58, %v4162_v27 }
 0x2bc   : > { %4275 = vst.msk [vmem:[%s6770_s25 + $0x10] sm:$0xf] %vm4270_vm9, %v4641_v61  ;;  %v4144_v34 = vpop.f32.mrf.mxu0  ;;  %v4032_v22 = vpop.f32.mrf.mxu1 }
 0x2bd   : > { %v4225_v3 = vsel %vm4205_vm14, %v4195_v39, %v4215_v7  ;;  %v4196_v38 = vadd.f32 %v6759_v2, %v4179_v18  ;;  %v4163_v45 = vadd.f32 %v4144_v34, %v4043_v31  ;;  %v4045_v48 = vadd.f32 %v4032_v22, %v3884_v56 }
 0x2be   : > { %v4642_v40 = vpack.c.bf16 %v4225_v3, %v4225_v3  ;;  %v5342_v60 = vpop.f32.mrf.mxu0  ;;  %v5324_v55 = vpop.f32.mrf.mxu1 }
 0x2bf   : > { %vm4206_vm15 = vcmp.ge.f32.partialorder %v4196_v38, 0.0  ;;  %v4216_v0 = vmul.f32 0.2, %v4196_v38  ;;  %v4180_v23 = vmul.f32 %v6754_v58, %v4163_v45 }
 0x2c0   : > { %4276 = vst.msk [vmem:[%s6770_s25 + $0x14] sm:$0xf] %vm4270_vm9, %v4642_v40  ;;  %v4149_v47 = vpop.f32.mrf.mxu0 }
 0x2c1   : > { %v4226_v46 = vsel %vm4206_vm15, %v4196_v38, %v4216_v0  ;;  %v4197_v53 = vadd.f32 %v6759_v2, %v4180_v23  ;;  %v4164_v9 = vadd.f32 %v4149_v47, %v4044_v57 }
 0x2c2   : > { %v4643_v24 = vpack.c.bf16 %v4226_v46, %v4226_v46  ;;  %v5345_v35 = vpop.f32.mrf.mxu0 }
 0x2c3   : > { %vm4207_vm0 = vcmp.ge.f32.partialorder %v4197_v53, 0.0  ;;  %v4217_v15 = vmul.f32 0.2, %v4197_v53  ;;  %v4181_v30 = vmul.f32 %v6754_v58, %v4164_v9 }
 0x2c4   : > { %4277 = vst.msk [vmem:[%s6770_s25 + $0x18] sm:$0xf] %vm4270_vm9, %v4643_v24  ;;  %v4152_v41 = vpop.f32.mrf.mxu0 }
 0x2c5   : > { %v4227_v4 = vsel %vm4207_vm0, %v4197_v53, %v4217_v15  ;;  %v4198_v43 = vadd.f32 %v6759_v2, %v4181_v30  ;;  %v4165_v44 = vadd.f32 %v4152_v41, %v4045_v48 }
 0x2c6   : > { %v4644_v59 = vpack.c.bf16 %v4227_v4, %v4227_v4  ;;  %v5346_v17 = vpop.f32.mrf.mxu0 }
 0x2c7   : > { %vm4208_vm1 = vcmp.ge.f32.partialorder %v4198_v43, 0.0  ;;  %v4218_v42 = vmul.f32 0.2, %v4198_v43  ;;  %v4182_v37 = vmul.f32 %v6754_v58, %v4165_v44 }
 0x2c8   : > { %4278 = vst.msk [vmem:[%s6770_s25 + $0x1c] sm:$0xf] %vm4270_vm9, %v4644_v59 }
 0x2c9   : > { %v4228_v11 = vsel %vm4208_vm1, %v4198_v43, %v4218_v42  ;;  %v4199_v19 = vadd.f32 %v6759_v2, %v4182_v37 }
 0x2ca   : > { %v4645_v63 = vpack.c.bf16 %v4228_v11, %v4228_v11 }
 0x2cb   : > { %vm4209_vm2 = vcmp.ge.f32.partialorder %v4199_v19, 0.0  ;;  %v4219_v25 = vmul.f32 0.2, %v4199_v19 }
 0x2cc   : > { %4279 = vst.msk [vmem:[%s6770_s25 + $0x20] sm:$0xf] %vm4270_vm9, %v4645_v63 }
 0x2cd   : > { %v4229_v52 = vsel %vm4209_vm2, %v4199_v19, %v4219_v25 }
 0x2ce   : > { %v4646_v13 = vpack.c.bf16 %v4229_v52, %v4229_v52 }
 0x2d0   : > { %4280 = vst.msk [vmem:[%s6770_s25 + $0x24] sm:$0xf] %vm4270_vm9, %v4646_v13 }
 0x2d1 PF: > { %s17_s24 = sadd.s32 1, %s5483_s24  }
 0x2d2   : > { %p14_p4 = scmp.ge.s32.totalorder %s17_s24, 4  }
 0x2d4   :  { %16 = sbr.rel (!%p14_p4) target bundleno = 1 (0x1), region = 87 }

// kernel: _lambda_.5
= control target key start
LH: loop header
LB: loop body
LE: loop exit
PB: predicated region body
PF: predicated region fallthrough
CT: control target
= control target key end

     0   :  { %s3332_s27 = smov 0   ;;  %s3731_s0 = inlined_call_operand.vmem [shape: bf16[2,42,32], index: 0, kind: input, shape index: {}]   ;;  %s3732_s1 = inlined_call_operand.vmem [shape: bf16[2,42,32], index: 1, kind: input, shape index: {}]   ;;  %s3733_s2 = inlined_call_operand.vmem [shape: bf16[2,42,32], index: 2, kind: input, shape index: {}]   ;;  %s3734_s3 = inlined_call_operand.vmem [shape: bf16[2,42,32], index: 3, kind: input, shape index: {}]   ;;  %s3735_s4 = inlined_call_operand.vmem [shape: bf16[800,64], index: 4, kind: input, shape index: {}]   ;;  %s3736_s5 = inlined_call_operand.vmem [shape: f32[1,64], index: 5, kind: input, shape index: {}]   ;;  %s3737_s6 = inlined_call_operand.vmem [shape: f32[1,64], index: 6, kind: input, shape index: {}]   ;;  %s3738_s7 = inlined_call_operand.vmem [shape: f32[24,64], index: 7, kind: input, shape index: {}]   ;;  %s3739_s8 = inlined_call_operand.vmem [shape: f32[2,8,128], index: 8, kind: output, shape index: {}]  }
   0x1 LB: > { %s2722_s28 = sadd.s32 4294967295, %s3285_s27   ;;  %p2726_p0 = scmp.ge.s32.totalorder %s3285_s27, 1  ;;  %s3285_s27 = sphi %s3332_s27, %s18_s27  }
   0x2   : > { %p292_p1 = scmp.lt.s32.totalorder %s3285_s27, 3 }
   0x4   : > { %p293_p2 = pnand %p2726_p0, %p292_p1 }
   0x5   : > { %p340_p3 = scmp.lt.s32.totalorder (!%p293_p2), %s2722_s28, 1 }
   0x6   : > { %296 = sbr.rel (%p293_p2) target bundleno = 533 (0x215), region = 52 }
   0xb   : > { %v3188_v0 = vld [vmem:[%s3735_s4 + $0x18] sm:$0xff]   ;;  %v3189_v1 = vld [vmem:[%s3735_s4 + $0x8] sm:$0xff]   ;;  %v3190_v2 = vld [vmem:[%s3735_s4 + $0x10] sm:$0xff]   ;;  %s3741_s28 = smov (!%p340_p3, %s2722_s28), 1  ;;  %vm491_vm0 = vcmask 261120   ;;  %vm821_vm2 = vcmask 1046528  }
   0xc   : > { %2977 = vmatprep.subr.bf16.mxu0 %v3188_v0  ;;  %2985 = vmatprep.subr.bf16.mxu1 %v3189_v1  ;;  %v3191_v3 = vld [vmem:[%s3735_s4] sm:$0xff]   ;;  %s3355_s15 = smul.u32 24, %s3741_s28  ;;  %v3196_v4 = vld [vmem:[%s3735_s4 + $0x28] sm:$0xff]   ;;  %v3197_v5 = vld [vmem:[%s3735_s4 + $0x38] sm:$0xff]   ;;  %vm634_vm1 = vsmask.f32 7424 }
   0xd   : > { %2978 = vmatpush3.bf16.msra.mxu0 %v3188_v0  ;;  %2986 = vmatpush3.bf16.msra.mxu1 %v3189_v1  ;;  %v3198_v7 = vld [vmem:[%s3735_s4 + $0x20] sm:$0xff]   ;;  %v3199_v11 = vld [vmem:[%s3735_s4 + $0x30] sm:$0xff]   ;;  %v3204_v28 = vld [vmem:[%s3735_s4 + $0x48] sm:$0xff]   ;;  %vm1334_vm3 = vcmask 1044480   ;;  %vm1491_vm4 = vsmask.f32 4352 }
   0xe   : > { %2979 = vmatprep.subr.bf16.mxu0 %v3190_v2  ;;  %2987 = vmatprep.subr.bf16.mxu1 %v3191_v3  ;;  %s3367_s22 = scalar_lea.vmem %s3732_s1, %s3355_s15  ;;  %s3373_s25 = scalar_lea.vmem %s3731_s0, %s3355_s15  ;;  %v3205_v29 = vld [vmem:[%s3735_s4 + $0x58] sm:$0xff]   ;;  %v3206_v40 = vld [vmem:[%s3735_s4 + $0x40] sm:$0xff]   ;;  %v3207_v49 = vld [vmem:[%s3735_s4 + $0x50] sm:$0xff]   ;;  %vm2164_vm5 = vcmask 1045504   ;;  %vm2327_vm6 = vsmask.f32 5376 }
   0xf   : > { %v3192_v6 = vld [vmem:[%s3367_s22] sm:$0xff]   ;;  %v3194_v9 = vld [vmem:[%s3367_s22 + $0x8] ss:$0 sps:$4 sm:$0xff]   ;;  %v623_v15 = vld [vmem:[%s3373_s25 + $0xc] sm:$0x1]  ;;  %s3423_s17 = scalar_lea.vmem %s3733_s2, %s3355_s15  ;;  %s3448_s30 = scalar_lea.vmem %s3734_s3, %s3355_s15  ;;  %vm2615_vm10 = vcmask 523264  }
  0x10   : > { %v3193_v8 = vld [vmem:[%s3373_s25] sm:$0xff]   ;;  %2981 = vmatprep.mubr.msk.bf16.mxu0 %vm491_vm0, %v3192_v6  ;;  %v3195_v10 = vld [vmem:[%s3373_s25 + $0x8] ss:$0 sps:$4 sm:$0xff]   ;;  %v722_v23 = vld [vmem:[%s3367_s22 + $0xc] sm:$0x1]  ;;  %s2731_s21 = sshll.u32 %s3741_s28, 3 }
  0x11   : > { %2980 = vmatpush3.bf16.msra.mxu0 %v3190_v2  ;;  %2988 = vmatpush3.bf16.msra.mxu1 %v3191_v3  ;;  %v620_v12 = vld [vmem:[%s3373_s25] sm:$0xf]  ;;  %v3390_v13 = vld [vmem:[%s3373_s25 + $0x4] sm:$0xf]  ;;  %v3394_v14 = vld [vmem:[%s3373_s25 + $0x8] sm:$0xf]  ;;  %s363_s26 = scalar_lea.vmem %s3739_s8, %s2731_s21 }
  0x12   : > { %2993 = vmatprep.subr.bf16.mxu0 %v3196_v4  ;;  %3001 = vmatprep.subr.bf16.mxu1 %v3197_v5  ;;  %v2744_v16 = vcombine.low %v620_v12, %v3390_v13  ;;  %v3399_v17 = vcombine.low %v3394_v14, %v623_v15  ;;  %v719_v18 = vld [vmem:[%s3367_s22] sm:$0xf]  ;;  %v3403_v19 = vld [vmem:[%s3367_s22 + $0x4] sm:$0xf]  ;;  %v3406_v20 = vld [vmem:[%s3367_s22 + $0x8] sm:$0xf] }
  0x13   : > { %2989 = vmatprep.mubr.msk.bf16.mxu1 %vm491_vm0, %v3193_v8  ;;  %v2750_v24 = vcombine.low %v719_v18, %v3403_v19  ;;  %v2751_v27 = vcombine.low %v3406_v20, %v722_v23  ;;  %v817_v43 = vld [vmem:[%s3373_s25] sm:$0xe]  ;;  %v3210_v51 = vld [vmem:[%s3735_s4 + $0x68] sm:$0xff]   ;;  %v3212_v53 = vld [vmem:[%s3735_s4 + $0x78] sm:$0xff]  }
  0x14   : > { %2982 = vmatmul.mubr.msk.bf16.vlgmr.msra.gmra.mxu0 %vm491_vm0, %v3194_v9  ;;  %2990 = vmatmul.mubr.msk.bf16.vlgmr.msra.gmra.mxu1 %vm491_vm0, %v3195_v10  ;;  %v636_v21 = vshrl.u32 %v2744_v16, 16  ;;  %v638_v22 = vshll.u32 %v2744_v16, 16  ;;  %v643_v25 = vshll.u32 %v3399_v17, 16  ;;  %v647_v26 = vshrl.u32 %v3399_v17, 16  ;;  %v3209_v47 = vld [vmem:[%s3423_s17] sm:$0xff]   ;;  %v3214_v63 = vld [vmem:[%s3735_s4 + $0x70] sm:$0xff]  }
  0x15   : > { %2994 = vmatpush3.bf16.msra.mxu0 %v3196_v4  ;;  %3002 = vmatpush3.bf16.msra.mxu1 %v3197_v5  ;;  %v734_v31 = vshrl.u32 %v2750_v24, 16  ;;  %v736_v32 = vshll.u32 %v2750_v24, 16  ;;  %v741_v34 = vshll.u32 %v2751_v27, 16  ;;  %v745_v35 = vshrl.u32 %v2751_v27, 16  ;;  %v3211_v54 = vld [vmem:[%s3423_s17 + $0x8] ss:$0 sps:$4 sm:$0xff]  }
  0x16   : > { %2995 = vmatprep.subr.bf16.mxu0 %v3198_v7  ;;  %3003 = vmatprep.subr.bf16.mxu1 %v3199_v11  ;;  %v640_v30 = vrot.slane %v638_v22, 1  ;;  %v645_v33 = vrot.slane %v643_v25, 1  ;;  %v2756_v45 = vcombine.low %v817_v43, %v3390_v13  ;;  %v823_v46 = vrot.slane %v3399_v17, 1  ;;  %v3213_v55 = vld [vmem:[%s3735_s4 + $0x60] sm:$0xff]   ;;  %v3466_v59 = vld [vmem:[%s3423_s17 + $0x8] sm:$0xf] }
  0x17   : > { %v738_v37 = vrot.slane %v736_v32, 1  ;;  %v743_v39 = vrot.slane %v741_v34, 1  ;;  %v3215_v56 = vld [vmem:[%s3448_s30] sm:$0xff]   ;;  %v1057_v60 = vld [vmem:[%s3423_s17 + $0xc] sm:$0x1]  ;;  %v3220_v8 = vld [vmem:[%s3735_s4 + $0x98] sm:$0xff]  }
  0x18   : > { %v641_v36 = vor.u32 %v640_v30, %v636_v21  ;;  %v649_v38 = vor.u32 %v647_v26, %v645_v33  ;;  %v822_v50 = vrot.slane %v2756_v45, 1  ;;  %v1054_v57 = vld [vmem:[%s3423_s17] sm:$0xf]  ;;  %v3463_v58 = vld [vmem:[%s3423_s17 + $0x4] sm:$0xf]  ;;  %v3471_v62 = vcombine.low %v3466_v59, %v1057_v60  ;;  %v3219_v3 = vld [vmem:[%s3735_s4 + $0x88] sm:$0xff]  }
  0x19   : > { %2996 = vmatpush3.bf16.msra.mxu0 %v3198_v7  ;;  %3004 = vmatpush3.bf16.msra.mxu1 %v3199_v11  ;;  %v739_v42 = vor.u32 %v738_v37, %v734_v31  ;;  %v747_v44 = vor.u32 %v745_v35, %v743_v39  ;;  %v2773_v61 = vcombine.low %v1054_v57, %v3463_v58  ;;  %v3216_v4 = vld [vmem:[%s3448_s30 + $0x8] ss:$0 sps:$4 sm:$0xff]   ;;  %v1152_v9 = vld [vmem:[%s3448_s30] sm:$0xf]  ;;  %v3490_v10 = vld [vmem:[%s3448_s30 + $0x4] sm:$0xf] }
  0x1a   : > { %3009 = vmatprep.subr.bf16.mxu0 %v3204_v28  ;;  %3017 = vmatprep.subr.bf16.mxu1 %v3205_v29  ;;  %v646_v41 = vsel %vm634_vm1, %v641_v36, %v645_v33  ;;  %v824_v52 = vsel %vm821_vm2, %v822_v50, %v823_v46  ;;  %v1076_v2 = vshll.u32 %v3471_v62, 16  ;;  %v1080_v6 = vshrl.u32 %v3471_v62, 16  ;;  %v3493_v12 = vld [vmem:[%s3448_s30 + $0x8] sm:$0xf]  ;;  %v1155_v15 = vld [vmem:[%s3448_s30 + $0xc] sm:$0x1] }
  0x1b   : > { %2997 = vmatprep.mubr.msk.bf16.mxu0 %vm491_vm0, %v646_v41  ;;  %v744_v48 = vsel %vm634_vm1, %v739_v42, %v743_v39  ;;  %v1069_v0 = vshrl.u32 %v2773_v61, 16  ;;  %v1071_v1 = vshll.u32 %v2773_v61, 16  ;;  %v2779_v16 = vcombine.low %v1152_v9, %v3490_v10  ;;  %v1250_v17 = vld [vmem:[%s3423_s17] sm:$0xe]  ;;  %v3226_v35 = vld [vmem:[%s3735_s4 + $0xa8] sm:$0xff]  }
  0x1c   : > { %2998 = vmatmul.mubr.msk.bf16.vlgmr.msra.gmra.mxu0 %vm491_vm0, %v649_v38  ;;  %3005 = vmatprep.mubr.msk.bf16.mxu1 %vm491_vm0, %v744_v48  ;;  %v1078_v7 = vrot.slane %v1076_v2, 1  ;;  %v3221_v18 = vld [vmem:[%s3735_s4 + $0x80] sm:$0xff]   ;;  %v2780_v21 = vcombine.low %v3493_v12, %v1155_v15  ;;  %v2785_v22 = vcombine.low %v1250_v17, %v3463_v58  ;;  %v1255_v23 = vrot.slane %v3471_v62, 1  ;;  %v1327_v38 = vld [vmem:[%s3373_s25 + $0xc] sm:$0x7] }
  0x1d   : > { %3010 = vmatpush3.bf16.msra.mxu0 %v3204_v28  ;;  %3006 = vmatmul.mubr.msk.bf16.vlgmr.msra.gmra.mxu1 %vm491_vm0, %v747_v44  ;;  %v1073_v5 = vrot.slane %v1071_v1, 1  ;;  %v1167_v26 = vshrl.u32 %v2779_v16, 16  ;;  %v1169_v27 = vshll.u32 %v2779_v16, 16  ;;  %v3222_v28 = vld [vmem:[%s3735_s4 + $0x90] sm:$0xff]   ;;  %v1326_v36 = vld [vmem:[%s3373_s25] sm:$0x8]  ;;  %v2791_v42 = vcombine.low %v3394_v14, %v1327_v38 }
  0x1e   : > { %3011 = vmatprep.subr.bf16.mxu0 %v3206_v40  ;;  %3018 = vmatpush3.bf16.msra.mxu1 %v3205_v29  ;;  %v1082_v25 = vor.u32 %v1080_v6, %v1078_v7  ;;  %v1174_v29 = vshll.u32 %v2780_v21, 16  ;;  %v1254_v30 = vrot.slane %v2785_v22, 1  ;;  %v1178_v32 = vshrl.u32 %v2780_v21, 16  ;;  %v1408_v41 = vld [vmem:[%s3367_s22 + $0xc] sm:$0x7]  ;;  %v3236_v22 = vld [vmem:[%s3735_s4 + $0xc0] sm:$0xff]  }
  0x1f   : > { %3021 = vmatprep.mubr.msk.bf16.mxu1 %vm491_vm0, %v3209_v47  ;;  %3019 = vmatprep.subr.bf16.mxu1 %v3207_v49  ;;  %v1074_v11 = vor.u32 %v1073_v5, %v1069_v0  ;;  %v1171_v31 = vrot.slane %v1169_v27, 1  ;;  %v2790_v39 = vcombine.low %v1326_v36, %v3390_v13  ;;  %v2797_v48 = vcombine.low %v3406_v20, %v1408_v41  ;;  %v3234_v57 = vld [vmem:[%s3735_s4 + $0xc8] sm:$0xff]   ;;  %v3237_v27 = vld [vmem:[%s3735_s4 + $0xd0] sm:$0xff]  }
  0x20   : > { %3013 = vmatprep.mubr.msk.bf16.mxu0 %vm491_vm0, %v824_v52  ;;  %v1176_v33 = vrot.slane %v1174_v29, 1  ;;  %v1256_v34 = vsel %vm821_vm2, %v1254_v30, %v1255_v23  ;;  %v3229_v52 = vld [vmem:[%s3735_s4 + $0xb0] sm:$0xff]   ;;  %v1820_v36 = vld [vmem:[%s3448_s30 + $0xc] sm:$0x7] }
  0x21   : > { %3012 = vmatpush3.bf16.msra.mxu0 %v3206_v40  ;;  %v1079_v24 = vsel %vm634_vm1, %v1074_v11, %v1078_v7  ;;  %v1172_v37 = vor.u32 %v1171_v31, %v1167_v26  ;;  %v1407_v40 = vld [vmem:[%s3367_s22] sm:$0x8]  ;;  %v1335_v47 = vrot.slane %v2790_v39, 3  ;;  %v1496_v61 = vshll.u32 %v2790_v39, 16  ;;  %v3584_v41 = vld [vmem:[%s3423_s17 + $0xc] sm:$0xf] }
  0x22   : > { %3025 = vmatprep.subr.bf16.mxu0 %v3210_v51  ;;  %3020 = vmatpush3.bf16.msra.mxu1 %v3207_v49  ;;  %v2796_v43 = vcombine.low %v1407_v40, %v3403_v19  ;;  %v1180_v45 = vor.u32 %v1178_v32, %v1176_v33  ;;  %v1336_v49 = vrot.slane %v2791_v42, 3  ;;  %v3228_v19 = vld [vmem:[%s3735_s4 + $0xa0] sm:$0xff]   ;;  %v3240_v32 = vld [vmem:[%s3735_s4 + $0xe8] sm:$0xff]  }
  0x23   : > { %3033 = vmatprep.subr.bf16.mxu1 %v3212_v53  ;;  %v1177_v44 = vsel %vm634_vm1, %v1172_v37, %v1176_v33  ;;  %v3242_v42 = vld [vmem:[%s3735_s4 + $0xe0] sm:$0xff]  }
  0x24   : > { %3014 = vmatmul.mubr.msk.bf16.vlgmr.msra.gmra.mxu0 %vm491_vm0, %v823_v46  ;;  %v3227_v46 = vld [vmem:[%s3735_s4 + $0xb8] sm:$0xff]   ;;  %v1415_v50 = vrot.slane %v2796_v43, 3  ;;  %v1583_v0 = vshrl.u32 %v2796_v43, 16 }
  0x25   : > { %3026 = vmatpush3.bf16.msra.mxu0 %v3210_v51  ;;  %3029 = vmatprep.mubr.msk.bf16.mxu0 %vm491_vm0, %v3215_v56  ;;  %v1416_v51 = vrot.slane %v2797_v48, 3 }
  0x26   : > { %3022 = vmatmul.mubr.msk.bf16.vlgmr.msra.gmra.mxu1 %vm491_vm0, %v3211_v54  ;;  %3027 = vmatprep.subr.bf16.mxu0 %v3213_v55  ;;  %v3539_v54 = vld [vmem:[%s3373_s25 + $0xc] sm:$0xf]  ;;  %v1585_v7 = vrot.slane %v1583_v0, 3  ;;  %v3249_v0 = vld [vmem:[%s3735_s4 + $0x118] sm:$0xff]  }
  0x27   : > { %3034 = vmatpush3.bf16.msra.mxu1 %v3212_v53  ;;  %3037 = vmatprep.mubr.msk.bf16.mxu1 %vm491_vm0, %v1079_v24  ;;  %v1337_v53 = vsel %vm1334_vm3, %v1335_v47, %v1336_v49  ;;  %v1417_v56 = vsel %vm1334_vm3, %v1415_v50, %v1416_v51  ;;  %v2802_v60 = vcombine.low %v3394_v14, %v3539_v54  ;;  %v1739_v24 = vld [vmem:[%s3423_s17] sm:$0x8] }
  0x28   : > { %3035 = vmatprep.subr.bf16.mxu1 %v3214_v63  ;;  %v2818_v29 = vcombine.low %v1739_v24, %v3463_v58 }
  0x29   : > { %3028 = vmatpush3.bf16.msra.mxu0 %v3213_v55  ;;  %v1493_v55 = vshrl.u32 %v2790_v39, 16  ;;  %v1501_v5 = vshrl.u32 %v2802_v60, 16  ;;  %v1504_v6 = vshll.u32 %v2802_v60, 16 }
  0x2a   : > { %3041 = vmatprep.subr.bf16.mxu0 %v3219_v3  ;;  %v1904_v33 = vshrl.u32 %v2818_v29, 16  ;;  %v1907_v37 = vshll.u32 %v2818_v29, 16  ;;  %v1747_v38 = vrot.slane %v2818_v29, 3 }
  0x2b   : > { %3036 = vmatpush3.bf16.msra.mxu1 %v3214_v63  ;;  %v1578_v63 = vld [vmem:[%s3367_s22 + $0xc] sm:$0xf]  ;;  %v1495_v1 = vrot.slane %v1493_v55, 3  ;;  %v1503_v15 = vrot.slane %v1501_v5, 3  ;;  %v1506_v16 = vrot.slane %v1504_v6, 4 }
  0x2c   : > { %3030 = vmatmul.mubr.msk.bf16.vlgmr.msra.gmra.mxu0 %vm491_vm0, %v3216_v4  ;;  %3049 = vmatprep.subr.bf16.mxu1 %v3220_v8  ;;  %v2807_v2 = vcombine.low %v3406_v20, %v1578_v63  ;;  %v1498_v4 = vrot.slane %v1496_v61, 4  ;;  %v1909_v48 = vrot.slane %v1907_v37, 4  ;;  %v2813_v63 = vcombine.low %v3539_v54, %v3539_v54 }
  0x2d   : > { %3042 = vmatpush3.bf16.msra.mxu0 %v3219_v3  ;;  %3045 = vmatprep.mubr.msk.bf16.mxu0 %vm491_vm0, %v1177_v44  ;;  %v1586_v3 = vshll.u32 %v2796_v43, 16  ;;  %v2812_v43 = vcombine.low %v3390_v13, %v3394_v14  ;;  %v2825_v44 = vcombine.low %v3493_v12, %v1820_v36  ;;  %v1989_v14 = vld [vmem:[%s3448_s30 + $0xc] sm:$0xf] }
  0x2e   : > { %3038 = vmatmul.mubr.msk.bf16.vlgmr.msra.gmra.mxu1 %vm491_vm0, %v1082_v25  ;;  %3043 = vmatprep.subr.bf16.mxu0 %v3221_v18  ;;  %v1591_v9 = vshrl.u32 %v2807_v2, 16  ;;  %v1594_v11 = vshll.u32 %v2807_v2, 16  ;;  %v1499_v62 = vor.u32 %v1498_v4, %v1495_v1  ;;  %v1740_v25 = vld [vmem:[%s3423_s17 + $0xc] sm:$0x7]  ;;  %v2835_v55 = vcombine.low %v3493_v12, %v1989_v14 }
  0x2f   : > { %3050 = vmatpush3.bf16.msra.mxu1 %v3220_v8  ;;  %3053 = vmatprep.mubr.msk.bf16.mxu1 %vm491_vm0, %v1256_v34  ;;  %v3235_v8 = vld [vmem:[%s3735_s4 + $0xd8] sm:$0xff]   ;;  %v1588_v20 = vrot.slane %v1586_v3, 4  ;;  %v2819_v30 = vcombine.low %v3466_v59, %v1740_v25  ;;  %v3250_v3 = vld [vmem:[%s3735_s4 + $0x100] sm:$0xff]  }
  0x30   : > { %3051 = vmatprep.subr.bf16.mxu1 %v3222_v28  ;;  %v1596_v21 = vrot.slane %v1594_v11, 4  ;;  %v3241_v34 = vld [vmem:[%s3735_s4 + $0xf8] sm:$0xff]   ;;  %v2002_v60 = vshrl.u32 %v2835_v55, 16  ;;  %v2005_v61 = vshll.u32 %v2835_v55, 16  ;;  %v3627_v11 = vld [vmem:[%s3373_s25 + $0x8] sm:$0xf] }
  0x31   : > { %3044 = vmatpush3.bf16.msra.mxu0 %v3221_v18  ;;  %v1589_v17 = vor.u32 %v1588_v20, %v1585_v7  ;;  %v1593_v18 = vrot.slane %v1591_v9, 3  ;;  %v1748_v39 = vrot.slane %v2819_v30, 3  ;;  %v3251_v7 = vld [vmem:[%s3735_s4 + $0x110] sm:$0xff]   ;;  %v3255_v20 = vld [vmem:[%s3735_s4 + $0x128] sm:$0xff]   ;;  %v2150_v9 = vld [vmem:[%s3373_s25 + $0x4] sm:$0xc]  ;;  %v2840_v30 = vcombine.low %v3463_v58, %v3466_v59 }
  0x32   : > { %3057 = vmatprep.subr.bf16.mxu0 %v3226_v35  ;;  %v2004_v5 = vrot.slane %v2002_v60, 3  ;;  %v2007_v6 = vrot.slane %v2005_v61, 4  ;;  %v2846_v24 = vcombine.low %v2150_v9, %v3627_v11 }
  0x33   : > { %3052 = vmatpush3.bf16.msra.mxu1 %v3222_v28  ;;  %v1597_v26 = vor.u32 %v1596_v21, %v1593_v18  ;;  %v1749_v13 = vsel %vm1334_vm3, %v1747_v38, %v1748_v39  ;;  %v2323_v21 = vld [vmem:[%s3373_s25 + $0x10] sm:$0x7] }
  0x34   : > { %3046 = vmatmul.mubr.msk.bf16.vlgmr.msra.gmra.mxu0 %vm491_vm0, %v1180_v45  ;;  %3065 = vmatprep.subr.bf16.mxu1 %v3227_v46  ;;  %v2830_v45 = vcombine.low %v3466_v59, %v3584_v41  ;;  %v2008_v18 = vor.u32 %v2007_v6, %v2004_v5  ;;  %v2165_v36 = vrot.slane %v2846_v24, 2  ;;  %v2329_v59 = vshrl.u32 %v2846_v24, 16  ;;  %v3276_v6 = vld [vmem:[%s3735_s4 + $0x188] sm:$0xff]  }
  0x35   : > { %3058 = vmatpush3.bf16.msra.mxu0 %v3226_v35  ;;  %3061 = vmatprep.mubr.msk.bf16.mxu0 %vm491_vm0, %v1337_v53  ;;  %v1598_v31 = vsel %vm1491_vm4, %v1589_v17, %v1597_v26  ;;  %v1819_v35 = vld [vmem:[%s3448_s30] sm:$0x8]  ;;  %v2332_v37 = vshll.u32 %v2846_v24, 16 }
  0x36   : > { %3054 = vmatmul.mubr.msk.bf16.vlgmr.msra.gmra.mxu1 %vm491_vm0, %v1255_v23  ;;  %3059 = vmatprep.subr.bf16.mxu0 %v3228_v19  ;;  %v1507_v23 = vor.u32 %v1506_v16, %v1503_v15  ;;  %v2824_v40 = vcombine.low %v1819_v35, %v3490_v10  ;;  %v3243_v10 = vld [vmem:[%s3735_s4 + $0xf0] sm:$0xff]   ;;  %v1915_v50 = vshll.u32 %v2830_v45, 16  ;;  %v3256_v16 = vld [vmem:[%s3735_s4 + $0x138] sm:$0xff]   ;;  %v3261_v35 = vld [vmem:[%s3735_s4 + $0x148] sm:$0xff]  }
  0x37   : > { %3066 = vmatpush3.bf16.msra.mxu1 %v3227_v46  ;;  %3069 = vmatprep.mubr.msk.bf16.mxu1 %vm491_vm0, %v1417_v56  ;;  %v1906_v46 = vrot.slane %v1904_v33, 3  ;;  %v2153_v15 = vld [vmem:[%s3373_s25 + $0x10] sm:$0x3] }
  0x38   : > { %3067 = vmatprep.subr.bf16.mxu1 %v3229_v52  ;;  %v1508_v28 = vsel %vm1491_vm4, %v1499_v62, %v1507_v23  ;;  %v1827_v47 = vrot.slane %v2824_v40, 3  ;;  %v1917_v53 = vrot.slane %v1915_v50, 4  ;;  %v1994_v56 = vshrl.u32 %v2824_v40, 16  ;;  %v2152_v62 = vld [vmem:[%s3373_s25 + $0xc] sm:$0xf]  ;;  %v3258_v33 = vld [vmem:[%s3735_s4 + $0x130] sm:$0xff]  }
  0x39   : > { %3060 = vmatpush3.bf16.msra.mxu0 %v3228_v19  ;;  %v3248_v19 = vld [vmem:[%s3735_s4 + $0x108] sm:$0xff]   ;;  %v1910_v1 = vor.u32 %v1909_v48, %v1906_v46  ;;  %v2847_v25 = vcombine.low %v2152_v62, %v2153_v15  ;;  %v3645_v29 = vcombine.low %v2152_v62, %v2323_v21  ;;  %v2331_v50 = vrot.slane %v2329_v59, 2 }
  0x3a   : > { %3073 = vmatprep.subr.bf16.mxu0 %v3234_v57  ;;  %v1996_v4 = vrot.slane %v1994_v56, 3 }
  0x3b   : > { %3068 = vmatpush3.bf16.msra.mxu1 %v3229_v52  ;;  %v2166_v58 = vrot.slane %v2847_v25, 2  ;;  %v2337_v38 = vshrl.u32 %v3645_v29, 16 }
  0x3c   : > { %3062 = vmatmul.mubr.msk.bf16.vlgmr.msra.gmra.mxu0 %vm491_vm0, %v1336_v49  ;;  %3081 = vmatprep.subr.bf16.mxu1 %v3235_v8  ;;  %v1912_v49 = vshrl.u32 %v2830_v45, 16 }
  0x3d   : > { %3074 = vmatpush3.bf16.msra.mxu0 %v3234_v57  ;;  %3077 = vmatprep.mubr.msk.bf16.mxu0 %vm491_vm0, %v1508_v28  ;;  %v1997_v57 = vshll.u32 %v2824_v40, 16  ;;  %v2167_v48 = vsel %vm2164_vm5, %v2165_v36, %v2166_v58  ;;  %v2339_v14 = vrot.slane %v2337_v38, 2 }
  0x3e   : > { %3070 = vmatmul.mubr.msk.bf16.vlgmr.msra.gmra.mxu1 %vm491_vm0, %v1416_v51  ;;  %3075 = vmatprep.subr.bf16.mxu0 %v3236_v22  ;;  %v1828_v51 = vrot.slane %v2825_v44, 3  ;;  %v1914_v52 = vrot.slane %v1912_v49, 3  ;;  %v3264_v49 = vld [vmem:[%s3735_s4 + $0x140] sm:$0xff]  }
  0x3f   : > { %3082 = vmatpush3.bf16.msra.mxu1 %v3235_v8  ;;  %3085 = vmatprep.mubr.msk.bf16.mxu1 %vm491_vm0, %v1598_v31  ;;  %v1999_v54 = vrot.slane %v1997_v57, 4  ;;  %v3269_v31 = vld [vmem:[%s3367_s22 + $0x4] sm:$0xfc]  }
  0x40   : > { %3083 = vmatprep.subr.bf16.mxu1 %v3237_v27  ;;  %v1918_v12 = vor.u32 %v1917_v53, %v1914_v52  ;;  %v1829_v2 = vsel %vm1334_vm3, %v1827_v47, %v1828_v51  ;;  %v2251_v40 = vrot.slane %v3269_v31, 2  ;;  %v2419_v44 = vshrl.u32 %v3269_v31, 16  ;;  %v3272_v57 = vld [vmem:[%s3735_s4 + $0x168] sm:$0xff]  }
  0x41   : > { %3076 = vmatpush3.bf16.msra.mxu0 %v3236_v22  ;;  %v2000_v17 = vor.u32 %v1999_v54, %v1996_v4  ;;  %v2239_v22 = vld [vmem:[%s3367_s22 + $0xc] sm:$0xf]  ;;  %v2422_v45 = vshll.u32 %v3269_v31, 16  ;;  %v2841_v47 = vcombine.low %v3584_v41, %v3584_v41  ;;  %v3265_v41 = vld [vmem:[%s3735_s4 + $0x150] sm:$0xff]  }
  0x42   : > { %3089 = vmatprep.subr.bf16.mxu0 %v3240_v32  ;;  %v1919_v8 = vsel %vm1491_vm4, %v1910_v1, %v1918_v12  ;;  %v2421_v52 = vrot.slane %v2419_v44, 2  ;;  %v3275_v54 = vld [vmem:[%s3735_s4 + $0x170] sm:$0xff]  }
  0x43   : > { %3084 = vmatpush3.bf16.msra.mxu1 %v3237_v27  ;;  %v3257_v27 = vld [vmem:[%s3735_s4 + $0x120] sm:$0xff]   ;;  %v2009_v28 = vsel %vm1491_vm4, %v2000_v17, %v2008_v18  ;;  %v2424_v53 = vrot.slane %v2422_v45, 3 }
  0x44   : > { %3078 = vmatmul.mubr.msk.bf16.vlgmr.msra.gmra.mxu0 %vm491_vm0, %v1507_v23  ;;  %3097 = vmatprep.subr.bf16.mxu1 %v3241_v34  ;;  %v2240_v23 = vld [vmem:[%s3367_s22 + $0x10] sm:$0x3] }
  0x45   : > { %3090 = vmatpush3.bf16.msra.mxu0 %v3240_v32  ;;  %3093 = vmatprep.mubr.msk.bf16.mxu0 %vm491_vm0, %v2812_v43  ;;  %v2853_v32 = vcombine.low %v2239_v22, %v2240_v23  ;;  %v3263_v43 = vld [vmem:[%s3735_s4 + $0x158] sm:$0xff]   ;;  %v2425_v1 = vor.u32 %v2424_v53, %v2421_v52 }
  0x46   : > { %3086 = vmatmul.mubr.msk.bf16.vlgmr.msra.gmra.mxu1 %vm491_vm0, %v1597_v26  ;;  %3091 = vmatprep.subr.bf16.mxu0 %v3242_v42  ;;  %v2414_v26 = vld [vmem:[%s3367_s22 + $0x10] sm:$0x7] }
  0x47   : > { %3098 = vmatpush3.bf16.msra.mxu1 %v3241_v34  ;;  %3101 = vmatprep.mubr.msk.bf16.mxu1 %vm491_vm0, %v1749_v13  ;;  %v2863_v34 = vcombine.low %v2239_v22, %v2414_v26  ;;  %v2334_v13 = vrot.slane %v2332_v37, 3 }
  0x48   : > { %3099 = vmatprep.subr.bf16.mxu1 %v3243_v10 }
  0x49   : > { %3092 = vmatpush3.bf16.msra.mxu0 %v3242_v42  ;;  %v2252_v42 = vrot.slane %v2853_v32, 2  ;;  %v2430_v46 = vshll.u32 %v2863_v34, 16  ;;  %v2335_v60 = vor.u32 %v2334_v13, %v2331_v50 }
  0x4a   : > { %3105 = vmatprep.subr.bf16.mxu0 %v3248_v19 }
  0x4b   : > { %3100 = vmatpush3.bf16.msra.mxu1 %v3243_v10  ;;  %v2427_v10 = vshrl.u32 %v2863_v34, 16  ;;  %v2432_v56 = vrot.slane %v2430_v46, 3 }
  0x4c   : > { %3094 = vmatmul.mubr.msk.bf16.vlgmr.msra.gmra.mxu0 %vm491_vm0, %v2813_v63  ;;  %3113 = vmatprep.subr.bf16.mxu1 %v3249_v0  ;;  %v2504_v63 = vld [vmem:[%s3373_s25 + $0x4] sm:$0x8] }
  0x4d   : > { %3106 = vmatpush3.bf16.msra.mxu0 %v3248_v19  ;;  %3109 = vmatprep.mubr.msk.bf16.mxu0 %vm491_vm0, %v1829_v2  ;;  %v2429_v55 = vrot.slane %v2427_v10, 2  ;;  %v3274_v2 = vld [vmem:[%s3735_s4 + $0x160] sm:$0xff]   ;;  %v2868_v4 = vcombine.low %v2504_v63, %v3627_v11 }
  0x4e   : > { %3102 = vmatmul.mubr.msk.bf16.vlgmr.msra.gmra.mxu1 %vm491_vm0, %v1748_v39  ;;  %3107 = vmatprep.subr.bf16.mxu0 %v3250_v3  ;;  %v2340_v39 = vshll.u32 %v3645_v29, 16 }
  0x4f   : > { %3114 = vmatpush3.bf16.msra.mxu1 %v3249_v0  ;;  %3117 = vmatprep.mubr.msk.bf16.mxu1 %vm491_vm0, %v1919_v8  ;;  %v3273_v0 = vld [vmem:[%s3735_s4 + $0x178] sm:$0xff]   ;;  %v2509_v8 = vrot.slane %v3645_v29, 3 }
  0x50   : > { %3115 = vmatprep.subr.bf16.mxu1 %v3251_v7  ;;  %v2342_v19 = vrot.slane %v2340_v39, 3 }
  0x51   : > { %3108 = vmatpush3.bf16.msra.mxu0 %v3250_v3 }
  0x52   : > { %3121 = vmatprep.subr.bf16.mxu0 %v3255_v20  ;;  %v2343_v61 = vor.u32 %v2342_v19, %v2339_v14 }
  0x53   : > { %3116 = vmatpush3.bf16.msra.mxu1 %v3251_v7  ;;  %v2508_v7 = vrot.slane %v2868_v4, 3 }
  0x54   : > { %3110 = vmatmul.mubr.msk.bf16.vlgmr.msra.gmra.mxu0 %vm491_vm0, %v1828_v51  ;;  %3129 = vmatprep.subr.bf16.mxu1 %v3256_v16  ;;  %v2253_v51 = vsel %vm2164_vm5, %v2251_v40, %v2252_v42  ;;  %v2344_v3 = vsel %vm2327_vm6, %v2335_v60, %v2343_v61 }
  0x55   : > { %3122 = vmatpush3.bf16.msra.mxu0 %v3255_v20  ;;  %3125 = vmatprep.mubr.msk.bf16.mxu0 %vm491_vm0, %v2009_v28  ;;  %v3277_v20 = vld [vmem:[%s3735_s4 + $0x180] sm:$0xff]   ;;  %v2510_v9 = vsel %vm1334_vm3, %v2508_v7, %v2509_v8 }
  0x56   : > { %3118 = vmatmul.mubr.msk.bf16.vlgmr.msra.gmra.mxu1 %vm491_vm0, %v1918_v12  ;;  %3123 = vmatprep.subr.bf16.mxu0 %v3257_v27  ;;  %v2433_v12 = vor.u32 %v2432_v56, %v2429_v55 }
  0x57   : > { %3130 = vmatpush3.bf16.msra.mxu1 %v3256_v16  ;;  %3133 = vmatprep.mubr.msk.bf16.mxu1 %vm491_vm0, %v2840_v30 }
  0x58   : > { %3131 = vmatprep.subr.bf16.mxu1 %v3258_v33  ;;  %v2434_v5 = vsel %vm2327_vm6, %v2425_v1, %v2433_v12 }
  0x59   : > { %3124 = vmatpush3.bf16.msra.mxu0 %v3257_v27 }
  0x5a   : > { %3137 = vmatprep.subr.bf16.mxu0 %v3261_v35 }
  0x5b   : > { %3132 = vmatpush3.bf16.msra.mxu1 %v3258_v33 }
  0x5c   : > { %3126 = vmatmul.mubr.msk.bf16.vlgmr.msra.gmra.mxu0 %vm491_vm0, %v2008_v18  ;;  %3145 = vmatprep.subr.bf16.mxu1 %v3263_v43 }
  0x5d   : > { %3138 = vmatpush3.bf16.msra.mxu0 %v3261_v35  ;;  %3141 = vmatprep.mubr.msk.bf16.mxu0 %vm491_vm0, %v2167_v48 }
  0x5e   : > { %3134 = vmatmul.mubr.msk.bf16.vlgmr.msra.gmra.mxu1 %vm491_vm0, %v2841_v47  ;;  %3139 = vmatprep.subr.bf16.mxu0 %v3264_v49 }
  0x5f   : > { %3146 = vmatpush3.bf16.msra.mxu1 %v3263_v43  ;;  %3149 = vmatprep.mubr.msk.bf16.mxu1 %vm491_vm0, %v2253_v51 }
  0x60   : > { %3147 = vmatprep.subr.bf16.mxu1 %v3265_v41 }
  0x61   : > { %3140 = vmatpush3.bf16.msra.mxu0 %v3264_v49 }
  0x62   : > { %3153 = vmatprep.subr.bf16.mxu0 %v3272_v57 }
  0x63   : > { %3148 = vmatpush3.bf16.msra.mxu1 %v3265_v41 }
  0x64   : > { %3142 = vmatmul.mubr.msk.bf16.vlgmr.msra.gmra.mxu0 %vm491_vm0, %v2166_v58  ;;  %3161 = vmatprep.subr.bf16.mxu1 %v3273_v0 }
  0x65   : > { %3154 = vmatpush3.bf16.msra.mxu0 %v3272_v57  ;;  %3157 = vmatprep.mubr.msk.bf16.mxu0 %vm491_vm0, %v2344_v3 }
  0x66   : > { %3150 = vmatmul.mubr.msk.bf16.vlgmr.msra.gmra.mxu1 %vm491_vm0, %v2252_v42  ;;  %3155 = vmatprep.subr.bf16.mxu0 %v3274_v2 }
  0x67   : > { %3162 = vmatpush3.bf16.msra.mxu1 %v3273_v0  ;;  %3165 = vmatprep.mubr.msk.bf16.mxu1 %vm491_vm0, %v2434_v5 }
  0x68   : > { %3163 = vmatprep.subr.bf16.mxu1 %v3275_v54 }
  0x69   : > { %3156 = vmatpush3.bf16.msra.mxu0 %v3274_v2 }
  0x6a   : > { %3169 = vmatprep.subr.bf16.mxu0 %v3276_v6 }
  0x6b   : > { %3164 = vmatpush3.bf16.msra.mxu1 %v3275_v54 }
  0x6c   : > { %3158 = vmatmul.mubr.msk.bf16.vlgmr.msra.gmra.mxu0 %vm491_vm0, %v2343_v61 }
  0x6d   : > { %3170 = vmatpush3.bf16.msra.mxu0 %v3276_v6  ;;  %3173 = vmatprep.mubr.msk.bf16.mxu0 %vm491_vm0, %v2510_v9 }
  0x6e   : > { %3166 = vmatmul.mubr.msk.bf16.vlgmr.msra.gmra.mxu1 %vm491_vm0, %v2433_v12  ;;  %3171 = vmatprep.subr.bf16.mxu0 %v3277_v20 }
  0x71   : > { %3172 = vmatpush3.bf16.msra.mxu0 %v3277_v20 }
  0x74   : > { %3174 = vmatmul.mubr.msk.bf16.vlgmr.msra.gmra.mxu0 %vm491_vm0, %v2509_v8 }
  0xd4   : > { %v2983_v11 = vpop.f32.mrf.mxu0  ;;  %v2991_v62 = vpop.f32.mrf.mxu1 }
  0xd5   : > { %v615_v43 = vadd.f32 %v2991_v62, %v2983_v11 }
  0xd6   : > { %v532_v15 = vpop.f32.mrf.mxu0  ;;  %v606_v16 = vpop.f32.mrf.mxu1 }
  0xd7   : > { %v607_v10 = vadd.f32 %v606_v16, %v532_v15 }
  0xd8   : > { %v2984_v17 = vpop.f32.mrf.mxu0  ;;  %v2992_v18 = vpop.f32.mrf.mxu1 }
  0xda   : > { %v535_v21 = vpop.f32.mrf.mxu0  ;;  %v609_v22 = vpop.f32.mrf.mxu1 }
  0xdb   : > { %v610_v14 = vadd.f32 %v609_v22, %v535_v21 }
  0xdc   : > { %v2999_v23 = vpop.f32.mrf.mxu0 }
  0xdd   : > { %v3007_v24 = vpop.f32.mrf.mxu1  ;;  %v718_v46 = vadd.f32 %v2999_v23, %v615_v43 }
  0xde   : > { %v702_v25 = vpop.f32.mrf.mxu0 }
  0xdf   : > { %v800_v26 = vpop.f32.mrf.mxu1  ;;  %v716_v49 = vadd.f32 %v702_v25, %v607_v10  ;;  %v816_v19 = vadd.f32 %v3007_v24, %v718_v46 }
  0xe0   : > { %v3000_v27 = vpop.f32.mrf.mxu0 }
  0xe1   : > { %v3008_v28 = vpop.f32.mrf.mxu1  ;;  %v814_v52 = vadd.f32 %v800_v26, %v716_v49 }
  0xe2   : > { %v705_v29 = vpop.f32.mrf.mxu0 }
  0xe3   : > { %v803_v30 = vpop.f32.mrf.mxu1  ;;  %v717_v53 = vadd.f32 %v705_v29, %v610_v14 }
  0xe4   : > { %v3015_v31 = vpop.f32.mrf.mxu0 }
  0xe5   : > { %v893_v55 = vadd.f32 %v3015_v31, %v816_v19  ;;  %v815_v0 = vadd.f32 %v803_v30, %v717_v53 }
  0xe6   : > { %v3023_v32 = vpop.f32.mrf.mxu1  ;;  %v877_v33 = vpop.f32.mrf.mxu0 }
  0xe7   : > { %v891_v60 = vadd.f32 %v877_v33, %v814_v52  ;;  %v973_v1 = vadd.f32 %v3023_v32, %v893_v55 }
  0xe8   : > { %v957_v34 = vpop.f32.mrf.mxu1  ;;  %v3016_v35 = vpop.f32.mrf.mxu0 }
  0xe9   : > { %v971_v3 = vadd.f32 %v957_v34, %v891_v60 }
  0xea   : > { %v3024_v36 = vpop.f32.mrf.mxu1  ;;  %v880_v58 = vpop.f32.mrf.mxu0 }
  0xeb   : > { %v892_v4 = vadd.f32 %v880_v58, %v815_v0 }
  0xec   : > { %v960_v59 = vpop.f32.mrf.mxu1  ;;  %v3031_v37 = vpop.f32.mrf.mxu0 }
  0xed   : > { %v1053_v54 = vadd.f32 %v3031_v37, %v973_v1  ;;  %v972_v9 = vadd.f32 %v960_v59, %v892_v4 }
  0xee   : > { %v3039_v38 = vpop.f32.mrf.mxu1  ;;  %v1037_v39 = vpop.f32.mrf.mxu0 }
  0xef   : > { %v1051_v7 = vadd.f32 %v1037_v39, %v971_v3  ;;  %v1151_v11 = vadd.f32 %v3039_v38, %v1053_v54 }
  0xf0   : > { %v1135_v40 = vpop.f32.mrf.mxu1  ;;  %v3032_v42 = vpop.f32.mrf.mxu0 }
  0xf1   : > { %v1149_v16 = vadd.f32 %v1135_v40, %v1051_v7 }
  0xf2   : > { %v3040_v44 = vpop.f32.mrf.mxu1  ;;  %v1040_v45 = vpop.f32.mrf.mxu0 }
  0xf3   : > { %v1052_v17 = vadd.f32 %v1040_v45, %v972_v9 }
  0xf4   : > { %v1138_v47 = vpop.f32.mrf.mxu1  ;;  %v3047_v48 = vpop.f32.mrf.mxu0 }
  0xf5   : > { %v1249_v18 = vadd.f32 %v3047_v48, %v1151_v11  ;;  %v1150_v26 = vadd.f32 %v1138_v47, %v1052_v17 }
  0xf6   : > { %v3055_v50 = vpop.f32.mrf.mxu1  ;;  %v1233_v13 = vpop.f32.mrf.mxu0 }
  0xf7   : > { %v1247_v23 = vadd.f32 %v1233_v13, %v1149_v16  ;;  %v1325_v27 = vadd.f32 %v3055_v50, %v1249_v18 }
  0xf8   : > { %v1309_v51 = vpop.f32.mrf.mxu1  ;;  %v3048_v41 = vpop.f32.mrf.mxu0 }
  0xf9   : > { %v1323_v30 = vadd.f32 %v1309_v51, %v1247_v23 }
  0xfa   : > { %v3056_v56 = vpop.f32.mrf.mxu1  ;;  %v1236_v57 = vpop.f32.mrf.mxu0 }
  0xfb   : > { %v1248_v31 = vadd.f32 %v1236_v57, %v1150_v26 }
  0xfc   : > { %v1312_v61 = vpop.f32.mrf.mxu1  ;;  %v3063_v63 = vpop.f32.mrf.mxu0 }
  0xfd   : > { %v1406_v32 = vadd.f32 %v3063_v63, %v1325_v27  ;;  %v1324_v59 = vadd.f32 %v1312_v61, %v1248_v31 }
  0xfe   : > { %v3071_v12 = vpop.f32.mrf.mxu1  ;;  %v1390_v2 = vpop.f32.mrf.mxu0 }
  0xff   : > { %v1404_v35 = vadd.f32 %v1390_v2, %v1323_v30  ;;  %v1486_v37 = vadd.f32 %v3071_v12, %v1406_v32 }
 0x100   : > { %v1470_v5 = vpop.f32.mrf.mxu1  ;;  %v3064_v6 = vpop.f32.mrf.mxu0 }
 0x101   : > { %v1484_v40 = vadd.f32 %v1470_v5, %v1404_v35 }
 0x102   : > { %v3072_v8 = vpop.f32.mrf.mxu1  ;;  %v1393_v20 = vpop.f32.mrf.mxu0 }
 0x103   : > { %v1405_v42 = vadd.f32 %v1393_v20, %v1324_v59 }
 0x104   : > { %v1473_v62 = vpop.f32.mrf.mxu1  ;;  %v3079_v15 = vpop.f32.mrf.mxu0 }
 0x105   : > { %v1577_v43 = vadd.f32 %v3079_v15, %v1486_v37  ;;  %v1485_v48 = vadd.f32 %v1473_v62, %v1405_v42 }
 0x106   : > { %v3087_v21 = vpop.f32.mrf.mxu1  ;;  %v1561_v22 = vpop.f32.mrf.mxu0 }
 0x107   : > { %v1575_v10 = vadd.f32 %v1561_v22, %v1484_v40  ;;  %v1667_v49 = vadd.f32 %v3087_v21, %v1577_v43 }
 0x108   : > { %v1651_v24 = vpop.f32.mrf.mxu1  ;;  %v3080_v25 = vpop.f32.mrf.mxu0 }
 0x109   : > { %v1665_v14 = vadd.f32 %v1651_v24, %v1575_v10 }
 0x10a   : > { %v3088_v28 = vpop.f32.mrf.mxu1  ;;  %v1564_v29 = vpop.f32.mrf.mxu0 }
 0x10b   : > { %v1576_v19 = vadd.f32 %v1564_v29, %v1485_v48 }
 0x10c   : > { %v1654_v33 = vpop.f32.mrf.mxu1  ;;  %v3095_v34 = vpop.f32.mrf.mxu0 }
 0x10d   : > { %v1738_v51 = vadd.f32 %v3095_v34, %v1667_v49  ;;  %v1666_v57 = vadd.f32 %v1654_v33, %v1576_v19 }
 0x10e   : > { %v3103_v36 = vpop.f32.mrf.mxu1  ;;  %v1722_v58 = vpop.f32.mrf.mxu0 }
 0x10f   : > { %v1736_v53 = vadd.f32 %v1722_v58, %v1665_v14  ;;  %v1818_v60 = vadd.f32 %v3103_v36, %v1738_v51 }
 0x110   : > { %v1802_v38 = vpop.f32.mrf.mxu1  ;;  %v3096_v39 = vpop.f32.mrf.mxu0 }
 0x111   : > { %v1816_v0 = vadd.f32 %v1802_v38, %v1736_v53 }
 0x112   : > { %v3104_v44 = vpop.f32.mrf.mxu1  ;;  %v1725_v45 = vpop.f32.mrf.mxu0 }
 0x113   : > { %v1737_v1 = vadd.f32 %v1725_v45, %v1666_v57 }
 0x114   : > { %v1805_v46 = vpop.f32.mrf.mxu1  ;;  %v3111_v47 = vpop.f32.mrf.mxu0 }
 0x115   : > { %v1898_v12 = vadd.f32 %v3111_v47, %v1818_v60  ;;  %v1817_v6 = vadd.f32 %v1805_v46, %v1737_v1  ;;  %v2873_v47 = vld [vmem:[%s3736_s5] ss:$0 sm:$0xff] }
 0x116   : > { %v3119_v50 = vpop.f32.mrf.mxu1  ;;  %v1882_v13 = vpop.f32.mrf.mxu0 }
 0x117   : > { %v1896_v4 = vadd.f32 %v1882_v13, %v1816_v0  ;;  %v1988_v7 = vadd.f32 %v3119_v50, %v1898_v12  ;;  %v2874_v13 = vld [vmem:[%s3737_s6] ss:$0 sm:$0xff] }
 0x118   : > { %v1972_v41 = vpop.f32.mrf.mxu1  ;;  %v3112_v52 = vpop.f32.mrf.mxu0 }
 0x119   : > { %v1986_v9 = vadd.f32 %v1972_v41, %v1896_v4 }
 0x11a   : > { %v3120_v55 = vpop.f32.mrf.mxu1  ;;  %v1885_v56 = vpop.f32.mrf.mxu0 }
 0x11b   : > { %v1897_v11 = vadd.f32 %v1885_v56, %v1817_v6  ;;  %v2611_v6 = vld [vmem:[%s3738_s7 + $0x10] sm:$0xff] }
 0x11c   : > { %v1975_v61 = vpop.f32.mrf.mxu1  ;;  %v3127_v63 = vpop.f32.mrf.mxu0 }
 0x11d   : > { %v2078_v62 = vadd.f32 %v3127_v63, %v1988_v7  ;;  %v1987_v22 = vadd.f32 %v1975_v61, %v1897_v11 }
 0x11e   : > { %v3135_v2 = vpop.f32.mrf.mxu1  ;;  %v2062_v3 = vpop.f32.mrf.mxu0 }
 0x11f   : > { %v2076_v17 = vadd.f32 %v2062_v3, %v1986_v9  ;;  %v2149_v23 = vadd.f32 %v3135_v2, %v2078_v62  ;;  %v2609_v3 = vld [vmem:[%s3738_s7] sm:$0xff] }
 0x120   : > { %v2133_v54 = vpop.f32.mrf.mxu1  ;;  %v3128_v5 = vpop.f32.mrf.mxu0 }
 0x121   : > { %v2147_v26 = vadd.f32 %v2133_v54, %v2076_v17  ;;  %v2610_v5 = vld [vmem:[%s3738_s7 + $0x8] sm:$0xff] }
 0x122   : > { %v3136_v8 = vpop.f32.mrf.mxu1  ;;  %v2065_v20 = vpop.f32.mrf.mxu0 }
 0x123   : > { %v2077_v27 = vadd.f32 %v2065_v20, %v1987_v22 }
 0x124   : > { %v2136_v15 = vpop.f32.mrf.mxu1  ;;  %v3143_v16 = vpop.f32.mrf.mxu0 }
 0x125   : > { %v2236_v28 = vadd.f32 %v3143_v16, %v2149_v23  ;;  %v2148_v34 = vadd.f32 %v2136_v15, %v2077_v27 }
 0x126   : > { %v3151_v18 = vpop.f32.mrf.mxu1  ;;  %v2220_v21 = vpop.f32.mrf.mxu0 }
 0x127   : > { %v2234_v31 = vadd.f32 %v2220_v21, %v2147_v26  ;;  %v2322_v35 = vadd.f32 %v3151_v18, %v2236_v28 }
 0x128   : > { %v2306_v24 = vpop.f32.mrf.mxu1  ;;  %v3144_v25 = vpop.f32.mrf.mxu0 }
 0x129   : > { %v2320_v59 = vadd.f32 %v2306_v24, %v2234_v31 }
 0x12a   : > { %v3152_v29 = vpop.f32.mrf.mxu1  ;;  %v2223_v30 = vpop.f32.mrf.mxu0 }
 0x12b   : > { %v2235_v37 = vadd.f32 %v2223_v30, %v2148_v34 }
 0x12c   : > { %v2309_v32 = vpop.f32.mrf.mxu1  ;;  %v3159_v33 = vpop.f32.mrf.mxu0 }
 0x12d   : > { %v2413_v38 = vadd.f32 %v3159_v33, %v2322_v35  ;;  %v2321_v45 = vadd.f32 %v2309_v32, %v2235_v37 }
 0x12e   : > { %v3167_v36 = vpop.f32.mrf.mxu1  ;;  %v2397_v58 = vpop.f32.mrf.mxu0 }
 0x12f   : > { %v2411_v42 = vadd.f32 %v2397_v58, %v2320_v59  ;;  %v2503_v10 = vadd.f32 %v3167_v36, %v2413_v38 }
 0x130   : > { %v2487_v39 = vpop.f32.mrf.mxu1  ;;  %v3160_v40 = vpop.f32.mrf.mxu0 }
 0x131   : > { %v2501_v48 = vadd.f32 %v2487_v39, %v2411_v42 }
 0x132   : > { %v3168_v43 = vpop.f32.mrf.mxu1  ;;  %v2400_v44 = vpop.f32.mrf.mxu0 }
 0x133   : > { %v2412_v49 = vadd.f32 %v2400_v44, %v2321_v45 }
 0x134   : > { %v3175_v46 = vpop.f32.mrf.mxu0  ;;  %v2490_v41 = vpop.f32.mrf.mxu1 }
 0x135   : > { %v2579_v50 = vadd.f32 %v3175_v46, %v2503_v10  ;;  %v2502_v53 = vadd.f32 %v2490_v41, %v2412_v49 }
 0x136   : > { %v2563_v14 = vpop.f32.mrf.mxu0 }
 0x137   : > { %v2589_v19 = vmul.f32 %v2873_v47, %v2579_v50  ;;  %v2577_v51 = vadd.f32 %v2563_v14, %v2501_v48 }
 0x138   : > { %v3176_v52 = vpop.f32.mrf.mxu0 }
 0x139   : > { %v2599_v55 = vadd.f32 %v2874_v13, %v2589_v19  ;;  %v2587_v56 = vmul.f32 %v2873_v47, %v2577_v51 }
 0x13a   : > { %v2566_v57 = vpop.f32.mrf.mxu0 }
 0x13b   : > { %v2597_v60 = vadd.f32 %v2874_v13, %v2587_v56  ;;  %v2578_v61 = vadd.f32 %v2566_v57, %v2502_v53  ;;  %v2605_v1 = vmul.f32 0.2, %v2599_v55  ;;  %vm2602_vm8 = vcmp.ge.f32.partialorder %v2599_v55, 0.0 }
 0x13d   : > { %v2603_v63 = vmul.f32 0.2, %v2597_v60  ;;  %v2588_v0 = vmul.f32 %v2873_v47, %v2578_v61  ;;  %vm2600_vm7 = vcmp.ge.f32.partialorder %v2597_v60, 0.0  ;;  %v2608_v54 = vsel %vm2602_vm8, %v2599_v55, %v2605_v1 }
 0x13e   : > { %v2614_v9 = vmul.f32 %v2611_v6, %v2608_v54 }
 0x13f   : > { %v2598_v12 = vadd.f32 %v2874_v13, %v2588_v0  ;;  %v2606_v2 = vsel %vm2600_vm7, %v2597_v60, %v2603_v63 }
 0x140   : > { %v2612_v7 = vmul.f32 %v2609_v3, %v2606_v2  ;;  %v2619_v16 = vsel %vm2615_vm10, %v2614_v9, 0.0 }
 0x141   : > { %v2604_v4 = vmul.f32 0.2, %v2598_v12  ;;  %vm2601_vm9 = vcmp.ge.f32.partialorder %v2598_v12, 0.0 }
 0x142   : > { %v2616_v11 = vsel %vm2615_vm10, %v2612_v7, 0.0 }
 0x143   : > { %v2607_v8 = vsel %vm2601_vm9, %v2598_v12, %v2604_v4 }
 0x144   : > { %v2613_v20 = vmul.f32 %v2610_v5, %v2607_v8 }
 0x146   : > { %v2617_v62 = vsel %vm2615_vm10, %v2613_v20, 0.0 }
 0x147   : > { %v2618_v15 = vadd.f32 %v2617_v62, %v2616_v11 }
 0x149   : > { %v2620_v17 = vadd.f32 %v2619_v16, %v2618_v15 }
 0x14b   : > { %2621 = vadd.xlane.f32.xlu0 %v2620_v17 }
 0x1d4   : > { %v2622_v18 = vpop.xlane.xlu0 %2621 }
 0x1d5   : > { %v2623_v21 = vrot.slane %v2622_v18, 4 }
 0x1d7   : > { %v2624_v22 = vadd.f32 %v2623_v21, %v2622_v18 }
 0x1d9   : > { %v2625_v23 = vrot.slane %v2624_v22, 2 }
 0x1db   : > { %v2626_v24 = vadd.f32 %v2625_v23, %v2624_v22 }
 0x1dd   : > { %v2627_v25 = vrot.slane %v2626_v24, 1 }
 0x1df   : > { %v2628_v26 = vadd.f32 %v2627_v25, %v2626_v24 }
 0x1e1   : > { %3178 = vpush %v2628_v26 }
 0x212   : > { %s3179_s25 = spop %3178 }
 0x213   : > { %v2630_v27 = vstv %s3179_s25 }
 0x214   : > { %2632 = vst [vmem:[%s363_s26] sm:$0xff] %v2630_v27 }
 0x215 PF: > { %s18_s27 = sadd.s32 1, %s3285_s27  }
 0x216   : > { %p15_p4 = scmp.ge.s32.totalorder %s18_s27, 4  }
 0x218   :  { %17 = sbr.rel (!%p15_p4) target bundleno = 1 (0x1), region = 91 }

</bundles_post_ra>
